<compile_context>
chip_gen: v7x
topology: tpu7x:2x2x1
jax: 0.10.0
libtpu: 0.0.40
codegen_flags: <defaults>
</compile_context>

<pallas_src>
import functools

import jax
import jax.numpy as jnp
from jax import lax
from jax.experimental import pallas as pl
from jax.experimental.pallas import tpu as pltpu


def _eye_like(n, dtype):
    return (lax.broadcasted_iota(jnp.int32, (n, n), 0)
            == lax.broadcasted_iota(jnp.int32, (n, n), 1)).astype(dtype)


# ----------------------------------------------------------------------------
# In-kernel building blocks (operate on values, not Refs)
# ----------------------------------------------------------------------------
def _gat_layer(x, adj, mask, w, asrc_blk, adst_blk, bias, heads, fout,
               neg_slope=0.2):
    """Dense multi-head GATConv + fused ReLU.

    x:        [N, Fin]
    w:        [Fin, H*Fout]
    asrc_blk: [H, H*Fout]  (att_src laid out block-diagonally per head)
    adst_blk: [H, H*Fout]
    bias:     [1, H*Fout]
    adj/mask: [N, N]
    """
    n = x.shape[0]
    hf = heads * fout
    xp = jnp.dot(x, w, preferred_element_type=jnp.float32)          # [N, H*Fout]

    # Attention scores for ALL heads with two matmuls (no per-head M=1 pushes).
    a_d_all = lax.dot_general(xp, adst_blk, (((1,), (1,)), ((), ())),
                              preferred_element_type=jnp.float32)   # [N, H]
    a_s_all = lax.dot_general(asrc_blk, xp, (((1,), (1,)), ((), ())),
                              preferred_element_type=jnp.float32)   # [H, N]

    col = lax.broadcasted_iota(jnp.int32, (n, hf), 1)
    out = None
    for h in range(heads):
        # e[i, j] : edge source j -> target i
        e = a_d_all[:, h:h + 1] + a_s_all[h:h + 1, :]                # [N, N]
        e = jnp.where(e > 0, e, neg_slope * e)                       # LeakyReLU(0.2)
        e = jnp.where(mask, e, -1e30)
        e = e - jnp.max(e, axis=-1, keepdims=True)
        # TODO(synk): scalar edge weights folded multiplicatively into the attention;
        # PyG GATConv ignores edge_attr unless edge_dim is configured.
        p = jnp.where(mask, jnp.exp(e) * adj, 0.0)
        denom = jnp.sum(p, axis=-1, keepdims=True) + 1e-16
        alpha = p * pl.reciprocal(denom, approx=True)                # [N, N]
        # Accumulate this head's output directly into full-width layout:
        # zero every column outside head h's block, then one wide matmul.
        head_mask = (col >= h * fout) & (col < (h + 1) * fout)
        xp_h = jnp.where(head_mask, xp, 0.0)                         # [N, H*Fout]
        contrib = jnp.dot(alpha, xp_h, preferred_element_type=jnp.float32)
        out = contrib if out is None else out + contrib
    return jnp.maximum(out + bias, 0.0)                              # fused t.relu


def _gip(y, gamma):
    """getGipKernel(y, 0, gamma, normalized=True)."""
    n, f = y.shape
    rmin = jnp.min(y, axis=-1, keepdims=True)
    rmax = jnp.max(y, axis=-1, keepdims=True)
    # TODO(synk): reference normalized_embedding has no eps; 1e-12 avoids NaN on constant rows.
    z = (y - rmin) / (rmax - rmin + 1e-12)
    k = lax.dot_general(z, z, (((1,), (1,)), ((), ())),
                        preferred_element_type=jnp.float32)          # z @ z.T [n, n]
    zz = z * z
    dg_col = jnp.sum(zz, axis=-1, keepdims=True)                     # diag(k) as [n, 1]
    ones_1f = jnp.ones((1, f), z.dtype)
    dg_row = lax.dot_general(ones_1f, zz, (((1,), (1,)), ((), ())),
                             preferred_element_type=jnp.float32)     # diag(k) as [1, n]
    m = jnp.sum(dg_col, axis=0, keepdims=True) / n + 1e-12           # mean(diag) + eps
    d = (dg_col + dg_row - 2.0 * k) / m                              # kernelToDistance / m
    return jnp.exp(-gamma * d)


def _combine_norm(ks, ps_ref):
    """sum_i ps[i]*ks[i]  ->  normalized_kernel."""
    acc = ps_ref[0] * ks[0]
    for i in range(1, len(ks)):
        acc = acc + ps_ref[i] * ks[i]
    k = jnp.abs(acc)
    # replace exact zeros by the smallest nonzero value (as in the repo helper)
    minnz = jnp.min(jnp.min(jnp.where(k > 0.0, k, 1e30), axis=-1, keepdims=True),
                    axis=0, keepdims=True)                           # [1, 1]
    k = jnp.where(k == 0.0, minnz, k)
    n = k.shape[0]
    kdiag = k * _eye_like(n, k.dtype)
    d_col = jnp.sqrt(jnp.sum(kdiag, axis=-1, keepdims=True))         # sqrt(diag) [n, 1]
    ones_1n = jnp.ones((1, n), k.dtype)
    d_row = jnp.sqrt(lax.dot_general(ones_1n, kdiag, (((1,), (0,)), ((), ())),
                                     preferred_element_type=jnp.float32))  # [1, n]
    return k / (d_col * d_row)


# ----------------------------------------------------------------------------
# Fully fused forward kernel
# ----------------------------------------------------------------------------
def _fused_forward_kernel(feat_ref, adj_ref,
                          w0_ref, as0_ref, ad0_ref, b0_ref,
                          w1_ref, as1_ref, ad1_ref, b1_ref,
                          w2_ref, as2_ref, ad2_ref, b2_ref,
                          w3_ref, as3_ref, ad3_ref, b3_ref,
                          dsim_ref, tsim_ref, alpha1_ref, alpha2_ref,
                          dps_ref, tps_ref,
                          out_ref,
                          *, ds, heads, fouts, gammas):
    adj = adj_ref[...]
    mask = adj > 0.0
    x = feat_ref[...]

    layer_refs = ((w0_ref, as0_ref, ad0_ref, b0_ref),
                  (w1_ref, as1_ref, ad1_ref, b1_ref),
                  (w2_ref, as2_ref, ad2_ref, b2_ref),
                  (w3_ref, as3_ref, ad3_ref, b3_ref))

    drug_ks, target_ks = [], []
    for li, (w_ref, as_ref, ad_ref, b_ref) in enumerate(layer_refs):
        x = _gat_layer(x, adj, mask, w_ref[...], as_ref[...], ad_ref[...],
                       b_ref[...], heads[li], fouts[li])
        drug_ks.append(_gip(x[:ds], gammas[li]))
        target_ks.append(_gip(x[ds:], gammas[li]))

    drug_ks.append(dsim_ref[...])
    target_ks.append(tsim_ref[...])

    drug_k = _combine_norm(drug_ks, dps_ref)
    target_k = _combine_norm(target_ks, tps_ref)

    # TODO(synk): self.drug_l / self.target_l (laplacian side-effects) are stored
    # attributes only in the reference and never affect the returned output.
    out1 = jnp.dot(drug_k, alpha1_ref[...], preferred_element_type=jnp.float32)
    out2 = jnp.dot(target_k, alpha2_ref[...], preferred_element_type=jnp.float32)
    out_ref[...] = 0.5 * (out1 + jnp.transpose(out2))


# ----------------------------------------------------------------------------
# Host-side wrapper
# ----------------------------------------------------------------------------
def _block_att(att, heads, fout):
    """[H, Fout] -> [H, H*Fout] with att[h] placed in block h (zeros elsewhere)."""
    blk = jnp.zeros((heads, heads * fout), jnp.float32)
    for h in range(heads):
        blk = blk.at[h, h * fout:(h + 1) * fout].set(att[h])
    return blk


def model_forward(feature, adj, params, cfg):
    ds = int(cfg["drug_size"])
    heads = tuple(int(h) for h in cfg["heads"])
    fouts = tuple(int(f) for f in cfg["F"])
    gammas = tuple(float(g) for g in cfg["gammas"])
    n = feature.shape[0]
    ts = n - ds

    gat_inputs = []
    for li in range(4):
        p = params["gat"][li]
        gat_inputs += [p["w"],
                       _block_att(p["att_src"], heads[li], fouts[li]),
                       _block_att(p["att_dst"], heads[li], fouts[li]),
                       p["bias"]]

    kern = functools.partial(_fused_forward_kernel,
                             ds=ds, heads=heads, fouts=fouts, gammas=gammas)
    vspec = pl.BlockSpec(memory_space=pltpu.MemorySpace.VMEM)
    sspec = pl.BlockSpec(memory_space=pltpu.MemorySpace.SMEM)
    n_vmem_inputs = 2 + len(gat_inputs) + 4   # feature, adj, gat params, sims, alphas

    return pl.pallas_call(
        kern,
        out_shape=jax.ShapeDtypeStruct((ds, ts), jnp.float32),
        in_specs=[vspec] * n_vmem_inputs + [sspec, sspec],
        out_specs=vspec,
    )(feature, adj, *gat_inputs,
      params["drug_sim"], params["target_sim"],
      params["alpha1"], params["alpha2"],
      params["drug_ps"], params["target_ps"])


def init_gat_params(key, fin, fout, heads):
    k1, k2, k3 = jax.random.split(key, 3)
    scale = 1.0 / jnp.sqrt(jnp.float32(fin))
    return {
        "w": jax.random.normal(k1, (fin, heads * fout), jnp.float32) * scale,
        "att_src": jax.random.normal(k2, (heads, fout), jnp.float32) * scale,
        "att_dst": jax.random.normal(k3, (heads, fout), jnp.float32) * scale,
        "bias": jnp.zeros((1, heads * fout), jnp.float32),
    }


if __name__ == "__main__":
    key = jax.random.PRNGKey(0)
    keys = jax.random.split(key, 10)

    drug_size, target_size = 16, 16
    n_nodes = drug_size + target_size              # 32
    fin = drug_size + target_size                  # GATConv(drug_size + target_size, F1, ...)
    F = [8, 8, 8, 8]
    heads = [2, 2, 2, 2]
    gammas = [0.5, 0.5, 0.5, 0.5]

    # inputs: node features + dense weighted adjacency (with self loops)
    feature = jax.random.normal(keys[0], (n_nodes, fin), jnp.float32)
    a = jax.random.uniform(keys[1], (n_nodes, n_nodes), jnp.float32)
    a = 0.5 * (a + a.T)
    adj = jnp.where(a > 0.6, a, 0.0)
    adj = adj * (1.0 - jnp.eye(n_nodes, dtype=jnp.float32)) + jnp.eye(n_nodes, dtype=jnp.float32)

    dsim = jax.random.uniform(keys[2], (drug_size, drug_size), jnp.float32)
    drug_sim = 0.5 * (dsim + dsim.T)
    drug_sim = drug_sim.at[jnp.arange(drug_size), jnp.arange(drug_size)].set(1.0)
    tsim = jax.random.uniform(keys[3], (target_size, target_size), jnp.float32)
    target_sim = 0.5 * (tsim + tsim.T)
    target_sim = target_sim.at[jnp.arange(target_size), jnp.arange(target_size)].set(1.0)

    alpha1 = jax.random.normal(keys[4], (drug_size, target_size), jnp.float32)
    alpha2 = jax.random.normal(keys[5], (target_size, drug_size), jnp.float32)

    in_dims = [fin, F[0] * heads[0], F[1] * heads[1], F[2] * heads[2]]
    gat_params = [init_gat_params(keys[6 + i], in_dims[i], F[i], heads[i]) for i in range(4)]

    params = {
        "gat": gat_params,
        "drug_sim": drug_sim,
        "target_sim": target_sim,
        "drug_ps": jnp.array([1.0, 0.5, 0.5, 0.3, 0.3], jnp.float32),
        "target_ps": jnp.array([1.0, 0.5, 0.5, 0.3, 0.3], jnp.float32),
        "alpha1": alpha1,
        "alpha2": alpha2,
    }
    cfg = {"drug_size": drug_size, "F": F, "heads": heads, "gammas": gammas}

    fwd = jax.jit(lambda f, a_, p: model_forward(f, a_, p, cfg))
    out = fwd(feature, adj, params)
    jax.block_until_ready(out)
    assert out.shape == (drug_size, target_size)
    print("KERNEL_OK")
</pallas_src>

<mosaic_0001>
module attributes {stable_mosaic.version = 11 : i64} {
  func.func @_fused_forward_kernel(%arg0: memref<32x32xf32, #tpu.memory_space<vmem>>, %arg1: memref<32x32xf32, #tpu.memory_space<vmem>>, %arg2: memref<32x16xf32, #tpu.memory_space<vmem>>, %arg3: memref<2x16xf32, #tpu.memory_space<vmem>>, %arg4: memref<2x16xf32, #tpu.memory_space<vmem>>, %arg5: memref<1x16xf32, #tpu.memory_space<vmem>>, %arg6: memref<16x16xf32, #tpu.memory_space<vmem>>, %arg7: memref<2x16xf32, #tpu.memory_space<vmem>>, %arg8: memref<2x16xf32, #tpu.memory_space<vmem>>, %arg9: memref<1x16xf32, #tpu.memory_space<vmem>>, %arg10: memref<16x16xf32, #tpu.memory_space<vmem>>, %arg11: memref<2x16xf32, #tpu.memory_space<vmem>>, %arg12: memref<2x16xf32, #tpu.memory_space<vmem>>, %arg13: memref<1x16xf32, #tpu.memory_space<vmem>>, %arg14: memref<16x16xf32, #tpu.memory_space<vmem>>, %arg15: memref<2x16xf32, #tpu.memory_space<vmem>>, %arg16: memref<2x16xf32, #tpu.memory_space<vmem>>, %arg17: memref<1x16xf32, #tpu.memory_space<vmem>>, %arg18: memref<16x16xf32, #tpu.memory_space<vmem>>, %arg19: memref<16x16xf32, #tpu.memory_space<vmem>>, %arg20: memref<16x16xf32, #tpu.memory_space<vmem>>, %arg21: memref<16x16xf32, #tpu.memory_space<vmem>>, %arg22: memref<5xf32, #tpu.memory_space<smem>>, %arg23: memref<5xf32, #tpu.memory_space<smem>>, %arg24: memref<16x16xf32, #tpu.memory_space<vmem>>) attributes {dimension_semantics = [], scalar_prefetch = 0 : i64, scratch_operands = 0 : i64, tpu.core_type = #tpu.core_type<tc>} {
    %c0 = arith.constant 0 : index
    %c0_0 = arith.constant 0 : index
    %0 = vector.load %arg1[%c0, %c0_0] : memref<32x32xf32, #tpu.memory_space<vmem>>, vector<32x32xf32>
    %cst = arith.constant 0.000000e+00 : f32
    %1 = vector.broadcast %cst : f32 to vector<32x32xf32>
    %2 = arith.cmpf ogt, %0, %1 : vector<32x32xf32>
    %c0_1 = arith.constant 0 : index
    %c0_2 = arith.constant 0 : index
    %3 = vector.load %arg0[%c0_1, %c0_2] : memref<32x32xf32, #tpu.memory_space<vmem>>, vector<32x32xf32>
    %c0_3 = arith.constant 0 : index
    %c0_4 = arith.constant 0 : index
    %4 = vector.load %arg2[%c0_3, %c0_4] : memref<32x16xf32, #tpu.memory_space<vmem>>, vector<32x16xf32>
    %c0_5 = arith.constant 0 : index
    %c0_6 = arith.constant 0 : index
    %5 = vector.load %arg3[%c0_5, %c0_6] : memref<2x16xf32, #tpu.memory_space<vmem>>, vector<2x16xf32>
    %c0_7 = arith.constant 0 : index
    %c0_8 = arith.constant 0 : index
    %6 = vector.load %arg4[%c0_7, %c0_8] : memref<2x16xf32, #tpu.memory_space<vmem>>, vector<2x16xf32>
    %c0_9 = arith.constant 0 : index
    %c0_10 = arith.constant 0 : index
    %7 = vector.load %arg5[%c0_9, %c0_10] : memref<1x16xf32, #tpu.memory_space<vmem>>, vector<1x16xf32>
    %cst_11 = arith.constant dense<0.000000e+00> : vector<32x16xf32>
    %8 = tpu.matmul %3, %4, %cst_11 {dimension_numbers = #tpu.dot_dimension_numbers<[1], [0], [0], [1], [0, 0, 1, 1], [], []>} : vector<32x32xf32>, vector<32x16xf32>, vector<32x16xf32> -> vector<32x16xf32>
    %cst_12 = arith.constant dense<0.000000e+00> : vector<32x2xf32>
    %9 = tpu.matmul %8, %6, %cst_12 {dimension_numbers = #tpu.dot_dimension_numbers<[1], [1], [0], [0], [0, 0, 1, 0], [], []>} : vector<32x16xf32>, vector<2x16xf32>, vector<32x2xf32> -> vector<32x2xf32>
    %cst_13 = arith.constant dense<0.000000e+00> : vector<2x32xf32>
    %10 = tpu.matmul %5, %8, %cst_13 {dimension_numbers = #tpu.dot_dimension_numbers<[1], [1], [0], [0], [0, 0, 1, 0], [], []>} : vector<2x16xf32>, vector<32x16xf32>, vector<2x32xf32> -> vector<2x32xf32>
    %11 = tpu.iota {dimensions = array<i32: 1>} : vector<32x16xi32>
    %12 = vector.extract_strided_slice %9 {offsets = [0, 0], sizes = [32, 1], strides = [1, 1]} : vector<32x2xf32> to vector<32x1xf32>
    %13 = vector.extract_strided_slice %10 {offsets = [0, 0], sizes = [1, 32], strides = [1, 1]} : vector<2x32xf32> to vector<1x32xf32>
    %14 = vector.broadcast %12 : vector<32x1xf32> to vector<32x32xf32>
    %15 = vector.broadcast %13 : vector<1x32xf32> to vector<32x32xf32>
    %16 = arith.addf %14, %15 : vector<32x32xf32>
    %cst_14 = arith.constant 0.000000e+00 : f32
    %17 = vector.broadcast %cst_14 : f32 to vector<32x32xf32>
    %18 = arith.cmpf ogt, %16, %17 : vector<32x32xf32>
    %cst_15 = arith.constant 2.000000e-01 : f32
    %19 = vector.broadcast %cst_15 : f32 to vector<32x32xf32>
    %20 = arith.mulf %19, %16 : vector<32x32xf32>
    %21 = arith.select %18, %16, %20 : vector<32x32xi1>, vector<32x32xf32>
    %cst_16 = arith.constant -1.000000e+30 : f32
    %22 = vector.broadcast %cst_16 : f32 to vector<32x32xf32>
    %23 = arith.select %2, %21, %22 : vector<32x32xi1>, vector<32x32xf32>
    %cst_17 = arith.constant dense<0xFF800000> : vector<32xf32>
    %24 = vector.multi_reduction <maximumf>, %23, %cst_17 [1] : vector<32x32xf32> to vector<32xf32>
    %25 = vector.shape_cast %24 : vector<32xf32> to vector<32x1xf32>
    %26 = vector.broadcast %25 : vector<32x1xf32> to vector<32x32xf32>
    %27 = arith.subf %23, %26 : vector<32x32xf32>
    %28 = math.exp %27 : vector<32x32xf32>
    %29 = arith.mulf %28, %0 : vector<32x32xf32>
    %cst_18 = arith.constant 0.000000e+00 : f32
    %30 = vector.broadcast %cst_18 : f32 to vector<32x32xf32>
    %31 = arith.select %2, %29, %30 : vector<32x32xi1>, vector<32x32xf32>
    %cst_19 = arith.constant dense<0.000000e+00> : vector<32xf32>
    %32 = vector.multi_reduction <add>, %31, %cst_19 [1] : vector<32x32xf32> to vector<32xf32>
    %33 = vector.shape_cast %32 : vector<32xf32> to vector<32x1xf32>
    %cst_20 = arith.constant 1.000000e-16 : f32
    %34 = vector.broadcast %cst_20 : f32 to vector<32x1xf32>
    %35 = arith.addf %33, %34 : vector<32x1xf32>
    %36 = tpu.reciprocal %35 {approx = true} : vector<32x1xf32> -> vector<32x1xf32>
    %37 = vector.broadcast %36 : vector<32x1xf32> to vector<32x32xf32>
    %38 = arith.mulf %31, %37 : vector<32x32xf32>
    %c0_i32 = arith.constant 0 : i32
    %39 = vector.broadcast %c0_i32 : i32 to vector<32x16xi32>
    %40 = arith.cmpi sge, %11, %39 : vector<32x16xi32>
    %c8_i32 = arith.constant 8 : i32
    %41 = vector.broadcast %c8_i32 : i32 to vector<32x16xi32>
    %42 = arith.cmpi slt, %11, %41 : vector<32x16xi32>
    %43 = arith.andi %40, %42 : vector<32x16xi1>
    %cst_21 = arith.constant 0.000000e+00 : f32
    %44 = vector.broadcast %cst_21 : f32 to vector<32x16xf32>
    %45 = arith.select %43, %8, %44 : vector<32x16xi1>, vector<32x16xf32>
    %cst_22 = arith.constant dense<0.000000e+00> : vector<32x16xf32>
    %46 = tpu.matmul %38, %45, %cst_22 {dimension_numbers = #tpu.dot_dimension_numbers<[1], [0], [0], [1], [0, 0, 1, 1], [], []>} : vector<32x32xf32>, vector<32x16xf32>, vector<32x16xf32> -> vector<32x16xf32>
    %47 = vector.extract_strided_slice %9 {offsets = [0, 1], sizes = [32, 1], strides = [1, 1]} : vector<32x2xf32> to vector<32x1xf32>
    %48 = vector.extract_strided_slice %10 {offsets = [1, 0], sizes = [1, 32], strides = [1, 1]} : vector<2x32xf32> to vector<1x32xf32>
    %49 = vector.broadcast %47 : vector<32x1xf32> to vector<32x32xf32>
    %50 = vector.broadcast %48 : vector<1x32xf32> to vector<32x32xf32>
    %51 = arith.addf %49, %50 : vector<32x32xf32>
    %cst_23 = arith.constant 0.000000e+00 : f32
    %52 = vector.broadcast %cst_23 : f32 to vector<32x32xf32>
    %53 = arith.cmpf ogt, %51, %52 : vector<32x32xf32>
    %cst_24 = arith.constant 2.000000e-01 : f32
    %54 = vector.broadcast %cst_24 : f32 to vector<32x32xf32>
    %55 = arith.mulf %54, %51 : vector<32x32xf32>
    %56 = arith.select %53, %51, %55 : vector<32x32xi1>, vector<32x32xf32>
    %cst_25 = arith.constant -1.000000e+30 : f32
    %57 = vector.broadcast %cst_25 : f32 to vector<32x32xf32>
    %58 = arith.select %2, %56, %57 : vector<32x32xi1>, vector<32x32xf32>
    %cst_26 = arith.constant dense<0xFF800000> : vector<32xf32>
    %59 = vector.multi_reduction <maximumf>, %58, %cst_26 [1] : vector<32x32xf32> to vector<32xf32>
    %60 = vector.shape_cast %59 : vector<32xf32> to vector<32x1xf32>
    %61 = vector.broadcast %60 : vector<32x1xf32> to vector<32x32xf32>
    %62 = arith.subf %58, %61 : vector<32x32xf32>
    %63 = math.exp %62 : vector<32x32xf32>
    %64 = arith.mulf %63, %0 : vector<32x32xf32>
    %cst_27 = arith.constant 0.000000e+00 : f32
    %65 = vector.broadcast %cst_27 : f32 to vector<32x32xf32>
    %66 = arith.select %2, %64, %65 : vector<32x32xi1>, vector<32x32xf32>
    %cst_28 = arith.constant dense<0.000000e+00> : vector<32xf32>
    %67 = vector.multi_reduction <add>, %66, %cst_28 [1] : vector<32x32xf32> to vector<32xf32>
    %68 = vector.shape_cast %67 : vector<32xf32> to vector<32x1xf32>
    %cst_29 = arith.constant 1.000000e-16 : f32
    %69 = vector.broadcast %cst_29 : f32 to vector<32x1xf32>
    %70 = arith.addf %68, %69 : vector<32x1xf32>
    %71 = tpu.reciprocal %70 {approx = true} : vector<32x1xf32> -> vector<32x1xf32>
    %72 = vector.broadcast %71 : vector<32x1xf32> to vector<32x32xf32>
    %73 = arith.mulf %66, %72 : vector<32x32xf32>
    %c8_i32_30 = arith.constant 8 : i32
    %74 = vector.broadcast %c8_i32_30 : i32 to vector<32x16xi32>
    %75 = arith.cmpi sge, %11, %74 : vector<32x16xi32>
    %c16_i32 = arith.constant 16 : i32
    %76 = vector.broadcast %c16_i32 : i32 to vector<32x16xi32>
    %77 = arith.cmpi slt, %11, %76 : vector<32x16xi32>
    %78 = arith.andi %75, %77 : vector<32x16xi1>
    %cst_31 = arith.constant 0.000000e+00 : f32
    %79 = vector.broadcast %cst_31 : f32 to vector<32x16xf32>
    %80 = arith.select %78, %8, %79 : vector<32x16xi1>, vector<32x16xf32>
    %cst_32 = arith.constant dense<0.000000e+00> : vector<32x16xf32>
    %81 = tpu.matmul %73, %80, %cst_32 {dimension_numbers = #tpu.dot_dimension_numbers<[1], [0], [0], [1], [0, 0, 1, 1], [], []>} : vector<32x32xf32>, vector<32x16xf32>, vector<32x16xf32> -> vector<32x16xf32>
    %82 = arith.addf %46, %81 : vector<32x16xf32>
    %83 = vector.broadcast %7 : vector<1x16xf32> to vector<32x16xf32>
    %84 = arith.addf %82, %83 : vector<32x16xf32>
    %cst_33 = arith.constant 0.000000e+00 : f32
    %85 = vector.broadcast %cst_33 : f32 to vector<32x16xf32>
    %86 = arith.maximumf %84, %85 : vector<32x16xf32>
    %87 = vector.extract_strided_slice %86 {offsets = [0, 0], sizes = [16, 16], strides = [1, 1]} : vector<32x16xf32> to vector<16x16xf32>
    %cst_34 = arith.constant dense<0x7F800000> : vector<16xf32>
    %88 = vector.multi_reduction <minimumf>, %87, %cst_34 [1] : vector<16x16xf32> to vector<16xf32>
    %89 = vector.shape_cast %88 : vector<16xf32> to vector<16x1xf32>
    %cst_35 = arith.constant dense<0xFF800000> : vector<16xf32>
    %90 = vector.multi_reduction <maximumf>, %87, %cst_35 [1] : vector<16x16xf32> to vector<16xf32>
    %91 = vector.shape_cast %90 : vector<16xf32> to vector<16x1xf32>
    %92 = vector.broadcast %89 : vector<16x1xf32> to vector<16x16xf32>
    %93 = arith.subf %87, %92 : vector<16x16xf32>
    %94 = arith.subf %91, %89 : vector<16x1xf32>
    %cst_36 = arith.constant 9.99999996E-13 : f32
    %95 = vector.broadcast %cst_36 : f32 to vector<16x1xf32>
    %96 = arith.addf %94, %95 : vector<16x1xf32>
    %97 = vector.broadcast %96 : vector<16x1xf32> to vector<16x16xf32>
    %98 = arith.divf %93, %97 : vector<16x16xf32>
    %cst_37 = arith.constant dense<0.000000e+00> : vector<16x16xf32>
    %99 = tpu.matmul %98, %98, %cst_37 {dimension_numbers = #tpu.dot_dimension_numbers<[1], [1], [0], [0], [0, 0, 1, 0], [], []>} : vector<16x16xf32>, vector<16x16xf32>, vector<16x16xf32> -> vector<16x16xf32>
    %100 = arith.mulf %98, %98 : vector<16x16xf32>
    %cst_38 = arith.constant dense<0.000000e+00> : vector<16xf32>
    %101 = vector.multi_reduction <add>, %100, %cst_38 [1] : vector<16x16xf32> to vector<16xf32>
    %102 = vector.shape_cast %101 : vector<16xf32> to vector<16x1xf32>
    %cst_39 = arith.constant 1.000000e+00 : f32
    %103 = vector.broadcast %cst_39 : f32 to vector<1x16xf32>
    %cst_40 = arith.constant dense<0.000000e+00> : vector<1x16xf32>
    %104 = tpu.matmul %103, %100, %cst_40 {dimension_numbers = #tpu.dot_dimension_numbers<[1], [1], [0], [0], [0, 0, 1, 0], [], []>} : vector<1x16xf32>, vector<16x16xf32>, vector<1x16xf32> -> vector<1x16xf32>
    %cst_41 = arith.constant dense<0.000000e+00> : vector<1xf32>
    %105 = vector.multi_reduction <add>, %102, %cst_41 [0] : vector<16x1xf32> to vector<1xf32>
    %106 = vector.shape_cast %105 : vector<1xf32> to vector<1x1xf32>
    %cst_42 = arith.constant 1.600000e+01 : f32
    %107 = vector.broadcast %cst_42 : f32 to vector<1x1xf32>
    %108 = arith.divf %106, %107 : vector<1x1xf32>
    %cst_43 = arith.constant 9.99999996E-13 : f32
    %109 = vector.broadcast %cst_43 : f32 to vector<1x1xf32>
    %110 = arith.addf %108, %109 : vector<1x1xf32>
    %111 = vector.broadcast %102 : vector<16x1xf32> to vector<16x16xf32>
    %112 = vector.broadcast %104 : vector<1x16xf32> to vector<16x16xf32>
    %113 = arith.addf %111, %112 : vector<16x16xf32>
    %cst_44 = arith.constant 2.000000e+00 : f32
    %114 = vector.broadcast %cst_44 : f32 to vector<16x16xf32>
    %115 = arith.mulf %114, %99 : vector<16x16xf32>
    %116 = arith.subf %113, %115 : vector<16x16xf32>
    %117 = vector.broadcast %110 : vector<1x1xf32> to vector<16x16xf32>
    %118 = arith.divf %116, %117 : vector<16x16xf32>
    %cst_45 = arith.constant -5.000000e-01 : f32
    %119 = vector.broadcast %cst_45 : f32 to vector<16x16xf32>
    %120 = arith.mulf %119, %118 : vector<16x16xf32>
    %121 = math.exp %120 : vector<16x16xf32>
    %122 = vector.extract_strided_slice %86 {offsets = [16, 0], sizes = [16, 16], strides = [1, 1]} : vector<32x16xf32> to vector<16x16xf32>
    %cst_46 = arith.constant dense<0x7F800000> : vector<16xf32>
    %123 = vector.multi_reduction <minimumf>, %122, %cst_46 [1] : vector<16x16xf32> to vector<16xf32>
    %124 = vector.shape_cast %123 : vector<16xf32> to vector<16x1xf32>
    %cst_47 = arith.constant dense<0xFF800000> : vector<16xf32>
    %125 = vector.multi_reduction <maximumf>, %122, %cst_47 [1] : vector<16x16xf32> to vector<16xf32>
    %126 = vector.shape_cast %125 : vector<16xf32> to vector<16x1xf32>
    %127 = vector.broadcast %124 : vector<16x1xf32> to vector<16x16xf32>
    %128 = arith.subf %122, %127 : vector<16x16xf32>
    %129 = arith.subf %126, %124 : vector<16x1xf32>
    %cst_48 = arith.constant 9.99999996E-13 : f32
    %130 = vector.broadcast %cst_48 : f32 to vector<16x1xf32>
    %131 = arith.addf %129, %130 : vector<16x1xf32>
    %132 = vector.broadcast %131 : vector<16x1xf32> to vector<16x16xf32>
    %133 = arith.divf %128, %132 : vector<16x16xf32>
    %cst_49 = arith.constant dense<0.000000e+00> : vector<16x16xf32>
    %134 = tpu.matmul %133, %133, %cst_49 {dimension_numbers = #tpu.dot_dimension_numbers<[1], [1], [0], [0], [0, 0, 1, 0], [], []>} : vector<16x16xf32>, vector<16x16xf32>, vector<16x16xf32> -> vector<16x16xf32>
    %135 = arith.mulf %133, %133 : vector<16x16xf32>
    %cst_50 = arith.constant dense<0.000000e+00> : vector<16xf32>
    %136 = vector.multi_reduction <add>, %135, %cst_50 [1] : vector<16x16xf32> to vector<16xf32>
    %137 = vector.shape_cast %136 : vector<16xf32> to vector<16x1xf32>
    %cst_51 = arith.constant 1.000000e+00 : f32
    %138 = vector.broadcast %cst_51 : f32 to vector<1x16xf32>
    %cst_52 = arith.constant dense<0.000000e+00> : vector<1x16xf32>
    %139 = tpu.matmul %138, %135, %cst_52 {dimension_numbers = #tpu.dot_dimension_numbers<[1], [1], [0], [0], [0, 0, 1, 0], [], []>} : vector<1x16xf32>, vector<16x16xf32>, vector<1x16xf32> -> vector<1x16xf32>
    %cst_53 = arith.constant dense<0.000000e+00> : vector<1xf32>
    %140 = vector.multi_reduction <add>, %137, %cst_53 [0] : vector<16x1xf32> to vector<1xf32>
    %141 = vector.shape_cast %140 : vector<1xf32> to vector<1x1xf32>
    %cst_54 = arith.constant 1.600000e+01 : f32
    %142 = vector.broadcast %cst_54 : f32 to vector<1x1xf32>
    %143 = arith.divf %141, %142 : vector<1x1xf32>
    %cst_55 = arith.constant 9.99999996E-13 : f32
    %144 = vector.broadcast %cst_55 : f32 to vector<1x1xf32>
    %145 = arith.addf %143, %144 : vector<1x1xf32>
    %146 = vector.broadcast %137 : vector<16x1xf32> to vector<16x16xf32>
    %147 = vector.broadcast %139 : vector<1x16xf32> to vector<16x16xf32>
    %148 = arith.addf %146, %147 : vector<16x16xf32>
    %cst_56 = arith.constant 2.000000e+00 : f32
    %149 = vector.broadcast %cst_56 : f32 to vector<16x16xf32>
    %150 = arith.mulf %149, %134 : vector<16x16xf32>
    %151 = arith.subf %148, %150 : vector<16x16xf32>
    %152 = vector.broadcast %145 : vector<1x1xf32> to vector<16x16xf32>
    %153 = arith.divf %151, %152 : vector<16x16xf32>
    %cst_57 = arith.constant -5.000000e-01 : f32
    %154 = vector.broadcast %cst_57 : f32 to vector<16x16xf32>
    %155 = arith.mulf %154, %153 : vector<16x16xf32>
    %156 = math.exp %155 : vector<16x16xf32>
    %c0_58 = arith.constant 0 : index
    %c0_59 = arith.constant 0 : index
    %157 = vector.load %arg6[%c0_58, %c0_59] : memref<16x16xf32, #tpu.memory_space<vmem>>, vector<16x16xf32>
    %c0_60 = arith.constant 0 : index
    %c0_61 = arith.constant 0 : index
    %158 = vector.load %arg7[%c0_60, %c0_61] : memref<2x16xf32, #tpu.memory_space<vmem>>, vector<2x16xf32>
    %c0_62 = arith.constant 0 : index
    %c0_63 = arith.constant 0 : index
    %159 = vector.load %arg8[%c0_62, %c0_63] : memref<2x16xf32, #tpu.memory_space<vmem>>, vector<2x16xf32>
    %c0_64 = arith.constant 0 : index
    %c0_65 = arith.constant 0 : index
    %160 = vector.load %arg9[%c0_64, %c0_65] : memref<1x16xf32, #tpu.memory_space<vmem>>, vector<1x16xf32>
    %cst_66 = arith.constant dense<0.000000e+00> : vector<32x16xf32>
    %161 = tpu.matmul %86, %157, %cst_66 {dimension_numbers = #tpu.dot_dimension_numbers<[1], [0], [0], [1], [0, 0, 1, 1], [], []>} : vector<32x16xf32>, vector<16x16xf32>, vector<32x16xf32> -> vector<32x16xf32>
    %cst_67 = arith.constant dense<0.000000e+00> : vector<32x2xf32>
    %162 = tpu.matmul %161, %159, %cst_67 {dimension_numbers = #tpu.dot_dimension_numbers<[1], [1], [0], [0], [0, 0, 1, 0], [], []>} : vector<32x16xf32>, vector<2x16xf32>, vector<32x2xf32> -> vector<32x2xf32>
    %cst_68 = arith.constant dense<0.000000e+00> : vector<2x32xf32>
    %163 = tpu.matmul %158, %161, %cst_68 {dimension_numbers = #tpu.dot_dimension_numbers<[1], [1], [0], [0], [0, 0, 1, 0], [], []>} : vector<2x16xf32>, vector<32x16xf32>, vector<2x32xf32> -> vector<2x32xf32>
    %164 = tpu.iota {dimensions = array<i32: 1>} : vector<32x16xi32>
    %165 = vector.extract_strided_slice %162 {offsets = [0, 0], sizes = [32, 1], strides = [1, 1]} : vector<32x2xf32> to vector<32x1xf32>
    %166 = vector.extract_strided_slice %163 {offsets = [0, 0], sizes = [1, 32], strides = [1, 1]} : vector<2x32xf32> to vector<1x32xf32>
    %167 = vector.broadcast %165 : vector<32x1xf32> to vector<32x32xf32>
    %168 = vector.broadcast %166 : vector<1x32xf32> to vector<32x32xf32>
    %169 = arith.addf %167, %168 : vector<32x32xf32>
    %cst_69 = arith.constant 0.000000e+00 : f32
    %170 = vector.broadcast %cst_69 : f32 to vector<32x32xf32>
    %171 = arith.cmpf ogt, %169, %170 : vector<32x32xf32>
    %cst_70 = arith.constant 2.000000e-01 : f32
    %172 = vector.broadcast %cst_70 : f32 to vector<32x32xf32>
    %173 = arith.mulf %172, %169 : vector<32x32xf32>
    %174 = arith.select %171, %169, %173 : vector<32x32xi1>, vector<32x32xf32>
    %cst_71 = arith.constant -1.000000e+30 : f32
    %175 = vector.broadcast %cst_71 : f32 to vector<32x32xf32>
    %176 = arith.select %2, %174, %175 : vector<32x32xi1>, vector<32x32xf32>
    %cst_72 = arith.constant dense<0xFF800000> : vector<32xf32>
    %177 = vector.multi_reduction <maximumf>, %176, %cst_72 [1] : vector<32x32xf32> to vector<32xf32>
    %178 = vector.shape_cast %177 : vector<32xf32> to vector<32x1xf32>
    %179 = vector.broadcast %178 : vector<32x1xf32> to vector<32x32xf32>
    %180 = arith.subf %176, %179 : vector<32x32xf32>
    %181 = math.exp %180 : vector<32x32xf32>
    %182 = arith.mulf %181, %0 : vector<32x32xf32>
    %cst_73 = arith.constant 0.000000e+00 : f32
    %183 = vector.broadcast %cst_73 : f32 to vector<32x32xf32>
    %184 = arith.select %2, %182, %183 : vector<32x32xi1>, vector<32x32xf32>
    %cst_74 = arith.constant dense<0.000000e+00> : vector<32xf32>
    %185 = vector.multi_reduction <add>, %184, %cst_74 [1] : vector<32x32xf32> to vector<32xf32>
    %186 = vector.shape_cast %185 : vector<32xf32> to vector<32x1xf32>
    %cst_75 = arith.constant 1.000000e-16 : f32
    %187 = vector.broadcast %cst_75 : f32 to vector<32x1xf32>
    %188 = arith.addf %186, %187 : vector<32x1xf32>
    %189 = tpu.reciprocal %188 {approx = true} : vector<32x1xf32> -> vector<32x1xf32>
    %190 = vector.broadcast %189 : vector<32x1xf32> to vector<32x32xf32>
    %191 = arith.mulf %184, %190 : vector<32x32xf32>
    %c0_i32_76 = arith.constant 0 : i32
    %192 = vector.broadcast %c0_i32_76 : i32 to vector<32x16xi32>
    %193 = arith.cmpi sge, %164, %192 : vector<32x16xi32>
    %c8_i32_77 = arith.constant 8 : i32
    %194 = vector.broadcast %c8_i32_77 : i32 to vector<32x16xi32>
    %195 = arith.cmpi slt, %164, %194 : vector<32x16xi32>
    %196 = arith.andi %193, %195 : vector<32x16xi1>
    %cst_78 = arith.constant 0.000000e+00 : f32
    %197 = vector.broadcast %cst_78 : f32 to vector<32x16xf32>
    %198 = arith.select %196, %161, %197 : vector<32x16xi1>, vector<32x16xf32>
    %cst_79 = arith.constant dense<0.000000e+00> : vector<32x16xf32>
    %199 = tpu.matmul %191, %198, %cst_79 {dimension_numbers = #tpu.dot_dimension_numbers<[1], [0], [0], [1], [0, 0, 1, 1], [], []>} : vector<32x32xf32>, vector<32x16xf32>, vector<32x16xf32> -> vector<32x16xf32>
    %200 = vector.extract_strided_slice %162 {offsets = [0, 1], sizes = [32, 1], strides = [1, 1]} : vector<32x2xf32> to vector<32x1xf32>
    %201 = vector.extract_strided_slice %163 {offsets = [1, 0], sizes = [1, 32], strides = [1, 1]} : vector<2x32xf32> to vector<1x32xf32>
    %202 = vector.broadcast %200 : vector<32x1xf32> to vector<32x32xf32>
    %203 = vector.broadcast %201 : vector<1x32xf32> to vector<32x32xf32>
    %204 = arith.addf %202, %203 : vector<32x32xf32>
    %cst_80 = arith.constant 0.000000e+00 : f32
    %205 = vector.broadcast %cst_80 : f32 to vector<32x32xf32>
    %206 = arith.cmpf ogt, %204, %205 : vector<32x32xf32>
    %cst_81 = arith.constant 2.000000e-01 : f32
    %207 = vector.broadcast %cst_81 : f32 to vector<32x32xf32>
    %208 = arith.mulf %207, %204 : vector<32x32xf32>
    %209 = arith.select %206, %204, %208 : vector<32x32xi1>, vector<32x32xf32>
    %cst_82 = arith.constant -1.000000e+30 : f32
    %210 = vector.broadcast %cst_82 : f32 to vector<32x32xf32>
    %211 = arith.select %2, %209, %210 : vector<32x32xi1>, vector<32x32xf32>
    %cst_83 = arith.constant dense<0xFF800000> : vector<32xf32>
    %212 = vector.multi_reduction <maximumf>, %211, %cst_83 [1] : vector<32x32xf32> to vector<32xf32>
    %213 = vector.shape_cast %212 : vector<32xf32> to vector<32x1xf32>
    %214 = vector.broadcast %213 : vector<32x1xf32> to vector<32x32xf32>
    %215 = arith.subf %211, %214 : vector<32x32xf32>
    %216 = math.exp %215 : vector<32x32xf32>
    %217 = arith.mulf %216, %0 : vector<32x32xf32>
    %cst_84 = arith.constant 0.000000e+00 : f32
    %218 = vector.broadcast %cst_84 : f32 to vector<32x32xf32>
    %219 = arith.select %2, %217, %218 : vector<32x32xi1>, vector<32x32xf32>
    %cst_85 = arith.constant dense<0.000000e+00> : vector<32xf32>
    %220 = vector.multi_reduction <add>, %219, %cst_85 [1] : vector<32x32xf32> to vector<32xf32>
    %221 = vector.shape_cast %220 : vector<32xf32> to vector<32x1xf32>
    %cst_86 = arith.constant 1.000000e-16 : f32
    %222 = vector.broadcast %cst_86 : f32 to vector<32x1xf32>
    %223 = arith.addf %221, %222 : vector<32x1xf32>
    %224 = tpu.reciprocal %223 {approx = true} : vector<32x1xf32> -> vector<32x1xf32>
    %225 = vector.broadcast %224 : vector<32x1xf32> to vector<32x32xf32>
    %226 = arith.mulf %219, %225 : vector<32x32xf32>
    %c8_i32_87 = arith.constant 8 : i32
    %227 = vector.broadcast %c8_i32_87 : i32 to vector<32x16xi32>
    %228 = arith.cmpi sge, %164, %227 : vector<32x16xi32>
    %c16_i32_88 = arith.constant 16 : i32
    %229 = vector.broadcast %c16_i32_88 : i32 to vector<32x16xi32>
    %230 = arith.cmpi slt, %164, %229 : vector<32x16xi32>
    %231 = arith.andi %228, %230 : vector<32x16xi1>
    %cst_89 = arith.constant 0.000000e+00 : f32
    %232 = vector.broadcast %cst_89 : f32 to vector<32x16xf32>
    %233 = arith.select %231, %161, %232 : vector<32x16xi1>, vector<32x16xf32>
    %cst_90 = arith.constant dense<0.000000e+00> : vector<32x16xf32>
    %234 = tpu.matmul %226, %233, %cst_90 {dimension_numbers = #tpu.dot_dimension_numbers<[1], [0], [0], [1], [0, 0, 1, 1], [], []>} : vector<32x32xf32>, vector<32x16xf32>, vector<32x16xf32> -> vector<32x16xf32>
    %235 = arith.addf %199, %234 : vector<32x16xf32>
    %236 = vector.broadcast %160 : vector<1x16xf32> to vector<32x16xf32>
    %237 = arith.addf %235, %236 : vector<32x16xf32>
    %cst_91 = arith.constant 0.000000e+00 : f32
    %238 = vector.broadcast %cst_91 : f32 to vector<32x16xf32>
    %239 = arith.maximumf %237, %238 : vector<32x16xf32>
    %240 = vector.extract_strided_slice %239 {offsets = [0, 0], sizes = [16, 16], strides = [1, 1]} : vector<32x16xf32> to vector<16x16xf32>
    %cst_92 = arith.constant dense<0x7F800000> : vector<16xf32>
    %241 = vector.multi_reduction <minimumf>, %240, %cst_92 [1] : vector<16x16xf32> to vector<16xf32>
    %242 = vector.shape_cast %241 : vector<16xf32> to vector<16x1xf32>
    %cst_93 = arith.constant dense<0xFF800000> : vector<16xf32>
    %243 = vector.multi_reduction <maximumf>, %240, %cst_93 [1] : vector<16x16xf32> to vector<16xf32>
    %244 = vector.shape_cast %243 : vector<16xf32> to vector<16x1xf32>
    %245 = vector.broadcast %242 : vector<16x1xf32> to vector<16x16xf32>
    %246 = arith.subf %240, %245 : vector<16x16xf32>
    %247 = arith.subf %244, %242 : vector<16x1xf32>
    %cst_94 = arith.constant 9.99999996E-13 : f32
    %248 = vector.broadcast %cst_94 : f32 to vector<16x1xf32>
    %249 = arith.addf %247, %248 : vector<16x1xf32>
    %250 = vector.broadcast %249 : vector<16x1xf32> to vector<16x16xf32>
    %251 = arith.divf %246, %250 : vector<16x16xf32>
    %cst_95 = arith.constant dense<0.000000e+00> : vector<16x16xf32>
    %252 = tpu.matmul %251, %251, %cst_95 {dimension_numbers = #tpu.dot_dimension_numbers<[1], [1], [0], [0], [0, 0, 1, 0], [], []>} : vector<16x16xf32>, vector<16x16xf32>, vector<16x16xf32> -> vector<16x16xf32>
    %253 = arith.mulf %251, %251 : vector<16x16xf32>
    %cst_96 = arith.constant dense<0.000000e+00> : vector<16xf32>
    %254 = vector.multi_reduction <add>, %253, %cst_96 [1] : vector<16x16xf32> to vector<16xf32>
    %255 = vector.shape_cast %254 : vector<16xf32> to vector<16x1xf32>
    %cst_97 = arith.constant 1.000000e+00 : f32
    %256 = vector.broadcast %cst_97 : f32 to vector<1x16xf32>
    %cst_98 = arith.constant dense<0.000000e+00> : vector<1x16xf32>
    %257 = tpu.matmul %256, %253, %cst_98 {dimension_numbers = #tpu.dot_dimension_numbers<[1], [1], [0], [0], [0, 0, 1, 0], [], []>} : vector<1x16xf32>, vector<16x16xf32>, vector<1x16xf32> -> vector<1x16xf32>
    %cst_99 = arith.constant dense<0.000000e+00> : vector<1xf32>
    %258 = vector.multi_reduction <add>, %255, %cst_99 [0] : vector<16x1xf32> to vector<1xf32>
    %259 = vector.shape_cast %258 : vector<1xf32> to vector<1x1xf32>
    %cst_100 = arith.constant 1.600000e+01 : f32
    %260 = vector.broadcast %cst_100 : f32 to vector<1x1xf32>
    %261 = arith.divf %259, %260 : vector<1x1xf32>
    %cst_101 = arith.constant 9.99999996E-13 : f32
    %262 = vector.broadcast %cst_101 : f32 to vector<1x1xf32>
    %263 = arith.addf %261, %262 : vector<1x1xf32>
    %264 = vector.broadcast %255 : vector<16x1xf32> to vector<16x16xf32>
    %265 = vector.broadcast %257 : vector<1x16xf32> to vector<16x16xf32>
    %266 = arith.addf %264, %265 : vector<16x16xf32>
    %cst_102 = arith.constant 2.000000e+00 : f32
    %267 = vector.broadcast %cst_102 : f32 to vector<16x16xf32>
    %268 = arith.mulf %267, %252 : vector<16x16xf32>
    %269 = arith.subf %266, %268 : vector<16x16xf32>
    %270 = vector.broadcast %263 : vector<1x1xf32> to vector<16x16xf32>
    %271 = arith.divf %269, %270 : vector<16x16xf32>
    %cst_103 = arith.constant -5.000000e-01 : f32
    %272 = vector.broadcast %cst_103 : f32 to vector<16x16xf32>
    %273 = arith.mulf %272, %271 : vector<16x16xf32>
    %274 = math.exp %273 : vector<16x16xf32>
    %275 = vector.extract_strided_slice %239 {offsets = [16, 0], sizes = [16, 16], strides = [1, 1]} : vector<32x16xf32> to vector<16x16xf32>
    %cst_104 = arith.constant dense<0x7F800000> : vector<16xf32>
    %276 = vector.multi_reduction <minimumf>, %275, %cst_104 [1] : vector<16x16xf32> to vector<16xf32>
    %277 = vector.shape_cast %276 : vector<16xf32> to vector<16x1xf32>
    %cst_105 = arith.constant dense<0xFF800000> : vector<16xf32>
    %278 = vector.multi_reduction <maximumf>, %275, %cst_105 [1] : vector<16x16xf32> to vector<16xf32>
    %279 = vector.shape_cast %278 : vector<16xf32> to vector<16x1xf32>
    %280 = vector.broadcast %277 : vector<16x1xf32> to vector<16x16xf32>
    %281 = arith.subf %275, %280 : vector<16x16xf32>
    %282 = arith.subf %279, %277 : vector<16x1xf32>
    %cst_106 = arith.constant 9.99999996E-13 : f32
    %283 = vector.broadcast %cst_106 : f32 to vector<16x1xf32>
    %284 = arith.addf %282, %283 : vector<16x1xf32>
    %285 = vector.broadcast %284 : vector<16x1xf32> to vector<16x16xf32>
    %286 = arith.divf %281, %285 : vector<16x16xf32>
    %cst_107 = arith.constant dense<0.000000e+00> : vector<16x16xf32>
    %287 = tpu.matmul %286, %286, %cst_107 {dimension_numbers = #tpu.dot_dimension_numbers<[1], [1], [0], [0], [0, 0, 1, 0], [], []>} : vector<16x16xf32>, vector<16x16xf32>, vector<16x16xf32> -> vector<16x16xf32>
    %288 = arith.mulf %286, %286 : vector<16x16xf32>
    %cst_108 = arith.constant dense<0.000000e+00> : vector<16xf32>
    %289 = vector.multi_reduction <add>, %288, %cst_108 [1] : vector<16x16xf32> to vector<16xf32>
    %290 = vector.shape_cast %289 : vector<16xf32> to vector<16x1xf32>
    %cst_109 = arith.constant 1.000000e+00 : f32
    %291 = vector.broadcast %cst_109 : f32 to vector<1x16xf32>
    %cst_110 = arith.constant dense<0.000000e+00> : vector<1x16xf32>
    %292 = tpu.matmul %291, %288, %cst_110 {dimension_numbers = #tpu.dot_dimension_numbers<[1], [1], [0], [0], [0, 0, 1, 0], [], []>} : vector<1x16xf32>, vector<16x16xf32>, vector<1x16xf32> -> vector<1x16xf32>
    %cst_111 = arith.constant dense<0.000000e+00> : vector<1xf32>
    %293 = vector.multi_reduction <add>, %290, %cst_111 [0] : vector<16x1xf32> to vector<1xf32>
    %294 = vector.shape_cast %293 : vector<1xf32> to vector<1x1xf32>
    %cst_112 = arith.constant 1.600000e+01 : f32
    %295 = vector.broadcast %cst_112 : f32 to vector<1x1xf32>
    %296 = arith.divf %294, %295 : vector<1x1xf32>
    %cst_113 = arith.constant 9.99999996E-13 : f32
    %297 = vector.broadcast %cst_113 : f32 to vector<1x1xf32>
    %298 = arith.addf %296, %297 : vector<1x1xf32>
    %299 = vector.broadcast %290 : vector<16x1xf32> to vector<16x16xf32>
    %300 = vector.broadcast %292 : vector<1x16xf32> to vector<16x16xf32>
    %301 = arith.addf %299, %300 : vector<16x16xf32>
    %cst_114 = arith.constant 2.000000e+00 : f32
    %302 = vector.broadcast %cst_114 : f32 to vector<16x16xf32>
    %303 = arith.mulf %302, %287 : vector<16x16xf32>
    %304 = arith.subf %301, %303 : vector<16x16xf32>
    %305 = vector.broadcast %298 : vector<1x1xf32> to vector<16x16xf32>
    %306 = arith.divf %304, %305 : vector<16x16xf32>
    %cst_115 = arith.constant -5.000000e-01 : f32
    %307 = vector.broadcast %cst_115 : f32 to vector<16x16xf32>
    %308 = arith.mulf %307, %306 : vector<16x16xf32>
    %309 = math.exp %308 : vector<16x16xf32>
    %c0_116 = arith.constant 0 : index
    %c0_117 = arith.constant 0 : index
    %310 = vector.load %arg10[%c0_116, %c0_117] : memref<16x16xf32, #tpu.memory_space<vmem>>, vector<16x16xf32>
    %c0_118 = arith.constant 0 : index
    %c0_119 = arith.constant 0 : index
    %311 = vector.load %arg11[%c0_118, %c0_119] : memref<2x16xf32, #tpu.memory_space<vmem>>, vector<2x16xf32>
    %c0_120 = arith.constant 0 : index
    %c0_121 = arith.constant 0 : index
    %312 = vector.load %arg12[%c0_120, %c0_121] : memref<2x16xf32, #tpu.memory_space<vmem>>, vector<2x16xf32>
    %c0_122 = arith.constant 0 : index
    %c0_123 = arith.constant 0 : index
    %313 = vector.load %arg13[%c0_122, %c0_123] : memref<1x16xf32, #tpu.memory_space<vmem>>, vector<1x16xf32>
    %cst_124 = arith.constant dense<0.000000e+00> : vector<32x16xf32>
    %314 = tpu.matmul %239, %310, %cst_124 {dimension_numbers = #tpu.dot_dimension_numbers<[1], [0], [0], [1], [0, 0, 1, 1], [], []>} : vector<32x16xf32>, vector<16x16xf32>, vector<32x16xf32> -> vector<32x16xf32>
    %cst_125 = arith.constant dense<0.000000e+00> : vector<32x2xf32>
    %315 = tpu.matmul %314, %312, %cst_125 {dimension_numbers = #tpu.dot_dimension_numbers<[1], [1], [0], [0], [0, 0, 1, 0], [], []>} : vector<32x16xf32>, vector<2x16xf32>, vector<32x2xf32> -> vector<32x2xf32>
    %cst_126 = arith.constant dense<0.000000e+00> : vector<2x32xf32>
    %316 = tpu.matmul %311, %314, %cst_126 {dimension_numbers = #tpu.dot_dimension_numbers<[1], [1], [0], [0], [0, 0, 1, 0], [], []>} : vector<2x16xf32>, vector<32x16xf32>, vector<2x32xf32> -> vector<2x32xf32>
    %317 = tpu.iota {dimensions = array<i32: 1>} : vector<32x16xi32>
    %318 = vector.extract_strided_slice %315 {offsets = [0, 0], sizes = [32, 1], strides = [1, 1]} : vector<32x2xf32> to vector<32x1xf32>
    %319 = vector.extract_strided_slice %316 {offsets = [0, 0], sizes = [1, 32], strides = [1, 1]} : vector<2x32xf32> to vector<1x32xf32>
    %320 = vector.broadcast %318 : vector<32x1xf32> to vector<32x32xf32>
    %321 = vector.broadcast %319 : vector<1x32xf32> to vector<32x32xf32>
    %322 = arith.addf %320, %321 : vector<32x32xf32>
    %cst_127 = arith.constant 0.000000e+00 : f32
    %323 = vector.broadcast %cst_127 : f32 to vector<32x32xf32>
    %324 = arith.cmpf ogt, %322, %323 : vector<32x32xf32>
    %cst_128 = arith.constant 2.000000e-01 : f32
    %325 = vector.broadcast %cst_128 : f32 to vector<32x32xf32>
    %326 = arith.mulf %325, %322 : vector<32x32xf32>
    %327 = arith.select %324, %322, %326 : vector<32x32xi1>, vector<32x32xf32>
    %cst_129 = arith.constant -1.000000e+30 : f32
    %328 = vector.broadcast %cst_129 : f32 to vector<32x32xf32>
    %329 = arith.select %2, %327, %328 : vector<32x32xi1>, vector<32x32xf32>
    %cst_130 = arith.constant dense<0xFF800000> : vector<32xf32>
    %330 = vector.multi_reduction <maximumf>, %329, %cst_130 [1] : vector<32x32xf32> to vector<32xf32>
    %331 = vector.shape_cast %330 : vector<32xf32> to vector<32x1xf32>
    %332 = vector.broadcast %331 : vector<32x1xf32> to vector<32x32xf32>
    %333 = arith.subf %329, %332 : vector<32x32xf32>
    %334 = math.exp %333 : vector<32x32xf32>
    %335 = arith.mulf %334, %0 : vector<32x32xf32>
    %cst_131 = arith.constant 0.000000e+00 : f32
    %336 = vector.broadcast %cst_131 : f32 to vector<32x32xf32>
    %337 = arith.select %2, %335, %336 : vector<32x32xi1>, vector<32x32xf32>
    %cst_132 = arith.constant dense<0.000000e+00> : vector<32xf32>
    %338 = vector.multi_reduction <add>, %337, %cst_132 [1] : vector<32x32xf32> to vector<32xf32>
    %339 = vector.shape_cast %338 : vector<32xf32> to vector<32x1xf32>
    %cst_133 = arith.constant 1.000000e-16 : f32
    %340 = vector.broadcast %cst_133 : f32 to vector<32x1xf32>
    %341 = arith.addf %339, %340 : vector<32x1xf32>
    %342 = tpu.reciprocal %341 {approx = true} : vector<32x1xf32> -> vector<32x1xf32>
    %343 = vector.broadcast %342 : vector<32x1xf32> to vector<32x32xf32>
    %344 = arith.mulf %337, %343 : vector<32x32xf32>
    %c0_i32_134 = arith.constant 0 : i32
    %345 = vector.broadcast %c0_i32_134 : i32 to vector<32x16xi32>
    %346 = arith.cmpi sge, %317, %345 : vector<32x16xi32>
    %c8_i32_135 = arith.constant 8 : i32
    %347 = vector.broadcast %c8_i32_135 : i32 to vector<32x16xi32>
    %348 = arith.cmpi slt, %317, %347 : vector<32x16xi32>
    %349 = arith.andi %346, %348 : vector<32x16xi1>
    %cst_136 = arith.constant 0.000000e+00 : f32
    %350 = vector.broadcast %cst_136 : f32 to vector<32x16xf32>
    %351 = arith.select %349, %314, %350 : vector<32x16xi1>, vector<32x16xf32>
    %cst_137 = arith.constant dense<0.000000e+00> : vector<32x16xf32>
    %352 = tpu.matmul %344, %351, %cst_137 {dimension_numbers = #tpu.dot_dimension_numbers<[1], [0], [0], [1], [0, 0, 1, 1], [], []>} : vector<32x32xf32>, vector<32x16xf32>, vector<32x16xf32> -> vector<32x16xf32>
    %353 = vector.extract_strided_slice %315 {offsets = [0, 1], sizes = [32, 1], strides = [1, 1]} : vector<32x2xf32> to vector<32x1xf32>
    %354 = vector.extract_strided_slice %316 {offsets = [1, 0], sizes = [1, 32], strides = [1, 1]} : vector<2x32xf32> to vector<1x32xf32>
    %355 = vector.broadcast %353 : vector<32x1xf32> to vector<32x32xf32>
    %356 = vector.broadcast %354 : vector<1x32xf32> to vector<32x32xf32>
    %357 = arith.addf %355, %356 : vector<32x32xf32>
    %cst_138 = arith.constant 0.000000e+00 : f32
    %358 = vector.broadcast %cst_138 : f32 to vector<32x32xf32>
    %359 = arith.cmpf ogt, %357, %358 : vector<32x32xf32>
    %cst_139 = arith.constant 2.000000e-01 : f32
    %360 = vector.broadcast %cst_139 : f32 to vector<32x32xf32>
    %361 = arith.mulf %360, %357 : vector<32x32xf32>
    %362 = arith.select %359, %357, %361 : vector<32x32xi1>, vector<32x32xf32>
    %cst_140 = arith.constant -1.000000e+30 : f32
    %363 = vector.broadcast %cst_140 : f32 to vector<32x32xf32>
    %364 = arith.select %2, %362, %363 : vector<32x32xi1>, vector<32x32xf32>
    %cst_141 = arith.constant dense<0xFF800000> : vector<32xf32>
    %365 = vector.multi_reduction <maximumf>, %364, %cst_141 [1] : vector<32x32xf32> to vector<32xf32>
    %366 = vector.shape_cast %365 : vector<32xf32> to vector<32x1xf32>
    %367 = vector.broadcast %366 : vector<32x1xf32> to vector<32x32xf32>
    %368 = arith.subf %364, %367 : vector<32x32xf32>
    %369 = math.exp %368 : vector<32x32xf32>
    %370 = arith.mulf %369, %0 : vector<32x32xf32>
    %cst_142 = arith.constant 0.000000e+00 : f32
    %371 = vector.broadcast %cst_142 : f32 to vector<32x32xf32>
    %372 = arith.select %2, %370, %371 : vector<32x32xi1>, vector<32x32xf32>
    %cst_143 = arith.constant dense<0.000000e+00> : vector<32xf32>
    %373 = vector.multi_reduction <add>, %372, %cst_143 [1] : vector<32x32xf32> to vector<32xf32>
    %374 = vector.shape_cast %373 : vector<32xf32> to vector<32x1xf32>
    %cst_144 = arith.constant 1.000000e-16 : f32
    %375 = vector.broadcast %cst_144 : f32 to vector<32x1xf32>
    %376 = arith.addf %374, %375 : vector<32x1xf32>
    %377 = tpu.reciprocal %376 {approx = true} : vector<32x1xf32> -> vector<32x1xf32>
    %378 = vector.broadcast %377 : vector<32x1xf32> to vector<32x32xf32>
    %379 = arith.mulf %372, %378 : vector<32x32xf32>
    %c8_i32_145 = arith.constant 8 : i32
    %380 = vector.broadcast %c8_i32_145 : i32 to vector<32x16xi32>
    %381 = arith.cmpi sge, %317, %380 : vector<32x16xi32>
    %c16_i32_146 = arith.constant 16 : i32
    %382 = vector.broadcast %c16_i32_146 : i32 to vector<32x16xi32>
    %383 = arith.cmpi slt, %317, %382 : vector<32x16xi32>
    %384 = arith.andi %381, %383 : vector<32x16xi1>
    %cst_147 = arith.constant 0.000000e+00 : f32
    %385 = vector.broadcast %cst_147 : f32 to vector<32x16xf32>
    %386 = arith.select %384, %314, %385 : vector<32x16xi1>, vector<32x16xf32>
    %cst_148 = arith.constant dense<0.000000e+00> : vector<32x16xf32>
    %387 = tpu.matmul %379, %386, %cst_148 {dimension_numbers = #tpu.dot_dimension_numbers<[1], [0], [0], [1], [0, 0, 1, 1], [], []>} : vector<32x32xf32>, vector<32x16xf32>, vector<32x16xf32> -> vector<32x16xf32>
    %388 = arith.addf %352, %387 : vector<32x16xf32>
    %389 = vector.broadcast %313 : vector<1x16xf32> to vector<32x16xf32>
    %390 = arith.addf %388, %389 : vector<32x16xf32>
    %cst_149 = arith.constant 0.000000e+00 : f32
    %391 = vector.broadcast %cst_149 : f32 to vector<32x16xf32>
    %392 = arith.maximumf %390, %391 : vector<32x16xf32>
    %393 = vector.extract_strided_slice %392 {offsets = [0, 0], sizes = [16, 16], strides = [1, 1]} : vector<32x16xf32> to vector<16x16xf32>
    %cst_150 = arith.constant dense<0x7F800000> : vector<16xf32>
    %394 = vector.multi_reduction <minimumf>, %393, %cst_150 [1] : vector<16x16xf32> to vector<16xf32>
    %395 = vector.shape_cast %394 : vector<16xf32> to vector<16x1xf32>
    %cst_151 = arith.constant dense<0xFF800000> : vector<16xf32>
    %396 = vector.multi_reduction <maximumf>, %393, %cst_151 [1] : vector<16x16xf32> to vector<16xf32>
    %397 = vector.shape_cast %396 : vector<16xf32> to vector<16x1xf32>
    %398 = vector.broadcast %395 : vector<16x1xf32> to vector<16x16xf32>
    %399 = arith.subf %393, %398 : vector<16x16xf32>
    %400 = arith.subf %397, %395 : vector<16x1xf32>
    %cst_152 = arith.constant 9.99999996E-13 : f32
    %401 = vector.broadcast %cst_152 : f32 to vector<16x1xf32>
    %402 = arith.addf %400, %401 : vector<16x1xf32>
    %403 = vector.broadcast %402 : vector<16x1xf32> to vector<16x16xf32>
    %404 = arith.divf %399, %403 : vector<16x16xf32>
    %cst_153 = arith.constant dense<0.000000e+00> : vector<16x16xf32>
    %405 = tpu.matmul %404, %404, %cst_153 {dimension_numbers = #tpu.dot_dimension_numbers<[1], [1], [0], [0], [0, 0, 1, 0], [], []>} : vector<16x16xf32>, vector<16x16xf32>, vector<16x16xf32> -> vector<16x16xf32>
    %406 = arith.mulf %404, %404 : vector<16x16xf32>
    %cst_154 = arith.constant dense<0.000000e+00> : vector<16xf32>
    %407 = vector.multi_reduction <add>, %406, %cst_154 [1] : vector<16x16xf32> to vector<16xf32>
    %408 = vector.shape_cast %407 : vector<16xf32> to vector<16x1xf32>
    %cst_155 = arith.constant 1.000000e+00 : f32
    %409 = vector.broadcast %cst_155 : f32 to vector<1x16xf32>
    %cst_156 = arith.constant dense<0.000000e+00> : vector<1x16xf32>
    %410 = tpu.matmul %409, %406, %cst_156 {dimension_numbers = #tpu.dot_dimension_numbers<[1], [1], [0], [0], [0, 0, 1, 0], [], []>} : vector<1x16xf32>, vector<16x16xf32>, vector<1x16xf32> -> vector<1x16xf32>
    %cst_157 = arith.constant dense<0.000000e+00> : vector<1xf32>
    %411 = vector.multi_reduction <add>, %408, %cst_157 [0] : vector<16x1xf32> to vector<1xf32>
    %412 = vector.shape_cast %411 : vector<1xf32> to vector<1x1xf32>
    %cst_158 = arith.constant 1.600000e+01 : f32
    %413 = vector.broadcast %cst_158 : f32 to vector<1x1xf32>
    %414 = arith.divf %412, %413 : vector<1x1xf32>
    %cst_159 = arith.constant 9.99999996E-13 : f32
    %415 = vector.broadcast %cst_159 : f32 to vector<1x1xf32>
    %416 = arith.addf %414, %415 : vector<1x1xf32>
    %417 = vector.broadcast %408 : vector<16x1xf32> to vector<16x16xf32>
    %418 = vector.broadcast %410 : vector<1x16xf32> to vector<16x16xf32>
    %419 = arith.addf %417, %418 : vector<16x16xf32>
    %cst_160 = arith.constant 2.000000e+00 : f32
    %420 = vector.broadcast %cst_160 : f32 to vector<16x16xf32>
    %421 = arith.mulf %420, %405 : vector<16x16xf32>
    %422 = arith.subf %419, %421 : vector<16x16xf32>
    %423 = vector.broadcast %416 : vector<1x1xf32> to vector<16x16xf32>
    %424 = arith.divf %422, %423 : vector<16x16xf32>
    %cst_161 = arith.constant -5.000000e-01 : f32
    %425 = vector.broadcast %cst_161 : f32 to vector<16x16xf32>
    %426 = arith.mulf %425, %424 : vector<16x16xf32>
    %427 = math.exp %426 : vector<16x16xf32>
    %428 = vector.extract_strided_slice %392 {offsets = [16, 0], sizes = [16, 16], strides = [1, 1]} : vector<32x16xf32> to vector<16x16xf32>
    %cst_162 = arith.constant dense<0x7F800000> : vector<16xf32>
    %429 = vector.multi_reduction <minimumf>, %428, %cst_162 [1] : vector<16x16xf32> to vector<16xf32>
    %430 = vector.shape_cast %429 : vector<16xf32> to vector<16x1xf32>
    %cst_163 = arith.constant dense<0xFF800000> : vector<16xf32>
    %431 = vector.multi_reduction <maximumf>, %428, %cst_163 [1] : vector<16x16xf32> to vector<16xf32>
    %432 = vector.shape_cast %431 : vector<16xf32> to vector<16x1xf32>
    %433 = vector.broadcast %430 : vector<16x1xf32> to vector<16x16xf32>
    %434 = arith.subf %428, %433 : vector<16x16xf32>
    %435 = arith.subf %432, %430 : vector<16x1xf32>
    %cst_164 = arith.constant 9.99999996E-13 : f32
    %436 = vector.broadcast %cst_164 : f32 to vector<16x1xf32>
    %437 = arith.addf %435, %436 : vector<16x1xf32>
    %438 = vector.broadcast %437 : vector<16x1xf32> to vector<16x16xf32>
    %439 = arith.divf %434, %438 : vector<16x16xf32>
    %cst_165 = arith.constant dense<0.000000e+00> : vector<16x16xf32>
    %440 = tpu.matmul %439, %439, %cst_165 {dimension_numbers = #tpu.dot_dimension_numbers<[1], [1], [0], [0], [0, 0, 1, 0], [], []>} : vector<16x16xf32>, vector<16x16xf32>, vector<16x16xf32> -> vector<16x16xf32>
    %441 = arith.mulf %439, %439 : vector<16x16xf32>
    %cst_166 = arith.constant dense<0.000000e+00> : vector<16xf32>
    %442 = vector.multi_reduction <add>, %441, %cst_166 [1] : vector<16x16xf32> to vector<16xf32>
    %443 = vector.shape_cast %442 : vector<16xf32> to vector<16x1xf32>
    %cst_167 = arith.constant 1.000000e+00 : f32
    %444 = vector.broadcast %cst_167 : f32 to vector<1x16xf32>
    %cst_168 = arith.constant dense<0.000000e+00> : vector<1x16xf32>
    %445 = tpu.matmul %444, %441, %cst_168 {dimension_numbers = #tpu.dot_dimension_numbers<[1], [1], [0], [0], [0, 0, 1, 0], [], []>} : vector<1x16xf32>, vector<16x16xf32>, vector<1x16xf32> -> vector<1x16xf32>
    %cst_169 = arith.constant dense<0.000000e+00> : vector<1xf32>
    %446 = vector.multi_reduction <add>, %443, %cst_169 [0] : vector<16x1xf32> to vector<1xf32>
    %447 = vector.shape_cast %446 : vector<1xf32> to vector<1x1xf32>
    %cst_170 = arith.constant 1.600000e+01 : f32
    %448 = vector.broadcast %cst_170 : f32 to vector<1x1xf32>
    %449 = arith.divf %447, %448 : vector<1x1xf32>
    %cst_171 = arith.constant 9.99999996E-13 : f32
    %450 = vector.broadcast %cst_171 : f32 to vector<1x1xf32>
    %451 = arith.addf %449, %450 : vector<1x1xf32>
    %452 = vector.broadcast %443 : vector<16x1xf32> to vector<16x16xf32>
    %453 = vector.broadcast %445 : vector<1x16xf32> to vector<16x16xf32>
    %454 = arith.addf %452, %453 : vector<16x16xf32>
    %cst_172 = arith.constant 2.000000e+00 : f32
    %455 = vector.broadcast %cst_172 : f32 to vector<16x16xf32>
    %456 = arith.mulf %455, %440 : vector<16x16xf32>
    %457 = arith.subf %454, %456 : vector<16x16xf32>
    %458 = vector.broadcast %451 : vector<1x1xf32> to vector<16x16xf32>
    %459 = arith.divf %457, %458 : vector<16x16xf32>
    %cst_173 = arith.constant -5.000000e-01 : f32
    %460 = vector.broadcast %cst_173 : f32 to vector<16x16xf32>
    %461 = arith.mulf %460, %459 : vector<16x16xf32>
    %462 = math.exp %461 : vector<16x16xf32>
    %c0_174 = arith.constant 0 : index
    %c0_175 = arith.constant 0 : index
    %463 = vector.load %arg14[%c0_174, %c0_175] : memref<16x16xf32, #tpu.memory_space<vmem>>, vector<16x16xf32>
    %c0_176 = arith.constant 0 : index
    %c0_177 = arith.constant 0 : index
    %464 = vector.load %arg15[%c0_176, %c0_177] : memref<2x16xf32, #tpu.memory_space<vmem>>, vector<2x16xf32>
    %c0_178 = arith.constant 0 : index
    %c0_179 = arith.constant 0 : index
    %465 = vector.load %arg16[%c0_178, %c0_179] : memref<2x16xf32, #tpu.memory_space<vmem>>, vector<2x16xf32>
    %c0_180 = arith.constant 0 : index
    %c0_181 = arith.constant 0 : index
    %466 = vector.load %arg17[%c0_180, %c0_181] : memref<1x16xf32, #tpu.memory_space<vmem>>, vector<1x16xf32>
    %cst_182 = arith.constant dense<0.000000e+00> : vector<32x16xf32>
    %467 = tpu.matmul %392, %463, %cst_182 {dimension_numbers = #tpu.dot_dimension_numbers<[1], [0], [0], [1], [0, 0, 1, 1], [], []>} : vector<32x16xf32>, vector<16x16xf32>, vector<32x16xf32> -> vector<32x16xf32>
    %cst_183 = arith.constant dense<0.000000e+00> : vector<32x2xf32>
    %468 = tpu.matmul %467, %465, %cst_183 {dimension_numbers = #tpu.dot_dimension_numbers<[1], [1], [0], [0], [0, 0, 1, 0], [], []>} : vector<32x16xf32>, vector<2x16xf32>, vector<32x2xf32> -> vector<32x2xf32>
    %cst_184 = arith.constant dense<0.000000e+00> : vector<2x32xf32>
    %469 = tpu.matmul %464, %467, %cst_184 {dimension_numbers = #tpu.dot_dimension_numbers<[1], [1], [0], [0], [0, 0, 1, 0], [], []>} : vector<2x16xf32>, vector<32x16xf32>, vector<2x32xf32> -> vector<2x32xf32>
    %470 = tpu.iota {dimensions = array<i32: 1>} : vector<32x16xi32>
    %471 = vector.extract_strided_slice %468 {offsets = [0, 0], sizes = [32, 1], strides = [1, 1]} : vector<32x2xf32> to vector<32x1xf32>
    %472 = vector.extract_strided_slice %469 {offsets = [0, 0], sizes = [1, 32], strides = [1, 1]} : vector<2x32xf32> to vector<1x32xf32>
    %473 = vector.broadcast %471 : vector<32x1xf32> to vector<32x32xf32>
    %474 = vector.broadcast %472 : vector<1x32xf32> to vector<32x32xf32>
    %475 = arith.addf %473, %474 : vector<32x32xf32>
    %cst_185 = arith.constant 0.000000e+00 : f32
    %476 = vector.broadcast %cst_185 : f32 to vector<32x32xf32>
    %477 = arith.cmpf ogt, %475, %476 : vector<32x32xf32>
    %cst_186 = arith.constant 2.000000e-01 : f32
    %478 = vector.broadcast %cst_186 : f32 to vector<32x32xf32>
    %479 = arith.mulf %478, %475 : vector<32x32xf32>
    %480 = arith.select %477, %475, %479 : vector<32x32xi1>, vector<32x32xf32>
    %cst_187 = arith.constant -1.000000e+30 : f32
    %481 = vector.broadcast %cst_187 : f32 to vector<32x32xf32>
    %482 = arith.select %2, %480, %481 : vector<32x32xi1>, vector<32x32xf32>
    %cst_188 = arith.constant dense<0xFF800000> : vector<32xf32>
    %483 = vector.multi_reduction <maximumf>, %482, %cst_188 [1] : vector<32x32xf32> to vector<32xf32>
    %484 = vector.shape_cast %483 : vector<32xf32> to vector<32x1xf32>
    %485 = vector.broadcast %484 : vector<32x1xf32> to vector<32x32xf32>
    %486 = arith.subf %482, %485 : vector<32x32xf32>
    %487 = math.exp %486 : vector<32x32xf32>
    %488 = arith.mulf %487, %0 : vector<32x32xf32>
    %cst_189 = arith.constant 0.000000e+00 : f32
    %489 = vector.broadcast %cst_189 : f32 to vector<32x32xf32>
    %490 = arith.select %2, %488, %489 : vector<32x32xi1>, vector<32x32xf32>
    %cst_190 = arith.constant dense<0.000000e+00> : vector<32xf32>
    %491 = vector.multi_reduction <add>, %490, %cst_190 [1] : vector<32x32xf32> to vector<32xf32>
    %492 = vector.shape_cast %491 : vector<32xf32> to vector<32x1xf32>
    %cst_191 = arith.constant 1.000000e-16 : f32
    %493 = vector.broadcast %cst_191 : f32 to vector<32x1xf32>
    %494 = arith.addf %492, %493 : vector<32x1xf32>
    %495 = tpu.reciprocal %494 {approx = true} : vector<32x1xf32> -> vector<32x1xf32>
    %496 = vector.broadcast %495 : vector<32x1xf32> to vector<32x32xf32>
    %497 = arith.mulf %490, %496 : vector<32x32xf32>
    %c0_i32_192 = arith.constant 0 : i32
    %498 = vector.broadcast %c0_i32_192 : i32 to vector<32x16xi32>
    %499 = arith.cmpi sge, %470, %498 : vector<32x16xi32>
    %c8_i32_193 = arith.constant 8 : i32
    %500 = vector.broadcast %c8_i32_193 : i32 to vector<32x16xi32>
    %501 = arith.cmpi slt, %470, %500 : vector<32x16xi32>
    %502 = arith.andi %499, %501 : vector<32x16xi1>
    %cst_194 = arith.constant 0.000000e+00 : f32
    %503 = vector.broadcast %cst_194 : f32 to vector<32x16xf32>
    %504 = arith.select %502, %467, %503 : vector<32x16xi1>, vector<32x16xf32>
    %cst_195 = arith.constant dense<0.000000e+00> : vector<32x16xf32>
    %505 = tpu.matmul %497, %504, %cst_195 {dimension_numbers = #tpu.dot_dimension_numbers<[1], [0], [0], [1], [0, 0, 1, 1], [], []>} : vector<32x32xf32>, vector<32x16xf32>, vector<32x16xf32> -> vector<32x16xf32>
    %506 = vector.extract_strided_slice %468 {offsets = [0, 1], sizes = [32, 1], strides = [1, 1]} : vector<32x2xf32> to vector<32x1xf32>
    %507 = vector.extract_strided_slice %469 {offsets = [1, 0], sizes = [1, 32], strides = [1, 1]} : vector<2x32xf32> to vector<1x32xf32>
    %508 = vector.broadcast %506 : vector<32x1xf32> to vector<32x32xf32>
    %509 = vector.broadcast %507 : vector<1x32xf32> to vector<32x32xf32>
    %510 = arith.addf %508, %509 : vector<32x32xf32>
    %cst_196 = arith.constant 0.000000e+00 : f32
    %511 = vector.broadcast %cst_196 : f32 to vector<32x32xf32>
    %512 = arith.cmpf ogt, %510, %511 : vector<32x32xf32>
    %cst_197 = arith.constant 2.000000e-01 : f32
    %513 = vector.broadcast %cst_197 : f32 to vector<32x32xf32>
    %514 = arith.mulf %513, %510 : vector<32x32xf32>
    %515 = arith.select %512, %510, %514 : vector<32x32xi1>, vector<32x32xf32>
    %cst_198 = arith.constant -1.000000e+30 : f32
    %516 = vector.broadcast %cst_198 : f32 to vector<32x32xf32>
    %517 = arith.select %2, %515, %516 : vector<32x32xi1>, vector<32x32xf32>
    %cst_199 = arith.constant dense<0xFF800000> : vector<32xf32>
    %518 = vector.multi_reduction <maximumf>, %517, %cst_199 [1] : vector<32x32xf32> to vector<32xf32>
    %519 = vector.shape_cast %518 : vector<32xf32> to vector<32x1xf32>
    %520 = vector.broadcast %519 : vector<32x1xf32> to vector<32x32xf32>
    %521 = arith.subf %517, %520 : vector<32x32xf32>
    %522 = math.exp %521 : vector<32x32xf32>
    %523 = arith.mulf %522, %0 : vector<32x32xf32>
    %cst_200 = arith.constant 0.000000e+00 : f32
    %524 = vector.broadcast %cst_200 : f32 to vector<32x32xf32>
    %525 = arith.select %2, %523, %524 : vector<32x32xi1>, vector<32x32xf32>
    %cst_201 = arith.constant dense<0.000000e+00> : vector<32xf32>
    %526 = vector.multi_reduction <add>, %525, %cst_201 [1] : vector<32x32xf32> to vector<32xf32>
    %527 = vector.shape_cast %526 : vector<32xf32> to vector<32x1xf32>
    %cst_202 = arith.constant 1.000000e-16 : f32
    %528 = vector.broadcast %cst_202 : f32 to vector<32x1xf32>
    %529 = arith.addf %527, %528 : vector<32x1xf32>
    %530 = tpu.reciprocal %529 {approx = true} : vector<32x1xf32> -> vector<32x1xf32>
    %531 = vector.broadcast %530 : vector<32x1xf32> to vector<32x32xf32>
    %532 = arith.mulf %525, %531 : vector<32x32xf32>
    %c8_i32_203 = arith.constant 8 : i32
    %533 = vector.broadcast %c8_i32_203 : i32 to vector<32x16xi32>
    %534 = arith.cmpi sge, %470, %533 : vector<32x16xi32>
    %c16_i32_204 = arith.constant 16 : i32
    %535 = vector.broadcast %c16_i32_204 : i32 to vector<32x16xi32>
    %536 = arith.cmpi slt, %470, %535 : vector<32x16xi32>
    %537 = arith.andi %534, %536 : vector<32x16xi1>
    %cst_205 = arith.constant 0.000000e+00 : f32
    %538 = vector.broadcast %cst_205 : f32 to vector<32x16xf32>
    %539 = arith.select %537, %467, %538 : vector<32x16xi1>, vector<32x16xf32>
    %cst_206 = arith.constant dense<0.000000e+00> : vector<32x16xf32>
    %540 = tpu.matmul %532, %539, %cst_206 {dimension_numbers = #tpu.dot_dimension_numbers<[1], [0], [0], [1], [0, 0, 1, 1], [], []>} : vector<32x32xf32>, vector<32x16xf32>, vector<32x16xf32> -> vector<32x16xf32>
    %541 = arith.addf %505, %540 : vector<32x16xf32>
    %542 = vector.broadcast %466 : vector<1x16xf32> to vector<32x16xf32>
    %543 = arith.addf %541, %542 : vector<32x16xf32>
    %cst_207 = arith.constant 0.000000e+00 : f32
    %544 = vector.broadcast %cst_207 : f32 to vector<32x16xf32>
    %545 = arith.maximumf %543, %544 : vector<32x16xf32>
    %546 = vector.extract_strided_slice %545 {offsets = [0, 0], sizes = [16, 16], strides = [1, 1]} : vector<32x16xf32> to vector<16x16xf32>
    %cst_208 = arith.constant dense<0x7F800000> : vector<16xf32>
    %547 = vector.multi_reduction <minimumf>, %546, %cst_208 [1] : vector<16x16xf32> to vector<16xf32>
    %548 = vector.shape_cast %547 : vector<16xf32> to vector<16x1xf32>
    %cst_209 = arith.constant dense<0xFF800000> : vector<16xf32>
    %549 = vector.multi_reduction <maximumf>, %546, %cst_209 [1] : vector<16x16xf32> to vector<16xf32>
    %550 = vector.shape_cast %549 : vector<16xf32> to vector<16x1xf32>
    %551 = vector.broadcast %548 : vector<16x1xf32> to vector<16x16xf32>
    %552 = arith.subf %546, %551 : vector<16x16xf32>
    %553 = arith.subf %550, %548 : vector<16x1xf32>
    %cst_210 = arith.constant 9.99999996E-13 : f32
    %554 = vector.broadcast %cst_210 : f32 to vector<16x1xf32>
    %555 = arith.addf %553, %554 : vector<16x1xf32>
    %556 = vector.broadcast %555 : vector<16x1xf32> to vector<16x16xf32>
    %557 = arith.divf %552, %556 : vector<16x16xf32>
    %cst_211 = arith.constant dense<0.000000e+00> : vector<16x16xf32>
    %558 = tpu.matmul %557, %557, %cst_211 {dimension_numbers = #tpu.dot_dimension_numbers<[1], [1], [0], [0], [0, 0, 1, 0], [], []>} : vector<16x16xf32>, vector<16x16xf32>, vector<16x16xf32> -> vector<16x16xf32>
    %559 = arith.mulf %557, %557 : vector<16x16xf32>
    %cst_212 = arith.constant dense<0.000000e+00> : vector<16xf32>
    %560 = vector.multi_reduction <add>, %559, %cst_212 [1] : vector<16x16xf32> to vector<16xf32>
    %561 = vector.shape_cast %560 : vector<16xf32> to vector<16x1xf32>
    %cst_213 = arith.constant 1.000000e+00 : f32
    %562 = vector.broadcast %cst_213 : f32 to vector<1x16xf32>
    %cst_214 = arith.constant dense<0.000000e+00> : vector<1x16xf32>
    %563 = tpu.matmul %562, %559, %cst_214 {dimension_numbers = #tpu.dot_dimension_numbers<[1], [1], [0], [0], [0, 0, 1, 0], [], []>} : vector<1x16xf32>, vector<16x16xf32>, vector<1x16xf32> -> vector<1x16xf32>
    %cst_215 = arith.constant dense<0.000000e+00> : vector<1xf32>
    %564 = vector.multi_reduction <add>, %561, %cst_215 [0] : vector<16x1xf32> to vector<1xf32>
    %565 = vector.shape_cast %564 : vector<1xf32> to vector<1x1xf32>
    %cst_216 = arith.constant 1.600000e+01 : f32
    %566 = vector.broadcast %cst_216 : f32 to vector<1x1xf32>
    %567 = arith.divf %565, %566 : vector<1x1xf32>
    %cst_217 = arith.constant 9.99999996E-13 : f32
    %568 = vector.broadcast %cst_217 : f32 to vector<1x1xf32>
    %569 = arith.addf %567, %568 : vector<1x1xf32>
    %570 = vector.broadcast %561 : vector<16x1xf32> to vector<16x16xf32>
    %571 = vector.broadcast %563 : vector<1x16xf32> to vector<16x16xf32>
    %572 = arith.addf %570, %571 : vector<16x16xf32>
    %cst_218 = arith.constant 2.000000e+00 : f32
    %573 = vector.broadcast %cst_218 : f32 to vector<16x16xf32>
    %574 = arith.mulf %573, %558 : vector<16x16xf32>
    %575 = arith.subf %572, %574 : vector<16x16xf32>
    %576 = vector.broadcast %569 : vector<1x1xf32> to vector<16x16xf32>
    %577 = arith.divf %575, %576 : vector<16x16xf32>
    %cst_219 = arith.constant -5.000000e-01 : f32
    %578 = vector.broadcast %cst_219 : f32 to vector<16x16xf32>
    %579 = arith.mulf %578, %577 : vector<16x16xf32>
    %580 = math.exp %579 : vector<16x16xf32>
    %581 = vector.extract_strided_slice %545 {offsets = [16, 0], sizes = [16, 16], strides = [1, 1]} : vector<32x16xf32> to vector<16x16xf32>
    %cst_220 = arith.constant dense<0x7F800000> : vector<16xf32>
    %582 = vector.multi_reduction <minimumf>, %581, %cst_220 [1] : vector<16x16xf32> to vector<16xf32>
    %583 = vector.shape_cast %582 : vector<16xf32> to vector<16x1xf32>
    %cst_221 = arith.constant dense<0xFF800000> : vector<16xf32>
    %584 = vector.multi_reduction <maximumf>, %581, %cst_221 [1] : vector<16x16xf32> to vector<16xf32>
    %585 = vector.shape_cast %584 : vector<16xf32> to vector<16x1xf32>
    %586 = vector.broadcast %583 : vector<16x1xf32> to vector<16x16xf32>
    %587 = arith.subf %581, %586 : vector<16x16xf32>
    %588 = arith.subf %585, %583 : vector<16x1xf32>
    %cst_222 = arith.constant 9.99999996E-13 : f32
    %589 = vector.broadcast %cst_222 : f32 to vector<16x1xf32>
    %590 = arith.addf %588, %589 : vector<16x1xf32>
    %591 = vector.broadcast %590 : vector<16x1xf32> to vector<16x16xf32>
    %592 = arith.divf %587, %591 : vector<16x16xf32>
    %cst_223 = arith.constant dense<0.000000e+00> : vector<16x16xf32>
    %593 = tpu.matmul %592, %592, %cst_223 {dimension_numbers = #tpu.dot_dimension_numbers<[1], [1], [0], [0], [0, 0, 1, 0], [], []>} : vector<16x16xf32>, vector<16x16xf32>, vector<16x16xf32> -> vector<16x16xf32>
    %594 = arith.mulf %592, %592 : vector<16x16xf32>
    %cst_224 = arith.constant dense<0.000000e+00> : vector<16xf32>
    %595 = vector.multi_reduction <add>, %594, %cst_224 [1] : vector<16x16xf32> to vector<16xf32>
    %596 = vector.shape_cast %595 : vector<16xf32> to vector<16x1xf32>
    %cst_225 = arith.constant 1.000000e+00 : f32
    %597 = vector.broadcast %cst_225 : f32 to vector<1x16xf32>
    %cst_226 = arith.constant dense<0.000000e+00> : vector<1x16xf32>
    %598 = tpu.matmul %597, %594, %cst_226 {dimension_numbers = #tpu.dot_dimension_numbers<[1], [1], [0], [0], [0, 0, 1, 0], [], []>} : vector<1x16xf32>, vector<16x16xf32>, vector<1x16xf32> -> vector<1x16xf32>
    %cst_227 = arith.constant dense<0.000000e+00> : vector<1xf32>
    %599 = vector.multi_reduction <add>, %596, %cst_227 [0] : vector<16x1xf32> to vector<1xf32>
    %600 = vector.shape_cast %599 : vector<1xf32> to vector<1x1xf32>
    %cst_228 = arith.constant 1.600000e+01 : f32
    %601 = vector.broadcast %cst_228 : f32 to vector<1x1xf32>
    %602 = arith.divf %600, %601 : vector<1x1xf32>
    %cst_229 = arith.constant 9.99999996E-13 : f32
    %603 = vector.broadcast %cst_229 : f32 to vector<1x1xf32>
    %604 = arith.addf %602, %603 : vector<1x1xf32>
    %605 = vector.broadcast %596 : vector<16x1xf32> to vector<16x16xf32>
    %606 = vector.broadcast %598 : vector<1x16xf32> to vector<16x16xf32>
    %607 = arith.addf %605, %606 : vector<16x16xf32>
    %cst_230 = arith.constant 2.000000e+00 : f32
    %608 = vector.broadcast %cst_230 : f32 to vector<16x16xf32>
    %609 = arith.mulf %608, %593 : vector<16x16xf32>
    %610 = arith.subf %607, %609 : vector<16x16xf32>
    %611 = vector.broadcast %604 : vector<1x1xf32> to vector<16x16xf32>
    %612 = arith.divf %610, %611 : vector<16x16xf32>
    %cst_231 = arith.constant -5.000000e-01 : f32
    %613 = vector.broadcast %cst_231 : f32 to vector<16x16xf32>
    %614 = arith.mulf %613, %612 : vector<16x16xf32>
    %615 = math.exp %614 : vector<16x16xf32>
    %c0_232 = arith.constant 0 : index
    %c0_233 = arith.constant 0 : index
    %616 = vector.load %arg18[%c0_232, %c0_233] : memref<16x16xf32, #tpu.memory_space<vmem>>, vector<16x16xf32>
    %c0_234 = arith.constant 0 : index
    %c0_235 = arith.constant 0 : index
    %617 = vector.load %arg19[%c0_234, %c0_235] : memref<16x16xf32, #tpu.memory_space<vmem>>, vector<16x16xf32>
    %c0_236 = arith.constant 0 : index
    %618 = memref.load %arg22[%c0_236] : memref<5xf32, #tpu.memory_space<smem>>
    %619 = vector.broadcast %618 : f32 to vector<16x16xf32>
    %620 = arith.mulf %619, %121 : vector<16x16xf32>
    %c1 = arith.constant 1 : index
    %621 = memref.load %arg22[%c1] : memref<5xf32, #tpu.memory_space<smem>>
    %622 = vector.broadcast %621 : f32 to vector<16x16xf32>
    %623 = arith.mulf %622, %274 : vector<16x16xf32>
    %624 = arith.addf %620, %623 : vector<16x16xf32>
    %c2 = arith.constant 2 : index
    %625 = memref.load %arg22[%c2] : memref<5xf32, #tpu.memory_space<smem>>
    %626 = vector.broadcast %625 : f32 to vector<16x16xf32>
    %627 = arith.mulf %626, %427 : vector<16x16xf32>
    %628 = arith.addf %624, %627 : vector<16x16xf32>
    %c3 = arith.constant 3 : index
    %629 = memref.load %arg22[%c3] : memref<5xf32, #tpu.memory_space<smem>>
    %630 = vector.broadcast %629 : f32 to vector<16x16xf32>
    %631 = arith.mulf %630, %580 : vector<16x16xf32>
    %632 = arith.addf %628, %631 : vector<16x16xf32>
    %c4 = arith.constant 4 : index
    %633 = memref.load %arg22[%c4] : memref<5xf32, #tpu.memory_space<smem>>
    %634 = vector.broadcast %633 : f32 to vector<16x16xf32>
    %635 = arith.mulf %634, %616 : vector<16x16xf32>
    %636 = arith.addf %632, %635 : vector<16x16xf32>
    %637 = math.absf %636 : vector<16x16xf32>
    %cst_237 = arith.constant 0.000000e+00 : f32
    %638 = vector.broadcast %cst_237 : f32 to vector<16x16xf32>
    %639 = arith.cmpf ogt, %637, %638 : vector<16x16xf32>
    %cst_238 = arith.constant 1.000000e+30 : f32
    %640 = vector.broadcast %cst_238 : f32 to vector<16x16xf32>
    %641 = arith.select %639, %637, %640 : vector<16x16xi1>, vector<16x16xf32>
    %cst_239 = arith.constant dense<0x7F800000> : vector<16xf32>
    %642 = vector.multi_reduction <minimumf>, %641, %cst_239 [1] : vector<16x16xf32> to vector<16xf32>
    %643 = vector.shape_cast %642 : vector<16xf32> to vector<16x1xf32>
    %cst_240 = arith.constant dense<0x7F800000> : vector<1xf32>
    %644 = vector.multi_reduction <minimumf>, %643, %cst_240 [0] : vector<16x1xf32> to vector<1xf32>
    %645 = vector.shape_cast %644 : vector<1xf32> to vector<1x1xf32>
    %cst_241 = arith.constant 0.000000e+00 : f32
    %646 = vector.broadcast %cst_241 : f32 to vector<16x16xf32>
    %647 = arith.cmpf oeq, %637, %646 : vector<16x16xf32>
    %648 = vector.shape_cast %645 : vector<1x1xf32> to vector<1x1xf32>
    %649 = vector.broadcast %648 : vector<1x1xf32> to vector<16x16xf32>
    %650 = arith.select %647, %649, %637 : vector<16x16xi1>, vector<16x16xf32>
    %651 = tpu.iota {dimensions = array<i32: 0>} : vector<16x16xi32>
    %652 = tpu.iota {dimensions = array<i32: 1>} : vector<16x16xi32>
    %653 = arith.cmpi eq, %651, %652 : vector<16x16xi32>
    %654 = arith.extui %653 : vector<16x16xi1> to vector<16x16xi32>
    %655 = arith.sitofp %654 : vector<16x16xi32> to vector<16x16xf32>
    %656 = arith.mulf %650, %655 : vector<16x16xf32>
    %cst_242 = arith.constant dense<0.000000e+00> : vector<16xf32>
    %657 = vector.multi_reduction <add>, %656, %cst_242 [1] : vector<16x16xf32> to vector<16xf32>
    %658 = vector.shape_cast %657 : vector<16xf32> to vector<16x1xf32>
    %659 = math.sqrt %658 : vector<16x1xf32>
    %cst_243 = arith.constant 1.000000e+00 : f32
    %660 = vector.broadcast %cst_243 : f32 to vector<1x16xf32>
    %cst_244 = arith.constant dense<0.000000e+00> : vector<1x16xf32>
    %661 = tpu.matmul %660, %656, %cst_244 {dimension_numbers = #tpu.dot_dimension_numbers<[1], [0], [0], [1], [0, 0, 1, 1], [], []>} : vector<1x16xf32>, vector<16x16xf32>, vector<1x16xf32> -> vector<1x16xf32>
    %662 = math.sqrt %661 : vector<1x16xf32>
    %663 = vector.broadcast %659 : vector<16x1xf32> to vector<16x16xf32>
    %664 = vector.broadcast %662 : vector<1x16xf32> to vector<16x16xf32>
    %665 = arith.mulf %663, %664 : vector<16x16xf32>
    %666 = arith.divf %650, %665 : vector<16x16xf32>
    %c0_245 = arith.constant 0 : index
    %667 = memref.load %arg23[%c0_245] : memref<5xf32, #tpu.memory_space<smem>>
    %668 = vector.broadcast %667 : f32 to vector<16x16xf32>
    %669 = arith.mulf %668, %156 : vector<16x16xf32>
    %c1_246 = arith.constant 1 : index
    %670 = memref.load %arg23[%c1_246] : memref<5xf32, #tpu.memory_space<smem>>
    %671 = vector.broadcast %670 : f32 to vector<16x16xf32>
    %672 = arith.mulf %671, %309 : vector<16x16xf32>
    %673 = arith.addf %669, %672 : vector<16x16xf32>
    %c2_247 = arith.constant 2 : index
    %674 = memref.load %arg23[%c2_247] : memref<5xf32, #tpu.memory_space<smem>>
    %675 = vector.broadcast %674 : f32 to vector<16x16xf32>
    %676 = arith.mulf %675, %462 : vector<16x16xf32>
    %677 = arith.addf %673, %676 : vector<16x16xf32>
    %c3_248 = arith.constant 3 : index
    %678 = memref.load %arg23[%c3_248] : memref<5xf32, #tpu.memory_space<smem>>
    %679 = vector.broadcast %678 : f32 to vector<16x16xf32>
    %680 = arith.mulf %679, %615 : vector<16x16xf32>
    %681 = arith.addf %677, %680 : vector<16x16xf32>
    %c4_249 = arith.constant 4 : index
    %682 = memref.load %arg23[%c4_249] : memref<5xf32, #tpu.memory_space<smem>>
    %683 = vector.broadcast %682 : f32 to vector<16x16xf32>
    %684 = arith.mulf %683, %617 : vector<16x16xf32>
    %685 = arith.addf %681, %684 : vector<16x16xf32>
    %686 = math.absf %685 : vector<16x16xf32>
    %cst_250 = arith.constant 0.000000e+00 : f32
    %687 = vector.broadcast %cst_250 : f32 to vector<16x16xf32>
    %688 = arith.cmpf ogt, %686, %687 : vector<16x16xf32>
    %cst_251 = arith.constant 1.000000e+30 : f32
    %689 = vector.broadcast %cst_251 : f32 to vector<16x16xf32>
    %690 = arith.select %688, %686, %689 : vector<16x16xi1>, vector<16x16xf32>
    %cst_252 = arith.constant dense<0x7F800000> : vector<16xf32>
    %691 = vector.multi_reduction <minimumf>, %690, %cst_252 [1] : vector<16x16xf32> to vector<16xf32>
    %692 = vector.shape_cast %691 : vector<16xf32> to vector<16x1xf32>
    %cst_253 = arith.constant dense<0x7F800000> : vector<1xf32>
    %693 = vector.multi_reduction <minimumf>, %692, %cst_253 [0] : vector<16x1xf32> to vector<1xf32>
    %694 = vector.shape_cast %693 : vector<1xf32> to vector<1x1xf32>
    %cst_254 = arith.constant 0.000000e+00 : f32
    %695 = vector.broadcast %cst_254 : f32 to vector<16x16xf32>
    %696 = arith.cmpf oeq, %686, %695 : vector<16x16xf32>
    %697 = vector.shape_cast %694 : vector<1x1xf32> to vector<1x1xf32>
    %698 = vector.broadcast %697 : vector<1x1xf32> to vector<16x16xf32>
    %699 = arith.select %696, %698, %686 : vector<16x16xi1>, vector<16x16xf32>
    %700 = tpu.iota {dimensions = array<i32: 0>} : vector<16x16xi32>
    %701 = tpu.iota {dimensions = array<i32: 1>} : vector<16x16xi32>
    %702 = arith.cmpi eq, %700, %701 : vector<16x16xi32>
    %703 = arith.extui %702 : vector<16x16xi1> to vector<16x16xi32>
    %704 = arith.sitofp %703 : vector<16x16xi32> to vector<16x16xf32>
    %705 = arith.mulf %699, %704 : vector<16x16xf32>
    %cst_255 = arith.constant dense<0.000000e+00> : vector<16xf32>
    %706 = vector.multi_reduction <add>, %705, %cst_255 [1] : vector<16x16xf32> to vector<16xf32>
    %707 = vector.shape_cast %706 : vector<16xf32> to vector<16x1xf32>
    %708 = math.sqrt %707 : vector<16x1xf32>
    %cst_256 = arith.constant 1.000000e+00 : f32
    %709 = vector.broadcast %cst_256 : f32 to vector<1x16xf32>
    %cst_257 = arith.constant dense<0.000000e+00> : vector<1x16xf32>
    %710 = tpu.matmul %709, %705, %cst_257 {dimension_numbers = #tpu.dot_dimension_numbers<[1], [0], [0], [1], [0, 0, 1, 1], [], []>} : vector<1x16xf32>, vector<16x16xf32>, vector<1x16xf32> -> vector<1x16xf32>
    %711 = math.sqrt %710 : vector<1x16xf32>
    %712 = vector.broadcast %708 : vector<16x1xf32> to vector<16x16xf32>
    %713 = vector.broadcast %711 : vector<1x16xf32> to vector<16x16xf32>
    %714 = arith.mulf %712, %713 : vector<16x16xf32>
    %715 = arith.divf %699, %714 : vector<16x16xf32>
    %c0_258 = arith.constant 0 : index
    %c0_259 = arith.constant 0 : index
    %716 = vector.load %arg20[%c0_258, %c0_259] : memref<16x16xf32, #tpu.memory_space<vmem>>, vector<16x16xf32>
    %cst_260 = arith.constant dense<0.000000e+00> : vector<16x16xf32>
    %717 = tpu.matmul %666, %716, %cst_260 {dimension_numbers = #tpu.dot_dimension_numbers<[1], [0], [0], [1], [0, 0, 1, 1], [], []>} : vector<16x16xf32>, vector<16x16xf32>, vector<16x16xf32> -> vector<16x16xf32>
    %c0_261 = arith.constant 0 : index
    %c0_262 = arith.constant 0 : index
    %718 = vector.load %arg21[%c0_261, %c0_262] : memref<16x16xf32, #tpu.memory_space<vmem>>, vector<16x16xf32>
    %cst_263 = arith.constant dense<0.000000e+00> : vector<16x16xf32>
    %719 = tpu.matmul %715, %718, %cst_263 {dimension_numbers = #tpu.dot_dimension_numbers<[1], [0], [0], [1], [0, 0, 1, 1], [], []>} : vector<16x16xf32>, vector<16x16xf32>, vector<16x16xf32> -> vector<16x16xf32>
    %720 = tpu.transpose %719, [1, 0] : vector<16x16xf32> -> vector<16x16xf32>
    %721 = arith.addf %717, %720 : vector<16x16xf32>
    %cst_264 = arith.constant 5.000000e-01 : f32
    %722 = vector.broadcast %cst_264 : f32 to vector<16x16xf32>
    %723 = arith.mulf %722, %721 : vector<16x16xf32>
    %c0_265 = arith.constant 0 : index
    %c0_266 = arith.constant 0 : index
    %724 = vector.load %arg24[%c0_265, %c0_266] : memref<16x16xf32, #tpu.memory_space<vmem>>, vector<16x16xf32>
    tpu.vector_store %arg24[%c0_265, %c0_266], %723 {strides = array<i32>} : memref<16x16xf32, #tpu.memory_space<vmem>>, vector<16x16xf32>,
    return
  }
}

</mosaic_0001>

<bundles_post_ra>
// kernel: _lambda_.1
= control target key start
LH: loop header
LB: loop body
LE: loop exit
PB: predicated region body
PF: predicated region fallthrough
CT: control target
= control target key end

     0   :  { %s8178_s0 = inlined_call_operand.vmem [shape: f32[32,32], index: 0, kind: input, shape index: {}]   ;;  %s8179_s1 = inlined_call_operand.vmem [shape: f32[32,32], index: 1, kind: input, shape index: {}]   ;;  %s8180_s2 = inlined_call_operand.vmem [shape: f32[32,16], index: 2, kind: input, shape index: {}]   ;;  %s8181_s3 = inlined_call_operand.hbm [shape: f32[2,16], index: 3, kind: input, shape index: {}]   ;;  %s8182_s4 = inlined_call_operand.hbm [shape: f32[2,16], index: 4, kind: input, shape index: {}]   ;;  %s8183_s5 = inlined_call_operand.vmem [shape: f32[1,16], index: 5, kind: input, shape index: {}]   ;;  %s8184_s6 = inlined_call_operand.vmem [shape: f32[16,16], index: 6, kind: input, shape index: {}]   ;;  %s8185_s7 = inlined_call_operand.hbm [shape: f32[2,16], index: 7, kind: input, shape index: {}]   ;;  %s8186_s8 = inlined_call_operand.hbm [shape: f32[2,16], index: 8, kind: input, shape index: {}]   ;;  %s8187_s9 = inlined_call_operand.vmem [shape: f32[1,16], index: 9, kind: input, shape index: {}]   ;;  %s8188_s10 = inlined_call_operand.vmem [shape: f32[16,16], index: 10, kind: input, shape index: {}]   ;;  %s8189_s11 = inlined_call_operand.hbm [shape: f32[2,16], index: 11, kind: input, shape index: {}]   ;;  %s8190_s12 = inlined_call_operand.hbm [shape: f32[2,16], index: 12, kind: input, shape index: {}]   ;;  %s8191_s13 = inlined_call_operand.vmem [shape: f32[1,16], index: 13, kind: input, shape index: {}]   ;;  %s8192_s14 = inlined_call_operand.vmem [shape: f32[16,16], index: 14, kind: input, shape index: {}]   ;;  %s8193_s15 = inlined_call_operand.hbm [shape: f32[2,16], index: 15, kind: input, shape index: {}]   ;;  %s8194_s16 = inlined_call_operand.hbm [shape: f32[2,16], index: 16, kind: input, shape index: {}]   ;;  %s8195_s17 = inlined_call_operand.vmem [shape: f32[1,16], index: 17, kind: input, shape index: {}]   ;;  %s8196_s18 = inlined_call_operand.vmem [shape: f32[16,16], index: 18, kind: input, shape index: {}]   ;;  %s8197_s19 = inlined_call_operand.vmem [shape: f32[16,16], index: 19, kind: input, shape index: {}]   ;;  %s8198_s20 = inlined_call_operand.vmem [shape: f32[16,16], index: 20, kind: input, shape index: {}]   ;;  %s8199_s21 = inlined_call_operand.vmem [shape: f32[16,16], index: 21, kind: input, shape index: {}]   ;;  %s8200_s22 = inlined_call_operand.vmem [shape: f32[5], index: 22, kind: input, shape index: {}]   ;;  %s8201_s23 = inlined_call_operand.vmem [shape: f32[5], index: 23, kind: input, shape index: {}]   ;;  %s8202_s24 = inlined_call_operand.hbm [shape: f32[16,16], index: 24, kind: output, shape index: {}]  }
   0x1   :  { %8222 = sst [smem:[#allocation34_spill]] %s8178_s0 }
   0x2   :  { %8223 = sst [smem:[#allocation35_spill]] %s8179_s1 }
   0x3   :  { %8224 = sst [smem:[#allocation36_spill]] %s8180_s2 }
   0x4   :  { %8225 = sst [smem:[#allocation37_spill]] %s8181_s3 }
   0x5   :  { %8226 = sst [smem:[#allocation38_spill]] %s8182_s4 }
   0x6   :  { %8227 = sst [smem:[#allocation39_spill]] %s8183_s5 }
   0x7   :  { %8228 = sst [smem:[#allocation40_spill]] %s8184_s6 }
   0x8   :  { %8229 = sst [smem:[#allocation41_spill]] %s8185_s7 }
   0x9   :  { %8230 = sst [smem:[#allocation42_spill]] %s8186_s8 }
   0xa   :  { %29 = vsyncpa [#allocation3], 0 }
   0xb   :  { %30 = vsyncpa [#allocation7], 0 }
   0xc   :  { %31 = vsyncpa [#allocation10], 0 }
   0xd   :  { %32 = vsyncpa [#allocation13], 0 }
   0xe   :  { %33 = vsyncpa [#allocation16], 0 }
   0xf   :  { %34 = vsyncpa [#allocation5], 0 }
  0x10   :  { %35 = vsyncpa [#allocation19], 0 }
  0x11   :  { %36 = vsyncpa [#allocation4], 0  ;;  %s6778_s5 = smov [#allocation6]   ;;  %s6779_s27 = smov [#allocation9]  }
  0x12   :  { %s59_s26 = sshll.u32 %s6778_s5, 4  ;;  %s83_s28 = sshll.u32 %s6779_s27, 4  ;;  %s60_s26 = int_to_ptr.vmem [resolvable:$true] %s59_s26  ;;  %s84_s28 = int_to_ptr.vmem [resolvable:$true] %s83_s28 }
  0x13   :  { %s8231_s29 = sld [smem:[#allocation38_spill]] }
  0x19   :  { %s6540_s0 = scalar_lea.hbm %s8231_s29, 32 }
  0x1a   :  { %p6541_p0 = scmp.ne.s32.totalorder %s8231_s29, %s6540_s0  ;;  %p6544_p1 = scmp.lt.u32.totalorder %s6540_s0, %s8231_s29 }
  0x1c   :  { %p6546_p2 = pnand %p6544_p1, %p6541_p0 }
  0x1e   :  { %6549 = shalt.err (!%p6546_p2)
}
  0x1f   :  { %s6550_s8 = scalar_lea.vmem %s60_s26, 32  ;;  %p6555_p4 = scmp.lt.s32.totalorder %s60_s26, %s60_s26 }
  0x20   :  { %p6551_p3 = scmp.ne.s32.totalorder %s60_s26, %s6550_s8  ;;  %p6556_p5 = scmp.lt.s32.totalorder %s6550_s8, %s6550_s8 }
  0x22   :  { %p6557_p6 = por %p6556_p5, %p6555_p4 }
  0x24   :  { %p6558_p7 = pnand %p6557_p6, %p6551_p3 }
  0x26   :  { %6561 = shalt.err (!%p6558_p7)
}
  0x27   :  { %62 = dma.hbm_to_vmem [thread:$0]  %s8231_s29, 32, %s60_s26, [#allocation7]  }
  0x28   :  { %s8232_s6 = sld [smem:[#allocation42_spill]] }
  0x2e   :  { %s6562_s2 = scalar_lea.hbm %s8232_s6, 32 }
  0x2f   :  { %p6563_p8 = scmp.ne.s32.totalorder %s8232_s6, %s6562_s2  ;;  %p6566_p9 = scmp.lt.u32.totalorder %s6562_s2, %s8232_s6 }
  0x31   :  { %p6568_p10 = pnand %p6566_p9, %p6563_p8 }
  0x33   :  { %6571 = shalt.err (!%p6568_p10)
}
  0x34   :  { %s6572_s25 = scalar_lea.vmem %s84_s28, 32  ;;  %p6577_p12 = scmp.lt.s32.totalorder %s84_s28, %s84_s28 }
  0x35   :  { %p6573_p11 = scmp.ne.s32.totalorder %s84_s28, %s6572_s25  ;;  %p6578_p13 = scmp.lt.s32.totalorder %s6572_s25, %s6572_s25 }
  0x37   :  { %p6579_p0 = por %p6578_p13, %p6577_p12 }
  0x39   :  { %p6580_p1 = pnand %p6579_p0, %p6573_p11 }
  0x3b   :  { %6583 = shalt.err (!%p6580_p1)
}
  0x3c   :  { %86 = dma.hbm_to_vmem [thread:$0]  %s8232_s6, 32, %s84_s28, [#allocation10]  }
  0x3d   :  { %s6780_s8 = smov [#allocation12]   ;;  %s6781_s1 = smov [#allocation2]  }
  0x3e   :  { %s107_s4 = sshll.u32 %s6780_s8, 4  ;;  %s49_s5 = sshll.u32 %s6781_s1, 4  ;;  %s108_s4 = int_to_ptr.vmem [resolvable:$true] %s107_s4  ;;  %s50_s5 = int_to_ptr.vmem [resolvable:$true] %s49_s5 }
  0x3f   :  { %s6584_s7 = scalar_lea.hbm %s8190_s12, 32 }
  0x40   :  { %p6585_p2 = scmp.ne.s32.totalorder %s8190_s12, %s6584_s7  ;;  %p6588_p3 = scmp.lt.u32.totalorder %s6584_s7, %s8190_s12 }
  0x42   :  { %p6590_p4 = pnand %p6588_p3, %p6585_p2 }
  0x44   :  { %6593 = shalt.err (!%p6590_p4)
}
  0x45   :  { %s6594_s28 = scalar_lea.vmem %s108_s4, 32  ;;  %p6599_p6 = scmp.lt.s32.totalorder %s108_s4, %s108_s4 }
  0x46   :  { %p6595_p5 = scmp.ne.s32.totalorder %s108_s4, %s6594_s28  ;;  %p6600_p7 = scmp.lt.s32.totalorder %s6594_s28, %s6594_s28 }
  0x48   :  { %p6601_p8 = por %p6600_p7, %p6599_p6 }
  0x4a   :  { %p6602_p9 = pnand %p6601_p8, %p6595_p5 }
  0x4c   :  { %6605 = shalt.err (!%p6602_p9)
}
  0x4d   :  { %110 = dma.hbm_to_vmem [thread:$0]  %s8190_s12, 32, %s108_s4, [#allocation13]  }
  0x4e   :  { %s8233_s1 = sld [smem:[#allocation37_spill]] }
  0x54   :  { %s6606_s27 = scalar_lea.hbm %s8233_s1, 32 }
  0x55   :  { %p6607_p10 = scmp.ne.s32.totalorder %s8233_s1, %s6606_s27  ;;  %p6610_p11 = scmp.lt.u32.totalorder %s6606_s27, %s8233_s1 }
  0x57   :  { %p6612_p12 = pnand %p6610_p11, %p6607_p10 }
  0x59   :  { %6615 = shalt.err (!%p6612_p12)
}
  0x5a   :  { %s6616_s3 = scalar_lea.vmem %s50_s5, 32  ;;  %p6621_p0 = scmp.lt.s32.totalorder %s50_s5, %s50_s5 }
  0x5b   :  { %p6617_p13 = scmp.ne.s32.totalorder %s50_s5, %s6616_s3  ;;  %p6622_p1 = scmp.lt.s32.totalorder %s6616_s3, %s6616_s3 }
  0x5d   :  { %p6623_p2 = por %p6622_p1, %p6621_p0 }
  0x5f   :  { %p6624_p3 = pnand %p6623_p2, %p6617_p13 }
  0x61   :  { %6627 = shalt.err (!%p6624_p3)
}
  0x62   :  { %52 = dma.hbm_to_vmem [thread:$0]  %s8233_s1, 32, %s50_s5, [#allocation3]  }
  0x63   :  { %s6782_s25 = smov [#allocation8]   ;;  %s6783_s6 = smov [#allocation11]  }
  0x64   :  { %s73_s28 = sshll.u32 %s6782_s25, 4  ;;  %s97_s26 = sshll.u32 %s6783_s6, 4  ;;  %s74_s28 = int_to_ptr.vmem [resolvable:$true] %s73_s28  ;;  %s98_s26 = int_to_ptr.vmem [resolvable:$true] %s97_s26 }
  0x65   :  { %s8234_s27 = sld [smem:[#allocation41_spill]] }
  0x6b   :  { %s6628_s2 = scalar_lea.hbm %s8234_s27, 32 }
  0x6c   :  { %p6629_p4 = scmp.ne.s32.totalorder %s8234_s27, %s6628_s2  ;;  %p6632_p5 = scmp.lt.u32.totalorder %s6628_s2, %s8234_s27 }
  0x6e   :  { %p6634_p6 = pnand %p6632_p5, %p6629_p4 }
  0x70   :  { %6637 = shalt.err (!%p6634_p6)
}
  0x71   :  { %s6638_s5 = scalar_lea.vmem %s74_s28, 32  ;;  %p6643_p8 = scmp.lt.s32.totalorder %s74_s28, %s74_s28 }
  0x72   :  { %p6639_p7 = scmp.ne.s32.totalorder %s74_s28, %s6638_s5  ;;  %p6644_p9 = scmp.lt.s32.totalorder %s6638_s5, %s6638_s5 }
  0x74   :  { %p6645_p10 = por %p6644_p9, %p6643_p8 }
  0x76   :  { %p6646_p11 = pnand %p6645_p10, %p6639_p7 }
  0x78   :  { %6649 = shalt.err (!%p6646_p11)
}
  0x79   :  { %76 = dma.hbm_to_vmem [thread:$0]  %s8234_s27, 32, %s74_s28, [#allocation7]  }
  0x7a   :  { %s6650_s6 = scalar_lea.hbm %s8189_s11, 32 }
  0x7b   :  { %p6651_p12 = scmp.ne.s32.totalorder %s8189_s11, %s6650_s6  ;;  %p6654_p13 = scmp.lt.u32.totalorder %s6650_s6, %s8189_s11 }
  0x7d   :  { %p6656_p0 = pnand %p6654_p13, %p6651_p12 }
  0x7f   :  { %6659 = shalt.err (!%p6656_p0)
}
  0x80   :  { %s6660_s7 = scalar_lea.vmem %s98_s26, 32  ;;  %p6665_p2 = scmp.lt.s32.totalorder %s98_s26, %s98_s26 }
  0x81   :  { %p6661_p1 = scmp.ne.s32.totalorder %s98_s26, %s6660_s7  ;;  %p6666_p3 = scmp.lt.s32.totalorder %s6660_s7, %s6660_s7 }
  0x83   :  { %p6667_p4 = por %p6666_p3, %p6665_p2 }
  0x85   :  { %p6668_p5 = pnand %p6667_p4, %p6661_p1 }
  0x87   :  { %6671 = shalt.err (!%p6668_p5)
}
  0x88   :  { %100 = dma.hbm_to_vmem [thread:$0]  %s8189_s11, 32, %s98_s26, [#allocation10]  }
  0x89   :  { %s6784_s0 = smov [#allocation14]   ;;  %s6785_s5 = smov [#allocation15]  }
  0x8a   :  { %s121_s3 = sshll.u32 %s6784_s0, 4  ;;  %s131_s1 = sshll.u32 %s6785_s5, 4  ;;  %s122_s3 = int_to_ptr.vmem [resolvable:$true] %s121_s3  ;;  %s132_s1 = int_to_ptr.vmem [resolvable:$true] %s131_s1 }
  0x8b   :  { %s6672_s25 = scalar_lea.hbm %s8193_s15, 32 }
  0x8c   :  { %p6673_p6 = scmp.ne.s32.totalorder %s8193_s15, %s6672_s25  ;;  %p6676_p7 = scmp.lt.u32.totalorder %s6672_s25, %s8193_s15 }
  0x8e   :  { %p6678_p8 = pnand %p6676_p7, %p6673_p6 }
  0x90   :  { %6681 = shalt.err (!%p6678_p8)
}
  0x91   :  { %s6682_s11 = scalar_lea.vmem %s122_s3, 32  ;;  %p6687_p10 = scmp.lt.s32.totalorder %s122_s3, %s122_s3 }
  0x92   :  { %p6683_p9 = scmp.ne.s32.totalorder %s122_s3, %s6682_s11  ;;  %p6688_p11 = scmp.lt.s32.totalorder %s6682_s11, %s6682_s11 }
  0x94   :  { %p6689_p12 = por %p6688_p11, %p6687_p10 }
  0x96   :  { %p6690_p13 = pnand %p6689_p12, %p6683_p9 }
  0x98   :  { %6693 = shalt.err (!%p6690_p13)
}
  0x99   :  { %124 = dma.hbm_to_vmem [thread:$0]  %s8193_s15, 32, %s122_s3, [#allocation13]  }
  0x9a   :  { %s6694_s27 = scalar_lea.hbm %s8194_s16, 32 }
  0x9b   :  { %p6695_p0 = scmp.ne.s32.totalorder %s8194_s16, %s6694_s27  ;;  %p6698_p1 = scmp.lt.u32.totalorder %s6694_s27, %s8194_s16 }
  0x9d   :  { %p6700_p2 = pnand %p6698_p1, %p6695_p0 }
  0x9f   :  { %6703 = shalt.err (!%p6700_p2)
}
  0xa0   :  { %s6704_s25 = scalar_lea.vmem %s132_s1, 32  ;;  %p6709_p4 = scmp.lt.s32.totalorder %s132_s1, %s132_s1 }
  0xa1   :  { %p6705_p3 = scmp.ne.s32.totalorder %s132_s1, %s6704_s25  ;;  %p6710_p5 = scmp.lt.s32.totalorder %s6704_s25, %s6704_s25 }
  0xa3   :  { %p6711_p6 = por %p6710_p5, %p6709_p4 }
  0xa5   :  { %p6712_p7 = pnand %p6711_p6, %p6705_p3 }
  0xa7   :  { %6715 = shalt.err (!%p6712_p7)
}
  0xa8   :  { %134 = dma.hbm_to_vmem [thread:$0]  %s8194_s16, 32, %s132_s1, [#allocation16]  }
  0xa9   :  { %s151_s8 = sshll.u32 %s8200_s22, 4  ;;  %s161_s26 = sshll.u32 %s8201_s23, 4  ;;  %s152_s8 = int_to_ptr.vmem [resolvable:$true] %s151_s8  ;;  %s162_s26 = int_to_ptr.vmem [resolvable:$true] %s161_s26 }
  0xaa   :  { %s6716_s30 = scalar_lea.vmem %s152_s8, 16  ;;  %p6721_p9 = scmp.lt.s32.totalorder %s152_s8, %s152_s8 }
  0xab   :  { %p6717_p8 = scmp.ne.s32.totalorder %s152_s8, %s6716_s30  ;;  %p6722_p10 = scmp.lt.s32.totalorder %s6716_s30, %s6716_s30 }
  0xad   :  { %p6723_p11 = por %p6722_p10, %p6721_p9 }
  0xaf   :  { %p6724_p12 = pnand %p6723_p11, %p6717_p8 }
  0xb1   :  { %6727 = shalt.err (!%p6724_p12)
}
  0xb2   :  { %s6786_s7 = smov [#allocation17]   ;;  %s6728_s16 = scalar_lea.vmem %s162_s26, 16 }
  0xb3   :  { %154 = dma.vmem_to_smem %s152_s8, 16, %s6786_s7, [#allocation5]  }
  0xb4   :  { %p6729_p13 = scmp.ne.s32.totalorder %s162_s26, %s6728_s16  ;;  %p6733_p0 = scmp.lt.s32.totalorder %s162_s26, %s162_s26 }
  0xb5   :  { %p6734_p1 = scmp.lt.s32.totalorder %s6728_s16, %s6728_s16 }
  0xb7   :  { %p6735_p2 = por %p6734_p1, %p6733_p0 }
  0xb9   :  { %p6736_p3 = pnand %p6735_p2, %p6729_p13 }
  0xbb   :  { %6739 = shalt.err (!%p6736_p3)
}
  0xbc   :  { %s6787_s22 = smov [#allocation18]  }
  0xbd   :  { %164 = dma.vmem_to_smem %s162_s26, 16, %s6787_s22, [#allocation19]  }
  0xbe   :  { %6762 = dma.done.wait [#allocation3], 32  }
  0xbf   :  { %6763 = vsyncadd [#allocation3], 4294967264 }
  0xc0   :  { %6764 = dma.done.wait [#allocation7], 64  }
  0xc1   :  { %6765 = vsyncadd [#allocation7], 4294967232 }
  0xc2   :  { %6766 = dma.done.wait [#allocation10], 64  }
  0xc3   :  { %6767 = vsyncadd [#allocation10], 4294967232 }
  0xc4   :  { %6768 = dma.done.wait [#allocation13], 64  }
  0xc5   :  { %6769 = vsyncadd [#allocation13], 4294967232 }
  0xc6   :  { %6770 = dma.done.wait [#allocation16], 32  }
  0xc7   :  { %6771 = vsyncadd [#allocation16], 4294967264 }
  0xc8   :  { %6772 = dma.done.wait [#allocation5], 16  }
  0xc9   :  { %6773 = vsyncadd [#allocation5], 4294967280 }
  0xca   :  { %6774 = dma.done.wait [#allocation19], 16  }
  0xcb   :  { %6775 = vsyncadd [#allocation19], 4294967280 }
  0xcc   :  { %195 = sfence }
  0xcd   :  { %s8235_s28 = sld [smem:[#allocation36_spill]]  ;;  %vm215_vm0 = vcmask 261120   ;;  %vm313_vm1 = vcmask 130048   ;;  %s8236_s6 = sld [smem:[#allocation34_spill]]  ;;  %v213_v7 = vld [vmem:[#allocation6] sm:$0x3]  ;;  %v487_v13 = vlaneseq }
  0xce   :  { %5660 = vmatprep.subr.msk.mxu1 %vm313_vm1, %v213_v7  ;;  %v8216_v11 = vmov 0.0|0.0   ;;  %v6789_v12 = vmov 1   ;;  %vm7063_vm5 = vmpackc.low %vm313_vm1, %vm313_vm1  ;;  %vm6790_vm9 = vmmov 0   ;;  %v8214_v24 = vmov 0.0   ;;  %v212_v25 = vld [vmem:[#allocation2] sm:$0x3] }
  0xcf   :  { %5661 = vmatpush3.xpose.msk.msra.mxu1 %vm313_vm1, %v213_v7  ;;  %6295 = vset.pattern.permute.xlu0 %v6789_v12  ;;  %v7057_v14 = vand.u32 127, %v487_v13  ;;  %v8211_v30 = vmov 0   ;;  %v7113_v33 = vshrl.u32 %v487_v13, 7  ;;  %s8245_s22 = sld [smem:[#allocation35_spill]]  ;;  %s8246_s25 = sld [smem:[#allocation39_spill]]  ;;  %v8251_v18 = vmov 0  }
  0xd0   :  { %6026 = vmatprep.subr.bf16.mxu1 %v8216_v11  ;;  %6296 = vset.pattern.permute.xlu1 %v6789_v12  ;;  %s5438_s29 = sld [smem:[#allocation18 + $0x2]]  ;;  %s4696_s8 = sld [smem:[#allocation17]] }
  0xd1   :  { %8237 = vst [vmem:[#allocation29_spill] sm:$0xff] %v7057_v14  ;;  %vm692_vm2 = vcmp.ge.s32.totalorder %v7057_v14, 8  ;;  %vm693_vm3 = vcmp.lt.s32.totalorder %v7057_v14, 16  ;;  %vm590_vm7 = vcmp.lt.s32.totalorder %v7057_v14, 8  ;;  %8244 = vst [vmem:[#allocation30_spill] sm:$0xff] %v7113_v33  ;;  %v7116_v34 = vsub.s32 1, %v7113_v33 }
  0xd2   :  { %vm694_vm4 = vmand %vm692_vm2, %vm693_vm3  ;;  %v7126_v40 = vsub.s32 0, %v7113_v33  ;;  %s5430_s2 = sld [smem:[#allocation17 + $0x1]]  ;;  %s5431_s11 = sld [smem:[#allocation17 + $0x2]] }
  0xd3   :  { %v208_v0 = vld [vmem:[%s8235_s28] sm:$0xff]  ;;  %v209_v1 = vld [vmem:[%s8235_s28 + $0x8] sm:$0xff]  ;;  %v210_v2 = vld [vmem:[%s8235_s28 + $0x10] sm:$0xff]  ;;  %s5433_s26 = sld [smem:[#allocation17 + $0x4]]  ;;  %s5439_s30 = sld [smem:[#allocation18 + $0x3]] }
  0xd4   :  { %v6018_v3 = vpack.c.bf16 %v209_v1, %v208_v0  ;;  %v211_v4 = vld [vmem:[%s8235_s28 + $0x18] sm:$0xff]  ;;  %v204_v5 = vld [vmem:[%s8236_s6] sm:$0xff]  ;;  %v205_v8 = vld [vmem:[%s8236_s6 + $0x8] sm:$0xff]  ;;  %s5440_s7 = sld [smem:[#allocation18 + $0x4]] }
  0xd5   :  { %v6022_v6 = vpack.c.bf16 %v211_v4, %v210_v2  ;;  %5654 = vmatprep.mubr.msk.f32.mxu0 %vm215_vm0, %v204_v5  ;;  %v206_v9 = vld [vmem:[%s8236_s6 + $0x10] sm:$0xff]  ;;  %v207_v10 = vld [vmem:[%s8236_s6 + $0x18] sm:$0xff]  ;;  %vm7067_vm6 = vmpackc.low %vm694_vm4, %vm694_vm4  ;;  %s8247_s6 = sld [smem:[#allocation40_spill]] }
  0xd6   :  { %6019 = vmatprep.subr.bf16.mxu0 %v6018_v3  ;;  %vm7090_vm8 = vmpackc.low %vm590_vm7, %vm590_vm7  ;;  %v7122_v37 = vld [vmem:[%s8245_s22 + $0x8] sm:$0xff]  ;;  %v7131_v42 = vld [vmem:[%s8245_s22] sm:$0xff] }
  0xd7   :  { %6021 = vmatpush3.bf16.msra.mxu0 %v6018_v3  ;;  %vm201_vm10 = vcmp.gt.f32.partialorder %v7122_v37, 0.0  ;;  %v7136_v46 = vld [vmem:[%s8245_s22 + $0x10] sm:$0xff]  ;;  %vm200_vm12 = vcmp.gt.f32.partialorder %v7131_v42, 0.0  ;;  %v7147_v53 = vld [vmem:[%s8245_s22 + $0x18] sm:$0xff] }
  0xd8   :  { %6023 = vmatprep.subr.bf16.mxu0 %v6022_v6  ;;  %vm202_vm14 = vcmp.gt.f32.partialorder %v7136_v46, 0.0  ;;  %vm203_vm2 = vcmp.gt.f32.partialorder %v7147_v53, 0.0 }
  0xdb   :  { %6025 = vmatpush3.bf16.msra.mxu0 %v6022_v6 }
  0xde   :  { %5655 = vmatmul.mubr.msk.f32.vlgmr.msra.gmra.mrb[0].mxu0 %vm215_vm0, %v205_v8 }
  0xdf   :  { %5657 = vmatprep.mubr.msk.f32.mxu0 %vm215_vm0, %v206_v9 }
  0xe2   :  { %5658 = vmatmul.mubr.msk.f32.gmra.mrb[2].mxu0 %vm215_vm0, %v207_v10 }
 0x1b1   :  { %v5656_v15 = vpop.f32.mrb[0].mxu0 }
 0x1b2   :  { %v294_v17 = vpop.f32.mrb[1].mxu0 }
 0x1b3   :  { %v7071_v19 = vpack.c.bf16 %v5656_v15, %v294_v17  ;;  %5662 = vmatprep.mubr.msk.f32.mxu1 %vm313_vm1, %v294_v17 }
 0x1b4   :  { %5663 = vmatmul.mubr.msk.f32.vlgmr.msra.gmra.mrb[0].mxu1 %vm313_vm1, %v5656_v15 }
 0x1b5   :  { %v5659_v20 = vpop.f32.mrb[2].mxu0  ;;  %6029 = vmatpush3.bf16.xpose.msk.msra.mxu1 %vm7063_vm5, %v7071_v19  ;;  %6036 = vmatprep.subr.msk.bf16.mxu0 %vm7067_vm6, %v7071_v19 }
 0x1b6   :  { %v304_v21 = vpop.f32.mrb[3].mxu0  ;;  %6039 = vmatpush3.bf16.msk.msra.mxu0 %vm7067_vm6, %v7071_v19  ;;  %6030 = vmatprep.subr.bf16.mxu1 %v8216_v11 }
 0x1b7   :  { %v7086_v22 = vpack.c.bf16 %v5659_v20, %v304_v21  ;;  %5665 = vmatprep.mubr.msk.f32.mxu1 %vm313_vm1, %v304_v21 }
 0x1b8   :  { %5666 = vmatmul.mubr.msk.f32.gmra.mrb[2].mxu1 %vm313_vm1, %v5659_v20 }
 0x1b9   :  { %6042 = vmatprep.subr.msk.bf16.mxu0 %vm7067_vm6, %v7086_v22  ;;  %5676 = vmatprep.mubr.msk.f32.mxu1 %vm6790_vm9, %v8214_v24 }
 0x1ba   :  { %6045 = vmatpush3.bf16.msk.msra.mxu0 %vm7067_vm6, %v7086_v22 }
 0x1bb   :  { %6048 = vmatprep.subr.msk.bf16.mxu0 %vm7090_vm8, %v7071_v19 }
 0x1bd   :  { %6033 = vmatpush3.bf16.xpose.msk.msra.mxu1 %vm7063_vm5, %v7086_v22 }
 0x1c4   :  { %5677 = vmatmul.mubr.msk.f32.vlgmr.msra.gmra.mrb[4].mxu1 %vm313_vm1, %v212_v25 }
 0x287   :  { %v5664_v26 = vpop.f32.mrb[0].mxu1 }
 0x288   :  { %601 = vperm.xlu0 %6295, %v5664_v26   ;;  %v395_v27 = vpop.f32.mrb[1].mxu1 }
 0x28b   :  { %v5667_v28 = vpop.f32.mrb[2].mxu1 }
 0x28c   :  { %597 = vperm.xlu0 %6295, %v395_v27   ;;  %v405_v29 = vpop.f32.mrb[3].mxu1 }
 0x28d   :  { %605 = vperm.xlu1 %6296, %v405_v29  }
 0x290   :  { %6297 = vset.pattern.permute.xlu0 %v8211_v30 }
 0x291   :  { %491 = vperm.xlu0 %6297, %v395_v27   ;;  %609 = vperm.xlu1 %6296, %v5667_v28  }
 0x295   :  { %506 = vperm.xlu0 %6297, %v5667_v28   ;;  %6298 = vset.pattern.permute.xlu1 %v8211_v30 }
 0x296   :  { %496 = vperm.xlu1 %6298, %v5664_v26  }
 0x297   :  { %v483_v31 = vpop.f32.mrb[4].mxu1 }
 0x298   :  { %v5678_v32 = vpop.f32.mrb[5].mxu1  ;;  %v615_v35 = vrot.slane %v483_v31, %v7116_v34  ;;  %v512_v51 = vrot.slane %v483_v31, %v7126_v40 }
 0x299   :  { %6299 = vset.pattern.permute.xlu0 %v6789_v12 }
 0x29a   :  { %501 = vperm.xlu1 %6298, %v405_v29  }
 0x29e   :  { %6300 = vset.pattern.permute.xlu1 %v6789_v12 }
 0x307   :  { %v602_v36 = vpop.permute.xlu0 %601 }
 0x308   :  { %v617_v38 = vadd.f32 %v615_v35, %v602_v36 }
 0x30a   :  { %v625_v39 = vmul.f32 0.2, %v617_v38  ;;  %vm621_vm11 = vcmp.gt.f32.partialorder %v617_v38, 0.0 }
 0x30b   :  { %v598_v41 = vpop.permute.xlu0 %597 }
 0x30c   :  { %v616_v43 = vadd.f32 %v615_v35, %v598_v41  ;;  %v606_v44 = vpop.permute.xlu1 %605  ;;  %v629_v45 = vsel %vm621_vm11, %v617_v38, %v625_v39 }
 0x30d   :  { %v618_v47 = vadd.f32 %v615_v35, %v606_v44  ;;  %v633_v48 = vsel %vm201_vm10, %v629_v45, -1e+30 }
 0x30e   :  { %v624_v49 = vmul.f32 0.2, %v616_v43  ;;  %v639_v50 = vsel %vm215_vm0, %v633_v48, -inf  ;;  %vm620_vm13 = vcmp.gt.f32.partialorder %v616_v43, 0.0 }
 0x30f   :  { %v626_v52 = vmul.f32 0.2, %v618_v47  ;;  %640 = vmax.xlane.f32.xlu0 %v639_v50  ;;  %vm622_vm15 = vcmp.gt.f32.partialorder %v618_v47, 0.0 }
 0x310   :  { %v492_v54 = vpop.permute.xlu0 %491  ;;  %v610_v55 = vpop.permute.xlu1 %609  ;;  %v628_v56 = vsel %vm620_vm13, %v616_v43, %v624_v49 }
 0x311   :  { %v513_v57 = vadd.f32 %v512_v51, %v492_v54  ;;  %v619_v58 = vadd.f32 %v615_v35, %v610_v55  ;;  %v632_v59 = vsel %vm200_vm12, %v628_v56, -1e+30  ;;  %v630_v60 = vsel %vm622_vm15, %v618_v47, %v626_v52 }
 0x312   :  { %v636_v61 = vsel %vm215_vm0, %v632_v59, -inf  ;;  %v634_v62 = vsel %vm202_vm14, %v630_v60, -1e+30 }
 0x313   :  { %v521_v63 = vmul.f32 0.2, %v513_v57  ;;  %v627_v0 = vmul.f32 0.2, %v619_v58  ;;  %637 = vmax.xlane.f32.xlu1 %v636_v61  ;;  %v642_v1 = vsel %vm215_vm0, %v634_v62, -inf  ;;  %vm623_vm3 = vcmp.gt.f32.partialorder %v619_v58, 0.0 }
 0x314   :  { %v507_v2 = vpop.permute.xlu0 %506  ;;  %643 = vmax.xlane.f32.xlu0 %v642_v1  ;;  %vm517_vm4 = vcmp.gt.f32.partialorder %v513_v57, 0.0 }
 0x315   :  { %v516_v3 = vadd.f32 %v512_v51, %v507_v2  ;;  %v497_v4 = vpop.permute.xlu1 %496  ;;  %v631_v5 = vsel %vm623_vm3, %v619_v58, %v627_v0  ;;  %v525_v6 = vsel %vm517_vm4, %v513_v57, %v521_v63 }
 0x316   :  { %v514_v7 = vadd.f32 %v512_v51, %v497_v4  ;;  %v635_v8 = vsel %vm203_vm2, %v631_v5, -1e+30  ;;  %v529_v9 = vsel %vm200_vm12, %v525_v6, -1e+30 }
 0x317   :  { %v524_v10 = vmul.f32 0.2, %v516_v3  ;;  %v645_v13 = vsel %vm215_vm0, %v635_v8, -inf  ;;  %v533_v15 = vsel %vm215_vm0, %v529_v9, -inf  ;;  %vm520_vm7 = vcmp.gt.f32.partialorder %v516_v3, 0.0 }
 0x318   :  { %v522_v17 = vmul.f32 0.2, %v514_v7  ;;  %646 = vmax.xlane.f32.xlu1 %v645_v13  ;;  %534 = vmax.xlane.f32.xlu0 %v533_v15  ;;  %vm518_vm11 = vcmp.gt.f32.partialorder %v514_v7, 0.0 }
 0x319   :  { %v502_v20 = vpop.permute.xlu1 %501  ;;  %v528_v26 = vsel %vm520_vm7, %v516_v3, %v524_v10 }
 0x31a   :  { %v515_v21 = vadd.f32 %v512_v51, %v502_v20  ;;  %v526_v25 = vsel %vm518_vm11, %v514_v7, %v522_v17  ;;  %v532_v31 = vsel %vm203_vm2, %v528_v26, -1e+30 }
 0x31b   :  { %v530_v27 = vsel %vm201_vm10, %v526_v25, -1e+30  ;;  %v542_v36 = vsel %vm215_vm0, %v532_v31, -inf }
 0x31c   :  { %v523_v28 = vmul.f32 0.2, %v515_v21  ;;  %v536_v29 = vsel %vm215_vm0, %v530_v27, -inf  ;;  %vm519_vm13 = vcmp.gt.f32.partialorder %v515_v21, 0.0 }
 0x31d   :  { %537 = vmax.xlane.f32.xlu1 %v536_v29 }
 0x31e   :  { %v527_v32 = vsel %vm519_vm13, %v515_v21, %v523_v28 }
 0x31f   :  { %v531_v35 = vsel %vm202_vm14, %v527_v32, -1e+30 }
 0x320   :  { %v539_v38 = vsel %vm215_vm0, %v531_v35, -inf }
 0x321   :  { %543 = vmax.xlane.f32.xlu1 %v542_v36  ;;  %540 = vmax.xlane.f32.xlu0 %v539_v38 }
 0x39c   :  { %v641_v39 = vpop.xlane.xlu0 %640 }
 0x39d   :  { %v649_v41 = vsub.f32 %v633_v48, %v641_v39 }
 0x39f   :  { %v654_v43 = vmul.f32 1.442695, %v649_v41 }
 0x3a0   :  { %v638_v44 = vpop.xlane.xlu1 %637 }
 0x3a1   :  { %6308 = vpow2.f32 %v654_v43  ;;  %v648_v45 = vsub.f32 %v632_v59, %v638_v44  ;;  %v644_v47 = vpop.xlane.xlu0 %643 }
 0x3a2   :  { %v650_v49 = vsub.f32 %v634_v62, %v644_v47 }
 0x3a3   :  { %v652_v50 = vmul.f32 1.442695, %v648_v45 }
 0x3a4   :  { %v656_v51 = vmul.f32 1.442695, %v650_v49 }
 0x3a5   :  { %6310 = vpow2.f32 %v652_v50  ;;  %v647_v52 = vpop.xlane.xlu1 %646  ;;  %v535_v54 = vpop.xlane.xlu0 %534 }
 0x3a6   :  { %6312 = vpow2.f32 %v656_v51  ;;  %v651_v55 = vsub.f32 %v635_v8, %v647_v52  ;;  %v545_v56 = vsub.f32 %v529_v9, %v535_v54 }
 0x3a8   :  { %v658_v57 = vmul.f32 1.442695, %v651_v55  ;;  %v549_v58 = vmul.f32 1.442695, %v545_v56 }
 0x3aa   :  { %6314 = vpow2.f32 %v658_v57  ;;  %v538_v60 = vpop.xlane.xlu1 %537 }
 0x3ab   :  { %v6309_v61 = vpop.eup %6308  ;;  %6316 = vpow2.f32 %v549_v58  ;;  %v546_v48 = vsub.f32 %v530_v27, %v538_v60 }
 0x3ac   :  { %v661_v63 = vmul.f32 %v6309_v61, %v7122_v37 }
 0x3ad   :  { %v551_v59 = vmul.f32 1.442695, %v546_v48 }
 0x3ae   :  { %v544_v0 = vpop.xlane.xlu1 %543  ;;  %v541_v62 = vpop.xlane.xlu0 %540  ;;  %v7174_v1 = vsel %vm201_vm10, %v661_v63, 0.0 }
 0x3af   :  { %v6311_v2 = vpop.eup %6310  ;;  %6318 = vpow2.f32 %v551_v59  ;;  %v548_v3 = vsub.f32 %v532_v31, %v544_v0  ;;  %v547_v4 = vsub.f32 %v531_v35, %v541_v62  ;;  %v671_v5 = vsel %vm215_vm0, %v7174_v1, 0.0 }
 0x3b0   :  { %v6313_v6 = vpop.eup %6312  ;;  %672 = vadd.xlane.f32.xlu1 %v671_v5  ;;  %v660_v7 = vmul.f32 %v6311_v2, %v7131_v42 }
 0x3b1   :  { %v555_v8 = vmul.f32 1.442695, %v548_v3  ;;  %v553_v9 = vmul.f32 1.442695, %v547_v4  ;;  %v662_v10 = vmul.f32 %v6313_v6, %v7136_v46 }
 0x3b2   :  { %v664_v13 = vsel %vm200_vm12, %v660_v7, 0.0 }
 0x3b3   :  { %6320 = vpow2.f32 %v555_v8  ;;  %v668_v15 = vsel %vm215_vm0, %v664_v13, 0.0  ;;  %v666_v20 = vsel %vm202_vm14, %v662_v10, 0.0 }
 0x3b4   :  { %v6315_v17 = vpop.eup %6314  ;;  %6322 = vpow2.f32 %v553_v9  ;;  %669 = vadd.xlane.f32.xlu0 %v668_v15  ;;  %v674_v27 = vsel %vm215_vm0, %v666_v20, 0.0 }
 0x3b5   :  { %v6317_v21 = vpop.eup %6316  ;;  %v663_v25 = vmul.f32 %v6315_v17, %v7147_v53 }
 0x3b6   :  { %v557_v26 = vmul.f32 %v6317_v21, %v7131_v42 }
 0x3b7   :  { %v667_v28 = vsel %vm203_vm2, %v663_v25, 0.0 }
 0x3b8   :  { %675 = vadd.xlane.f32.xlu0 %v674_v27  ;;  %v677_v29 = vsel %vm215_vm0, %v667_v28, 0.0  ;;  %v561_v31 = vsel %vm200_vm12, %v557_v26, 0.0 }
 0x3b9   :  { %v6319_v32 = vpop.eup %6318  ;;  %678 = vadd.xlane.f32.xlu1 %v677_v29  ;;  %v565_v36 = vsel %vm215_vm0, %v561_v31, 0.0 }
 0x3ba   :  { %v558_v35 = vmul.f32 %v6319_v32, %v7122_v37 }
 0x3bc   :  { %566 = vadd.xlane.f32.xlu0 %v565_v36  ;;  %v562_v38 = vsel %vm201_vm10, %v558_v35, 0.0 }
 0x3bd   :  { %v6321_v39 = vpop.eup %6320  ;;  %v568_v41 = vsel %vm215_vm0, %v562_v38, 0.0 }
 0x3be   :  { %v6323_v43 = vpop.eup %6322  ;;  %569 = vadd.xlane.f32.xlu1 %v568_v41  ;;  %v560_v44 = vmul.f32 %v6321_v39, %v7147_v53 }
 0x3bf   :  { %v559_v45 = vmul.f32 %v6323_v43, %v7136_v46 }
 0x3c0   :  { %v564_v47 = vsel %vm203_vm2, %v560_v44, 0.0 }
 0x3c1   :  { %v574_v49 = vsel %vm215_vm0, %v564_v47, 0.0  ;;  %v563_v50 = vsel %vm202_vm14, %v559_v45, 0.0 }
 0x3c2   :  { %575 = vadd.xlane.f32.xlu1 %v574_v49  ;;  %v571_v51 = vsel %vm215_vm0, %v563_v50, 0.0 }
 0x3c3   :  { %572 = vadd.xlane.f32.xlu0 %v571_v51 }
 0x43d   :  { %v673_v52 = vpop.xlane.xlu1 %672 }
 0x43e   :  { %v681_v54 = vadd.f32 1e-16, %v673_v52 }
 0x440   :  { %6324 = vrcp.f32 %v681_v54 }
 0x441   :  { %v670_v55 = vpop.xlane.xlu0 %669 }
 0x442   :  { %v680_v56 = vadd.f32 1e-16, %v670_v55 }
 0x444   :  { %6326 = vrcp.f32 %v680_v56 }
 0x445   :  { %v676_v57 = vpop.xlane.xlu0 %675 }
 0x446   :  { %v682_v58 = vadd.f32 1e-16, %v676_v57  ;;  %v679_v60 = vpop.xlane.xlu1 %678 }
 0x447   :  { %v683_v61 = vadd.f32 1e-16, %v679_v60 }
 0x448   :  { %6328 = vrcp.f32 %v682_v58 }
 0x449   :  { %6330 = vrcp.f32 %v683_v61  ;;  %v567_v48 = vpop.xlane.xlu0 %566 }
 0x44a   :  { %v577_v63 = vadd.f32 1e-16, %v567_v48  ;;  %v6325_v62 = vpop.eup %6324 }
 0x44b   :  { %v570_v59 = vpop.xlane.xlu1 %569  ;;  %v689_v5 = vmul.f32 %v6325_v62, %v7174_v1 }
 0x44c   :  { %6332 = vrcp.f32 %v577_v63  ;;  %v578_v0 = vadd.f32 1e-16, %v570_v59 }
 0x44e   :  { %v6327_v2 = vpop.eup %6326  ;;  %6334 = vrcp.f32 %v578_v0 }
 0x44f   :  { %v576_v3 = vpop.xlane.xlu1 %575  ;;  %v688_v4 = vmul.f32 %v6327_v2, %v664_v13 }
 0x450   :  { %v580_v6 = vadd.f32 1e-16, %v576_v3  ;;  %v573_v7 = vpop.xlane.xlu0 %572 }
 0x451   :  { %v579_v8 = vadd.f32 1e-16, %v573_v7  ;;  %5687 = vmatprep.mubr.msk.f32.mxu0 %vm215_vm0, %v688_v4 }
 0x452   :  { %v6329_v9 = vpop.eup %6328  ;;  %6336 = vrcp.f32 %v580_v6  ;;  %5688 = vmatmul.mubr.msk.f32.vlgmr.msra.gmra.mrb[4].mxu0 %vm215_vm0, %v689_v5 }
 0x453   :  { %v6331_v10 = vpop.eup %6330  ;;  %6338 = vrcp.f32 %v579_v8  ;;  %6051 = vmatpush3.bf16.msk.msra.mxu0 %vm7090_vm8, %v7071_v19  ;;  %v690_v15 = vmul.f32 %v6329_v9, %v666_v20 }
 0x454   :  { %6054 = vmatprep.subr.msk.bf16.mxu0 %vm7090_vm8, %v7086_v22  ;;  %v691_v1 = vmul.f32 %v6331_v10, %v667_v28 }
 0x455   :  { %5690 = vmatprep.mubr.msk.f32.mxu0 %vm215_vm0, %v690_v15 }
 0x456   :  { %v6333_v13 = vpop.eup %6332  ;;  %5691 = vmatmul.mubr.msk.f32.gmra.mrb[6].mxu0 %vm215_vm0, %v691_v1 }
 0x457   :  { %6057 = vmatpush3.bf16.msk.msra.mxu0 %vm7090_vm8, %v7086_v22  ;;  %v585_v17 = vmul.f32 %v6333_v13, %v561_v31  ;;  %v5280_v22 = vld [vmem:[%s8246_s25] ss:$0 sm:$0xff] }
 0x458   :  { %v6335_v21 = vpop.eup %6334  ;;  %6064 = vmatprep.subr.bf16.mxu0 %v8216_v11 }
 0x459   :  { %v586_v19 = vmul.f32 %v6335_v21, %v562_v38  ;;  %5701 = vmatprep.mubr.msk.f32.mxu0 %vm215_vm0, %v585_v17 }
 0x45b   :  { %5702 = vmatmul.mubr.msk.f32.vlgmr.msra.gmra.mrb[4].mxu0 %vm215_vm0, %v586_v19 }
 0x45c   :  { %v6337_v20 = vpop.eup %6336 }
 0x45d   :  { %v6339_v25 = vpop.eup %6338  ;;  %v588_v26 = vmul.f32 %v6337_v20, %v564_v47 }
 0x45e   :  { %v587_v27 = vmul.f32 %v6339_v25, %v563_v50 }
 0x460   :  { %5704 = vmatprep.mubr.msk.f32.mxu0 %vm215_vm0, %v587_v27 }
 0x461   :  { %5705 = vmatmul.mubr.msk.f32.gmra.mrb[6].mxu0 %vm215_vm0, %v588_v26 }
 0x462   :  { %5718 = vmatprep.mubr.msk.f32.mxu0 %vm6790_vm9, %v8214_v24 }
 0x52e   :  { %v5703_v28 = vpop.f32.mrb[4].mxu0 }
 0x52f   :  { %v900_v29 = vadd.f32 %v5703_v28, %v5280_v22  ;;  %v874_v31 = vpop.f32.mrb[5].mxu0 }
 0x530   :  { %v899_v32 = vadd.f32 %v5280_v22, %v874_v31  ;;  %v1341_v31 = vld [vmem:[%s8247_s6] sm:$0xff] }
 0x531   :  { %v7230_v35 = vmax.f32 %v900_v29, 0.0 }
 0x532   :  { %v7232_v36 = vmax.f32 %v899_v32, 0.0  ;;  %v1342_v32 = vld [vmem:[%s8247_s6 + $0x8] sm:$0xff]  ;;  %s5437_s6 = sld [smem:[#allocation18 + $0x1]] }
 0x533   :  { %v910_v38 = vsel %vm313_vm1, %v7230_v35, inf  ;;  %v916_v49 = vsel %vm313_vm1, %v7230_v35, -inf }
 0x534   :  { %v5706_v39 = vpop.f32.mrb[6].mxu0  ;;  %911 = vmin.xlane.f32.xlu1 %v910_v38  ;;  %v907_v41 = vsel %vm313_vm1, %v7232_v36, inf  ;;  %v913_v51 = vsel %vm313_vm1, %v7232_v36, -inf }
 0x535   :  { %v902_v43 = vadd.f32 %v5706_v39, %v5280_v22  ;;  %v884_v44 = vpop.f32.mrb[7].mxu0  ;;  %908 = vmin.xlane.f32.xlu0 %v907_v41 }
 0x536   :  { %v901_v45 = vadd.f32 %v5280_v22, %v884_v44  ;;  %v6078_v44 = vpack.c.bf16 %v1342_v32, %v1341_v31 }
 0x537   :  { %v7238_v47 = vmax.f32 %v902_v43, 0.0 }
 0x538   :  { %v7242_v50 = vmax.f32 %v901_v45, 0.0  ;;  %917 = vmax.xlane.f32.xlu1 %v916_v49  ;;  %v8212_v49 = vmov 1.0  }
 0x539   :  { %914 = vmax.xlane.f32.xlu0 %v913_v51  ;;  %v1129_v52 = vsel %vm313_vm1, %v7238_v47, inf  ;;  %v1135_v55 = vsel %vm313_vm1, %v7238_v47, -inf  ;;  %v1344_v51 = vld [vmem:[#allocation9] sm:$0x3] }
 0x53a   :  { %v1126_v54 = vsel %vm313_vm1, %v7242_v50, inf  ;;  %v1132_v56 = vsel %vm313_vm1, %v7242_v50, -inf }
 0x53c   :  { %1130 = vmin.xlane.f32.xlu1 %v1129_v52 }
 0x53d   :  { %1127 = vmin.xlane.f32.xlu0 %v1126_v54 }
 0x540   :  { %1136 = vmax.xlane.f32.xlu1 %v1135_v55 }
 0x541   :  { %1133 = vmax.xlane.f32.xlu0 %v1132_v56 }
 0x5c1   :  { %v912_v57 = vpop.xlane.xlu1 %911 }
 0x5c2   :  { %v909_v58 = vpop.xlane.xlu0 %908  ;;  %v920_v9 = vsub.f32 %v7230_v35, %v912_v57 }
 0x5c3   :  { %v919_v15 = vsub.f32 %v7232_v36, %v909_v58 }
 0x5c5   :  { %v918_v60 = vpop.xlane.xlu1 %917 }
 0x5c6   :  { %v922_v61 = vsub.f32 %v918_v60, %v912_v57  ;;  %v915_v48 = vpop.xlane.xlu0 %914 }
 0x5c7   :  { %v921_v63 = vsub.f32 %v915_v48, %v909_v58 }
 0x5c8   :  { %v924_v59 = vadd.f32 1e-12, %v922_v61 }
 0x5c9   :  { %v923_v0 = vadd.f32 1e-12, %v921_v63  ;;  %v1131_v62 = vpop.xlane.xlu1 %1130 }
 0x5ca   :  { %6340 = vrcp.f32 %v924_v59  ;;  %v1128_v2 = vpop.xlane.xlu0 %1127  ;;  %v1139_v26 = vsub.f32 %v7238_v47, %v1131_v62  ;;  %v1343_v59 = vld [vmem:[#allocation8] sm:$0x3] }
 0x5cb   :  { %6342 = vrcp.f32 %v923_v0  ;;  %v1138_v22 = vsub.f32 %v7242_v50, %v1128_v2 }
 0x5cd   :  { %v1137_v3 = vpop.xlane.xlu1 %1136 }
 0x5ce   :  { %v1141_v4 = vsub.f32 %v1137_v3, %v1131_v62  ;;  %v1134_v5 = vpop.xlane.xlu0 %1133 }
 0x5cf   :  { %v1140_v6 = vsub.f32 %v1134_v5, %v1128_v2 }
 0x5d0   :  { %v1143_v7 = vadd.f32 1e-12, %v1141_v4 }
 0x5d1   :  { %v1142_v8 = vadd.f32 1e-12, %v1140_v6 }
 0x5d2   :  { %6344 = vrcp.f32 %v1143_v7 }
 0x5d3   :  { %6346 = vrcp.f32 %v1142_v8 }
 0x5d4   :  { %v6341_v10 = vpop.eup %6340 }
 0x5d5   :  { %v6343_v1 = vpop.eup %6342  ;;  %v928_v13 = vmul.f32 %v6341_v10, %v920_v9 }
 0x5d6   :  { %v926_v17 = vmul.f32 %v6343_v1, %v919_v15 }
 0x5d7   :  { %v7256_v21 = vmul.f32 %v928_v13, %v928_v13 }
 0x5d8   :  { %5711 = vmatprep.mubr.msk.f32.mxu1 %vm313_vm1, %v926_v17  ;;  %v7259_v19 = vmul.f32 %v926_v17, %v926_v17  ;;  %v6058_v20 = vpack.c.bf16 %v928_v13, %v926_v17 }
 0x5da   :  { %6060 = vmatprep.subr.msk.bf16.mxu1 %vm7063_vm5, %v6058_v20  ;;  %v6065_v25 = vpack.c.bf16 %v7256_v21, %v7259_v19 }
 0x5db   :  { %6063 = vmatpush3.bf16.xpose.msk.msra.mxu1 %vm7063_vm5, %v6058_v20 }
 0x5dc   :  { %v6345_v27 = vpop.eup %6344  ;;  %6067 = vmatpush3.bf16.xpose.msk.msra.mxu0 %vm7063_vm5, %v6065_v25 }
 0x5dd   :  { %v6347_v28 = vpop.eup %6346  ;;  %v1147_v29 = vmul.f32 %v6345_v27, %v1139_v26  ;;  %6074 = vmatprep.subr.bf16.mxu0 %v8216_v11 }
 0x5de   :  { %v1145_v38 = vmul.f32 %v6347_v28, %v1138_v22 }
 0x5df   :  { %v7278_v39 = vmul.f32 %v1147_v29, %v1147_v29 }
 0x5e0   :  { %v6068_v41 = vpack.c.bf16 %v1147_v29, %v1145_v38  ;;  %v7280_v43 = vmul.f32 %v1145_v38, %v1145_v38 }
 0x5e2   :  { %5712 = vmatmul.mubr.msk.f32.vlgmr.msra.gmra.mrb[6].mxu1 %vm313_vm1, %v928_v13  ;;  %6070 = vmatprep.subr.msk.bf16.mxu1 %vm7063_vm5, %v6068_v41  ;;  %v6075_v45 = vpack.c.bf16 %v7278_v39, %v7280_v43 }
 0x5e3   :  { %6073 = vmatpush3.bf16.xpose.msk.msra.mxu1 %vm7063_vm5, %v6068_v41  ;;  %5725 = vmatprep.mubr.msk.f32.mxu1 %vm313_vm1, %v1145_v38 }
 0x5e4   :  { %5719 = vmatmul.mubr.msk.f32.vlgmr.msra.gmra.mrb[8].mxu0 %vm313_vm1, %v8212_v49  ;;  %6079 = vmatprep.subr.bf16.mxu1 %v6078_v44 }
 0x5e5   :  { %6077 = vmatpush3.bf16.xpose.msk.msra.mxu0 %vm7063_vm5, %v6075_v45  ;;  %5732 = vmatprep.mubr.msk.f32.mxu0 %vm6790_vm9, %v8214_v24 }
 0x5e6   :  { %5745 = vmatprep.subr.msk.mxu0 %vm313_vm1, %v1344_v51 }
 0x5ea   :  { %5726 = vmatmul.mubr.msk.f32.vlgmr.msra.gmra.mrb[8].mxu1 %vm313_vm1, %v1147_v29 }
 0x5eb   :  { %6081 = vmatpush3.bf16.msra.mxu1 %v6078_v44  ;;  %5739 = vmatprep.mubr.msk.f32.mxu1 %vm313_vm1, %v7232_v36 }
 0x5ec   :  { %5733 = vmatmul.mubr.msk.f32.vlgmr.msra.gmra.mrb[10].mxu0 %vm313_vm1, %v8212_v49  ;;  %6082 = vmatprep.subr.bf16.mxu1 %v8216_v11 }
 0x5ed   :  { %5746 = vmatpush3.xpose.msk.msra.mxu0 %vm313_vm1, %v1344_v51 }
 0x5ee   :  { %5740 = vmatmul.mubr.msk.f32.vlgmr.msra.gmra.mrb[10].mxu1 %vm313_vm1, %v7230_v35 }
 0x5ef   :  { %5742 = vmatprep.mubr.msk.f32.mxu1 %vm313_vm1, %v7242_v50 }
 0x5f2   :  { %5743 = vmatmul.mubr.msk.f32.gmra.mrb[12].mxu1 %vm313_vm1, %v7238_v47 }
 0x5f3   :  { %5761 = vmatprep.mubr.msk.f32.mxu1 %vm6790_vm9, %v8214_v24 }
 0x6b5   :  { %v7312_v36 = vpop.f32.mrb[6].mxu1 }
 0x6b6   :  { %v7314_v52 = vpop.f32.mrb[7].mxu1 }
 0x6b7   :  { %v7316_v54 = vpop.f32.mrb[8].mxu0 }
 0x6b8   :  { %v5720_v35 = vpop.f32.mrb[9].mxu0 }
 0x6bd   :  { %v7318_v55 = vpop.f32.mrb[8].mxu1 }
 0x6be   :  { %v7320_v50 = vpop.f32.mrb[9].mxu1 }
 0x6bf   :  { %v7322_v47 = vpop.f32.mrb[10].mxu0 }
 0x6c0   :  { %v5734_v56 = vpop.f32.mrb[11].mxu0 }
 0x6c1   :  { %v5741_v57 = vpop.f32.mrb[10].mxu1 }
 0x6c2   :  { %v1424_v58 = vpop.f32.mrb[11].mxu1 }
 0x6c3   :  { %v7324_v60 = vpack.c.bf16 %v5741_v57, %v1424_v58  ;;  %5747 = vmatprep.mubr.msk.f32.mxu0 %vm313_vm1, %v1424_v58 }
 0x6c4   :  { %5748 = vmatmul.mubr.msk.f32.vlgmr.msra.gmra.mrb[12].mxu0 %vm313_vm1, %v5741_v57 }
 0x6c5   :  { %v5744_v61 = vpop.f32.mrb[12].mxu1  ;;  %6085 = vmatpush3.bf16.xpose.msk.msra.mxu1 %vm7063_vm5, %v7324_v60  ;;  %6092 = vmatprep.subr.msk.bf16.mxu0 %vm7067_vm6, %v7324_v60 }
 0x6c6   :  { %v1434_v48 = vpop.f32.mrb[13].mxu1  ;;  %6095 = vmatpush3.bf16.msk.msra.mxu0 %vm7067_vm6, %v7324_v60  ;;  %6086 = vmatprep.subr.bf16.mxu1 %v8216_v11 }
 0x6c7   :  { %v7338_v63 = vpack.c.bf16 %v5744_v61, %v1434_v48  ;;  %5750 = vmatprep.mubr.msk.f32.mxu0 %vm313_vm1, %v1434_v48 }
 0x6c8   :  { %5751 = vmatmul.mubr.msk.f32.gmra.mrb[14].mxu0 %vm313_vm1, %v5744_v61 }
 0x6c9   :  { %6098 = vmatprep.subr.msk.bf16.mxu0 %vm7067_vm6, %v7338_v63 }
 0x6ca   :  { %6101 = vmatpush3.bf16.msk.msra.mxu0 %vm7067_vm6, %v7338_v63 }
 0x6cb   :  { %6104 = vmatprep.subr.msk.bf16.mxu0 %vm7090_vm8, %v7324_v60 }
 0x6cd   :  { %6089 = vmatpush3.bf16.xpose.msk.msra.mxu1 %vm7063_vm5, %v7338_v63 }
 0x6d4   :  { %5762 = vmatmul.mubr.msk.f32.vlgmr.msra.gmra.mrb[14].mxu1 %vm313_vm1, %v1343_v59 }
 0x797   :  { %v5749_v0 = vpop.f32.mrb[12].mxu0 }
 0x798   :  { %1725 = vperm.xlu1 %6300, %v5749_v0   ;;  %v1524_v62 = vpop.f32.mrb[13].mxu0 }
 0x799   :  { %1721 = vperm.xlu0 %6299, %v1524_v62  }
 0x79b   :  { %v5752_v2 = vpop.f32.mrb[14].mxu0 }
 0x79c   :  { %1733 = vperm.xlu1 %6300, %v5752_v2   ;;  %v1534_v3 = vpop.f32.mrb[15].mxu0 }
 0x7a0   :  { %1729 = vperm.xlu1 %6300, %v1534_v3  }
 0x7a4   :  { %6301 = vset.pattern.permute.xlu1 %v8211_v30 }
 0x7a5   :  { %1618 = vperm.xlu1 %6301, %v1524_v62  }
 0x7a7   :  { %v1612_v4 = vpop.f32.mrb[14].mxu1 }
 0x7a8   :  { %v5763_v5 = vpop.f32.mrb[15].mxu1  ;;  %v1739_v6 = vrot.slane %v1612_v4, %v7116_v34  ;;  %v1639_v51 = vrot.slane %v1612_v4, %v7126_v40 }
 0x7a9   :  { %1623 = vperm.xlu1 %6301, %v5749_v0  }
 0x7ad   :  { %1628 = vperm.xlu1 %6301, %v1534_v3  }
 0x7b1   :  { %1633 = vperm.xlu1 %6301, %v5752_v2  }
 0x7b5   :  { %6302 = vset.pattern.permute.xlu1 %v6789_v12 }
 0x817   :  { %v1726_v7 = vpop.permute.xlu1 %1725 }
 0x818   :  { %v1741_v8 = vadd.f32 %v1739_v6, %v1726_v7  ;;  %v1722_v9 = vpop.permute.xlu0 %1721 }
 0x819   :  { %v1740_v10 = vadd.f32 %v1739_v6, %v1722_v9 }
 0x81a   :  { %v1749_v15 = vmul.f32 0.2, %v1741_v8  ;;  %vm1745_vm15 = vcmp.gt.f32.partialorder %v1741_v8, 0.0 }
 0x81b   :  { %v1748_v1 = vmul.f32 0.2, %v1740_v10  ;;  %v1734_v13 = vpop.permute.xlu1 %1733  ;;  %vm1744_vm3 = vcmp.gt.f32.partialorder %v1740_v10, 0.0 }
 0x81c   :  { %v1743_v17 = vadd.f32 %v1739_v6, %v1734_v13  ;;  %v1753_v20 = vsel %vm1745_vm15, %v1741_v8, %v1749_v15 }
 0x81d   :  { %v1757_v25 = vsel %vm201_vm10, %v1753_v20, -1e+30  ;;  %v1752_v26 = vsel %vm1744_vm3, %v1740_v10, %v1748_v1 }
 0x81e   :  { %v1751_v27 = vmul.f32 0.2, %v1743_v17  ;;  %v1763_v22 = vsel %vm215_vm0, %v1757_v25, -inf  ;;  %v1756_v28 = vsel %vm200_vm12, %v1752_v26, -1e+30  ;;  %vm1747_vm4 = vcmp.gt.f32.partialorder %v1743_v17, 0.0 }
 0x81f   :  { %1764 = vmax.xlane.f32.xlu0 %v1763_v22  ;;  %v1730_v29 = vpop.permute.xlu1 %1729  ;;  %v1760_v31 = vsel %vm215_vm0, %v1756_v28, -inf }
 0x820   :  { %v1742_v32 = vadd.f32 %v1739_v6, %v1730_v29  ;;  %1761 = vmax.xlane.f32.xlu1 %v1760_v31  ;;  %v1755_v38 = vsel %vm1747_vm4, %v1743_v17, %v1751_v27 }
 0x821   :  { %v1759_v41 = vsel %vm203_vm2, %v1755_v38, -1e+30 }
 0x822   :  { %v1750_v44 = vmul.f32 0.2, %v1742_v32  ;;  %v1769_v45 = vsel %vm215_vm0, %v1759_v41, -inf  ;;  %vm1746_vm7 = vcmp.gt.f32.partialorder %v1742_v32, 0.0 }
 0x824   :  { %1770 = vmax.xlane.f32.xlu1 %v1769_v45  ;;  %v1619_v35 = vpop.permute.xlu1 %1618  ;;  %v1754_v56 = vsel %vm1746_vm7, %v1742_v32, %v1750_v44 }
 0x825   :  { %v1640_v57 = vadd.f32 %v1639_v51, %v1619_v35  ;;  %v1758_v58 = vsel %vm202_vm14, %v1754_v56, -1e+30 }
 0x826   :  { %v1766_v61 = vsel %vm215_vm0, %v1758_v58, -inf }
 0x827   :  { %v1648_v48 = vmul.f32 0.2, %v1640_v57  ;;  %1767 = vmax.xlane.f32.xlu0 %v1766_v61  ;;  %vm1644_vm11 = vcmp.gt.f32.partialorder %v1640_v57, 0.0 }
 0x828   :  { %v1624_v59 = vpop.permute.xlu1 %1623 }
 0x829   :  { %v1641_v0 = vadd.f32 %v1639_v51, %v1624_v59  ;;  %v1652_v62 = vsel %vm1644_vm11, %v1640_v57, %v1648_v48 }
 0x82a   :  { %v1656_v2 = vsel %vm200_vm12, %v1652_v62, -1e+30 }
 0x82b   :  { %v1649_v3 = vmul.f32 0.2, %v1641_v0  ;;  %v1660_v4 = vsel %vm215_vm0, %v1656_v2, -inf  ;;  %vm1645_vm13 = vcmp.gt.f32.partialorder %v1641_v0, 0.0 }
 0x82c   :  { %1661 = vmax.xlane.f32.xlu0 %v1660_v4  ;;  %v1629_v5 = vpop.permute.xlu1 %1628 }
 0x82d   :  { %v1642_v6 = vadd.f32 %v1639_v51, %v1629_v5  ;;  %v1653_v7 = vsel %vm1645_vm13, %v1641_v0, %v1649_v3 }
 0x82e   :  { %v1657_v8 = vsel %vm201_vm10, %v1653_v7, -1e+30 }
 0x82f   :  { %v1650_v9 = vmul.f32 0.2, %v1642_v6  ;;  %v1663_v10 = vsel %vm215_vm0, %v1657_v8, -inf  ;;  %vm1646_vm15 = vcmp.gt.f32.partialorder %v1642_v6, 0.0 }
 0x830   :  { %1664 = vmax.xlane.f32.xlu1 %v1663_v10  ;;  %v1634_v15 = vpop.permute.xlu1 %1633 }
 0x831   :  { %v1643_v1 = vadd.f32 %v1639_v51, %v1634_v15  ;;  %v1654_v13 = vsel %vm1646_vm15, %v1642_v6, %v1650_v9 }
 0x832   :  { %v1658_v17 = vsel %vm202_vm14, %v1654_v13, -1e+30 }
 0x833   :  { %v1651_v20 = vmul.f32 0.2, %v1643_v1  ;;  %v1666_v26 = vsel %vm215_vm0, %v1658_v17, -inf  ;;  %vm1647_vm3 = vcmp.gt.f32.partialorder %v1643_v1, 0.0 }
 0x834   :  { %1667 = vmax.xlane.f32.xlu0 %v1666_v26 }
 0x835   :  { %v1655_v27 = vsel %vm1647_vm3, %v1643_v1, %v1651_v20 }
 0x836   :  { %v1659_v22 = vsel %vm203_vm2, %v1655_v27, -1e+30 }
 0x837   :  { %v1669_v29 = vsel %vm215_vm0, %v1659_v22, -inf }
 0x838   :  { %1670 = vmax.xlane.f32.xlu1 %v1669_v29 }
 0x8ac   :  { %v1765_v31 = vpop.xlane.xlu0 %1764 }
 0x8ad   :  { %v1773_v32 = vsub.f32 %v1757_v25, %v1765_v31  ;;  %v1762_v38 = vpop.xlane.xlu1 %1761 }
 0x8ae   :  { %v1772_v44 = vsub.f32 %v1756_v28, %v1762_v38 }
 0x8af   :  { %v1778_v45 = vmul.f32 1.442695, %v1773_v32 }
 0x8b0   :  { %v1776_v51 = vmul.f32 1.442695, %v1772_v44 }
 0x8b1   :  { %6348 = vpow2.f32 %v1778_v45  ;;  %v1771_v35 = vpop.xlane.xlu1 %1770 }
 0x8b2   :  { %6350 = vpow2.f32 %v1776_v51  ;;  %v1775_v56 = vsub.f32 %v1759_v41, %v1771_v35 }
 0x8b4   :  { %v1782_v57 = vmul.f32 1.442695, %v1775_v56  ;;  %v1768_v61 = vpop.xlane.xlu0 %1767 }
 0x8b5   :  { %v1774_v48 = vsub.f32 %v1758_v58, %v1768_v61 }
 0x8b6   :  { %6352 = vpow2.f32 %v1782_v57 }
 0x8b7   :  { %v1780_v59 = vmul.f32 1.442695, %v1774_v48 }
 0x8b9   :  { %6354 = vpow2.f32 %v1780_v59  ;;  %v1662_v0 = vpop.xlane.xlu0 %1661 }
 0x8ba   :  { %v1672_v62 = vsub.f32 %v1656_v2, %v1662_v0 }
 0x8bb   :  { %v6349_v3 = vpop.eup %6348 }
 0x8bc   :  { %v6351_v4 = vpop.eup %6350  ;;  %v1676_v5 = vmul.f32 1.442695, %v1672_v62  ;;  %v1785_v25 = vmul.f32 %v6349_v3, %v7122_v37 }
 0x8bd   :  { %v1665_v28 = vpop.xlane.xlu1 %1664  ;;  %v1784_v6 = vmul.f32 %v6351_v4, %v7131_v42 }
 0x8be   :  { %6356 = vpow2.f32 %v1676_v5  ;;  %v1673_v7 = vsub.f32 %v1657_v8, %v1665_v28  ;;  %v7387_v41 = vsel %vm201_vm10, %v1785_v25, 0.0 }
 0x8bf   :  { %v1795_v58 = vsel %vm215_vm0, %v7387_v41, 0.0  ;;  %v1788_v2 = vsel %vm200_vm12, %v1784_v6, 0.0 }
 0x8c0   :  { %v6353_v9 = vpop.eup %6352  ;;  %v1678_v10 = vmul.f32 1.442695, %v1673_v7  ;;  %1796 = vadd.xlane.f32.xlu1 %v1795_v58  ;;  %v1792_v15 = vsel %vm215_vm0, %v1788_v2, 0.0 }
 0x8c1   :  { %v1668_v1 = vpop.xlane.xlu0 %1667  ;;  %1793 = vadd.xlane.f32.xlu0 %v1792_v15  ;;  %v1787_v13 = vmul.f32 %v6353_v9, %v7147_v53 }
 0x8c2   :  { %6358 = vpow2.f32 %v1678_v10  ;;  %v1674_v8 = vsub.f32 %v1658_v17, %v1668_v1 }
 0x8c3   :  { %v6355_v20 = vpop.eup %6354  ;;  %v7397_v26 = vsel %vm203_vm2, %v1787_v13, 0.0 }
 0x8c4   :  { %v1680_v27 = vmul.f32 1.442695, %v1674_v8  ;;  %v1801_v29 = vsel %vm215_vm0, %v7397_v26, 0.0  ;;  %v1786_v31 = vmul.f32 %v6355_v20, %v7136_v46 }
 0x8c5   :  { %1802 = vadd.xlane.f32.xlu1 %v1801_v29  ;;  %v1671_v32 = vpop.xlane.xlu1 %1670 }
 0x8c6   :  { %6360 = vpow2.f32 %v1680_v27  ;;  %v1675_v38 = vsub.f32 %v1659_v22, %v1671_v32  ;;  %v1790_v44 = vsel %vm202_vm14, %v1786_v31, 0.0 }
 0x8c7   :  { %v1798_v17 = vsel %vm215_vm0, %v1790_v44, 0.0 }
 0x8c8   :  { %v6357_v45 = vpop.eup %6356  ;;  %v1682_v51 = vmul.f32 1.442695, %v1675_v38  ;;  %1799 = vadd.xlane.f32.xlu0 %v1798_v17 }
 0x8c9   :  { %v1684_v35 = vmul.f32 %v6357_v45, %v7131_v42 }
 0x8ca   :  { %6362 = vpow2.f32 %v1682_v51 }
 0x8cb   :  { %v1688_v56 = vsel %vm200_vm12, %v1684_v35, 0.0 }
 0x8cc   :  { %v6359_v57 = vpop.eup %6358  ;;  %v1692_v61 = vsel %vm215_vm0, %v1688_v56, 0.0 }
 0x8cd   :  { %1693 = vadd.xlane.f32.xlu0 %v1692_v61  ;;  %v1685_v22 = vmul.f32 %v6359_v57, %v7122_v37 }
 0x8cf   :  { %v1689_v48 = vsel %vm201_vm10, %v1685_v22, 0.0 }
 0x8d0   :  { %v6361_v59 = vpop.eup %6360  ;;  %v1695_v0 = vsel %vm215_vm0, %v1689_v48, 0.0 }
 0x8d1   :  { %1696 = vadd.xlane.f32.xlu1 %v1695_v0  ;;  %v1686_v62 = vmul.f32 %v6361_v59, %v7136_v46 }
 0x8d3   :  { %v1690_v3 = vsel %vm202_vm14, %v1686_v62, 0.0 }
 0x8d4   :  { %v6363_v4 = vpop.eup %6362  ;;  %v1698_v5 = vsel %vm215_vm0, %v1690_v3, 0.0 }
 0x8d5   :  { %1699 = vadd.xlane.f32.xlu0 %v1698_v5  ;;  %v1687_v25 = vmul.f32 %v6363_v4, %v7147_v53 }
 0x8d7   :  { %v1691_v28 = vsel %vm203_vm2, %v1687_v25, 0.0 }
 0x8d8   :  { %v1701_v6 = vsel %vm215_vm0, %v1691_v28, 0.0 }
 0x8d9   :  { %1702 = vadd.xlane.f32.xlu1 %v1701_v6 }
 0x94d   :  { %v1797_v7 = vpop.xlane.xlu1 %1796 }
 0x94e   :  { %v1805_v58 = vadd.f32 1e-16, %v1797_v7  ;;  %v1794_v9 = vpop.xlane.xlu0 %1793 }
 0x94f   :  { %v1804_v10 = vadd.f32 1e-16, %v1794_v9 }
 0x950   :  { %6364 = vrcp.f32 %v1805_v58 }
 0x951   :  { %6366 = vrcp.f32 %v1804_v10 }
 0x952   :  { %v1803_v15 = vpop.xlane.xlu1 %1802 }
 0x953   :  { %v1807_v1 = vadd.f32 1e-16, %v1803_v15 }
 0x955   :  { %v1800_v13 = vpop.xlane.xlu0 %1799  ;;  %6368 = vrcp.f32 %v1807_v1 }
 0x956   :  { %v1806_v8 = vadd.f32 1e-16, %v1800_v13 }
 0x958   :  { %6370 = vrcp.f32 %v1806_v8 }
 0x95a   :  { %v6365_v20 = vpop.eup %6364  ;;  %v1694_v27 = vpop.xlane.xlu0 %1693 }
 0x95b   :  { %v6367_v29 = vpop.eup %6366  ;;  %v1704_v31 = vadd.f32 1e-16, %v1694_v27  ;;  %v1813_v38 = vmul.f32 %v6365_v20, %v7387_v41 }
 0x95c   :  { %v1812_v32 = vmul.f32 %v6367_v29, %v1788_v2 }
 0x95d   :  { %6372 = vrcp.f32 %v1704_v31 }
 0x95e   :  { %5772 = vmatprep.mubr.msk.f32.mxu0 %vm215_vm0, %v1812_v32  ;;  %v1697_v17 = vpop.xlane.xlu1 %1696 }
 0x95f   :  { %v1705_v45 = vadd.f32 1e-16, %v1697_v17  ;;  %5773 = vmatmul.mubr.msk.f32.vlgmr.msra.gmra.mrb[16].mxu0 %vm215_vm0, %v1813_v38  ;;  %v6369_v51 = vpop.eup %6368 }
 0x960   :  { %6107 = vmatpush3.bf16.msk.msra.mxu0 %vm7090_vm8, %v7324_v60  ;;  %v1815_v61 = vmul.f32 %v6369_v51, %v7397_v26 }
 0x961   :  { %6374 = vrcp.f32 %v1705_v45  ;;  %6110 = vmatprep.subr.msk.bf16.mxu0 %vm7090_vm8, %v7338_v63 }
 0x962   :  { %v6371_v2 = vpop.eup %6370  ;;  %v1700_v35 = vpop.xlane.xlu0 %1699 }
 0x963   :  { %v1706_v41 = vadd.f32 1e-16, %v1700_v35  ;;  %v1814_v57 = vmul.f32 %v6371_v2, %v1790_v44 }
 0x964   :  { %6113 = vmatpush3.bf16.msk.msra.mxu0 %vm7090_vm8, %v7338_v63 }
 0x965   :  { %6376 = vrcp.f32 %v1706_v41  ;;  %5775 = vmatprep.mubr.msk.f32.mxu0 %vm215_vm0, %v1814_v57  ;;  %6120 = vmatprep.subr.bf16.mxu0 %v8216_v11 }
 0x966   :  { %5776 = vmatmul.mubr.msk.f32.gmra.mrb[18].mxu0 %vm215_vm0, %v1815_v61  ;;  %v1703_v60 = vpop.xlane.xlu1 %1702 }
 0x967   :  { %v6373_v22 = vpop.eup %6372  ;;  %v1707_v59 = vadd.f32 1e-16, %v1703_v60 }
 0x968   :  { %v1712_v0 = vmul.f32 %v6373_v22, %v1688_v56  ;;  %v5325_v56 = vld [vmem:[%s8187_s9] ss:$0 sm:$0xff]  ;;  %s5432_s9 = sld [smem:[#allocation17 + $0x3]] }
 0x969   :  { %6378 = vrcp.f32 %v1707_v59 }
 0x96a   :  { %5786 = vmatprep.mubr.msk.f32.mxu0 %vm215_vm0, %v1712_v0 }
 0x96b   :  { %v6375_v44 = vpop.eup %6374 }
 0x96c   :  { %v1713_v62 = vmul.f32 %v6375_v44, %v1689_v48 }
 0x96e   :  { %5787 = vmatmul.mubr.msk.f32.vlgmr.msra.gmra.mrb[16].mxu0 %vm215_vm0, %v1713_v62 }
 0x96f   :  { %v6377_v63 = vpop.eup %6376 }
 0x970   :  { %v1714_v26 = vmul.f32 %v6377_v63, %v1690_v3 }
 0x972   :  { %5789 = vmatprep.mubr.msk.f32.mxu0 %vm215_vm0, %v1714_v26 }
 0x973   :  { %v6379_v4 = vpop.eup %6378 }
 0x974   :  { %v1715_v5 = vmul.f32 %v6379_v4, %v1691_v28 }
 0x976   :  { %5790 = vmatmul.mubr.msk.f32.gmra.mrb[18].mxu0 %vm215_vm0, %v1715_v5 }
 0x977   :  { %5803 = vmatprep.mubr.msk.f32.mxu0 %vm6790_vm9, %v8214_v24 }
 0xa41   :  { %v5788_v25 = vpop.f32.mrb[16].mxu0 }
 0xa42   :  { %v2021_v6 = vadd.f32 %v5788_v25, %v5325_v56  ;;  %v1995_v48 = vpop.f32.mrb[17].mxu0 }
 0xa43   :  { %v2020_v7 = vadd.f32 %v5325_v56, %v1995_v48 }
 0xa44   :  { %v7446_v58 = vmax.f32 %v2021_v6, 0.0 }
 0xa45   :  { %v7448_v3 = vmax.f32 %v2020_v7, 0.0 }
 0xa46   :  { %v2031_v28 = vsel %vm313_vm1, %v7446_v58, inf  ;;  %v2037_v13 = vsel %vm313_vm1, %v7446_v58, -inf }
 0xa47   :  { %2032 = vmin.xlane.f32.xlu1 %v2031_v28  ;;  %v2028_v9 = vsel %vm313_vm1, %v7448_v3, inf  ;;  %v2034_v20 = vsel %vm313_vm1, %v7448_v3, -inf }
 0xa48   :  { %2029 = vmin.xlane.f32.xlu0 %v2028_v9 }
 0xa49   :  { %v5791_v10 = vpop.f32.mrb[18].mxu0 }
 0xa4a   :  { %v2023_v15 = vadd.f32 %v5791_v10, %v5325_v56  ;;  %v2005_v1 = vpop.f32.mrb[19].mxu0 }
 0xa4b   :  { %v2022_v8 = vadd.f32 %v5325_v56, %v2005_v1  ;;  %2038 = vmax.xlane.f32.xlu1 %v2037_v13 }
 0xa4c   :  { %v7458_v27 = vmax.f32 %v2023_v15, 0.0  ;;  %2035 = vmax.xlane.f32.xlu0 %v2034_v20 }
 0xa4d   :  { %v7460_v29 = vmax.f32 %v2022_v8, 0.0 }
 0xa4e   :  { %v2246_v31 = vsel %vm313_vm1, %v7458_v27, inf  ;;  %v2252_v38 = vsel %vm313_vm1, %v7458_v27, -inf }
 0xa4f   :  { %2247 = vmin.xlane.f32.xlu1 %v2246_v31  ;;  %v2243_v32 = vsel %vm313_vm1, %v7460_v29, inf  ;;  %v2249_v17 = vsel %vm313_vm1, %v7460_v29, -inf }
 0xa50   :  { %2244 = vmin.xlane.f32.xlu0 %v2243_v32  ;;  %v2458_v32 = vld [vmem:[%s8188_s10] sm:$0xff] }
 0xa53   :  { %2253 = vmax.xlane.f32.xlu1 %v2252_v38  ;;  %v2459_v38 = vld [vmem:[%s8188_s10 + $0x8] sm:$0xff] }
 0xa54   :  { %2250 = vmax.xlane.f32.xlu0 %v2249_v17 }
 0xad4   :  { %v2033_v45 = vpop.xlane.xlu1 %2032 }
 0xad5   :  { %v2030_v51 = vpop.xlane.xlu0 %2029  ;;  %v2041_v5 = vsub.f32 %v7446_v58, %v2033_v45 }
 0xad6   :  { %v2040_v25 = vsub.f32 %v7448_v3, %v2030_v51 }
 0xad8   :  { %v2039_v2 = vpop.xlane.xlu1 %2038 }
 0xad9   :  { %v2043_v35 = vsub.f32 %v2039_v2, %v2033_v45  ;;  %v2036_v41 = vpop.xlane.xlu0 %2035 }
 0xada   :  { %v2042_v57 = vsub.f32 %v2036_v41, %v2030_v51 }
 0xadb   :  { %v2045_v61 = vadd.f32 1e-12, %v2043_v35  ;;  %v6134_v35 = vpack.c.bf16 %v2459_v38, %v2458_v32 }
 0xadc   :  { %v2044_v60 = vadd.f32 1e-12, %v2042_v57  ;;  %v2248_v22 = vpop.xlane.xlu1 %2247  ;;  %v2461_v57 = vld [vmem:[#allocation12] sm:$0x3] }
 0xadd   :  { %6380 = vrcp.f32 %v2045_v61  ;;  %v2245_v59 = vpop.xlane.xlu0 %2244  ;;  %v2256_v1 = vsub.f32 %v7458_v27, %v2248_v22 }
 0xade   :  { %6382 = vrcp.f32 %v2044_v60  ;;  %v2255_v8 = vsub.f32 %v7460_v29, %v2245_v59 }
 0xae0   :  { %v2254_v0 = vpop.xlane.xlu1 %2253 }
 0xae1   :  { %v2258_v44 = vsub.f32 %v2254_v0, %v2248_v22  ;;  %v2251_v62 = vpop.xlane.xlu0 %2250 }
 0xae2   :  { %v2257_v63 = vsub.f32 %v2251_v62, %v2245_v59 }
 0xae3   :  { %v2260_v26 = vadd.f32 1e-12, %v2258_v44 }
 0xae4   :  { %v2259_v4 = vadd.f32 1e-12, %v2257_v63 }
 0xae5   :  { %6384 = vrcp.f32 %v2260_v26 }
 0xae6   :  { %6386 = vrcp.f32 %v2259_v4 }
 0xae7   :  { %v6381_v56 = vpop.eup %6380 }
 0xae8   :  { %v6383_v6 = vpop.eup %6382  ;;  %v2049_v48 = vmul.f32 %v6381_v56, %v2041_v5  ;;  %v2460_v5 = vld [vmem:[#allocation11] sm:$0x3] }
 0xae9   :  { %v2047_v7 = vmul.f32 %v6383_v6, %v2040_v25 }
 0xaea   :  { %v7472_v28 = vmul.f32 %v2049_v48, %v2049_v48 }
 0xaeb   :  { %5796 = vmatprep.mubr.msk.f32.mxu1 %vm313_vm1, %v2047_v7  ;;  %v7475_v9 = vmul.f32 %v2047_v7, %v2047_v7  ;;  %v6114_v10 = vpack.c.bf16 %v2049_v48, %v2047_v7 }
 0xaed   :  { %6116 = vmatprep.subr.msk.bf16.mxu1 %vm7063_vm5, %v6114_v10  ;;  %v6121_v15 = vpack.c.bf16 %v7472_v28, %v7475_v9 }
 0xaee   :  { %6119 = vmatpush3.bf16.xpose.msk.msra.mxu1 %vm7063_vm5, %v6114_v10 }
 0xaef   :  { %v6385_v13 = vpop.eup %6384  ;;  %6123 = vmatpush3.bf16.xpose.msk.msra.mxu0 %vm7063_vm5, %v6121_v15 }
 0xaf0   :  { %v6387_v20 = vpop.eup %6386  ;;  %v2264_v31 = vmul.f32 %v6385_v13, %v2256_v1  ;;  %6130 = vmatprep.subr.bf16.mxu0 %v8216_v11 }
 0xaf1   :  { %v2262_v17 = vmul.f32 %v6387_v20, %v2255_v8 }
 0xaf2   :  { %v7494_v45 = vmul.f32 %v2264_v31, %v2264_v31 }
 0xaf3   :  { %v6124_v51 = vpack.c.bf16 %v2264_v31, %v2262_v17  ;;  %v7496_v2 = vmul.f32 %v2262_v17, %v2262_v17 }
 0xaf5   :  { %5797 = vmatmul.mubr.msk.f32.vlgmr.msra.gmra.mrb[16].mxu1 %vm313_vm1, %v2049_v48  ;;  %6126 = vmatprep.subr.msk.bf16.mxu1 %vm7063_vm5, %v6124_v51  ;;  %v6131_v41 = vpack.c.bf16 %v7494_v45, %v7496_v2 }
 0xaf6   :  { %6129 = vmatpush3.bf16.xpose.msk.msra.mxu1 %vm7063_vm5, %v6124_v51  ;;  %5810 = vmatprep.mubr.msk.f32.mxu1 %vm313_vm1, %v2262_v17 }
 0xaf7   :  { %5804 = vmatmul.mubr.msk.f32.vlgmr.msra.gmra.mrb[20].mxu0 %vm313_vm1, %v8212_v49  ;;  %6135 = vmatprep.subr.bf16.mxu1 %v6134_v35 }
 0xaf8   :  { %6133 = vmatpush3.bf16.xpose.msk.msra.mxu0 %vm7063_vm5, %v6131_v41  ;;  %5817 = vmatprep.mubr.msk.f32.mxu0 %vm6790_vm9, %v8214_v24 }
 0xaf9   :  { %5830 = vmatprep.subr.msk.mxu0 %vm313_vm1, %v2461_v57 }
 0xafd   :  { %5811 = vmatmul.mubr.msk.f32.vlgmr.msra.gmra.mrb[18].mxu1 %vm313_vm1, %v2264_v31 }
 0xafe   :  { %6137 = vmatpush3.bf16.msra.mxu1 %v6134_v35  ;;  %5824 = vmatprep.mubr.msk.f32.mxu1 %vm313_vm1, %v7448_v3 }
 0xaff   :  { %5818 = vmatmul.mubr.msk.f32.vlgmr.msra.gmra.mrb[22].mxu0 %vm313_vm1, %v8212_v49  ;;  %6138 = vmatprep.subr.bf16.mxu1 %v8216_v11 }
 0xb00   :  { %5831 = vmatpush3.xpose.msk.msra.mxu0 %vm313_vm1, %v2461_v57 }
 0xb01   :  { %5825 = vmatmul.mubr.msk.f32.vlgmr.msra.gmra.mrb[20].mxu1 %vm313_vm1, %v7446_v58 }
 0xb02   :  { %5827 = vmatprep.mubr.msk.f32.mxu1 %vm313_vm1, %v7460_v29 }
 0xb05   :  { %5828 = vmatmul.mubr.msk.f32.gmra.mrb[22].mxu1 %vm313_vm1, %v7458_v27 }
 0xb06   :  { %5846 = vmatprep.mubr.msk.f32.mxu1 %vm6790_vm9, %v8214_v24 }
 0xbc8   :  { %v7528_v3 = vpop.f32.mrb[16].mxu1 }
 0xbc9   :  { %v7530_v61 = vpop.f32.mrb[17].mxu1 }
 0xbca   :  { %v7532_v60 = vpop.f32.mrb[20].mxu0 }
 0xbcb   :  { %v5805_v58 = vpop.f32.mrb[21].mxu0 }
 0xbd0   :  { %v7534_v22 = vpop.f32.mrb[18].mxu1 }
 0xbd1   :  { %v7536_v29 = vpop.f32.mrb[19].mxu1 }
 0xbd2   :  { %v7538_v27 = vpop.f32.mrb[22].mxu0 }
 0xbd3   :  { %v5819_v59 = vpop.f32.mrb[23].mxu0 }
 0xbd4   :  { %v5826_v0 = vpop.f32.mrb[20].mxu1 }
 0xbd5   :  { %v2541_v44 = vpop.f32.mrb[21].mxu1 }
 0xbd6   :  { %v7540_v62 = vpack.c.bf16 %v5826_v0, %v2541_v44  ;;  %5832 = vmatprep.mubr.msk.f32.mxu0 %vm313_vm1, %v2541_v44 }
 0xbd7   :  { %5833 = vmatmul.mubr.msk.f32.vlgmr.msra.gmra.mrb[24].mxu0 %vm313_vm1, %v5826_v0 }
 0xbd8   :  { %v5829_v63 = vpop.f32.mrb[22].mxu1  ;;  %6141 = vmatpush3.bf16.xpose.msk.msra.mxu1 %vm7063_vm5, %v7540_v62  ;;  %6148 = vmatprep.subr.msk.bf16.mxu0 %vm7067_vm6, %v7540_v62 }
 0xbd9   :  { %v2551_v26 = vpop.f32.mrb[23].mxu1  ;;  %6151 = vmatpush3.bf16.msk.msra.mxu0 %vm7067_vm6, %v7540_v62  ;;  %6142 = vmatprep.subr.bf16.mxu1 %v8216_v11 }
 0xbda   :  { %v7554_v4 = vpack.c.bf16 %v5829_v63, %v2551_v26  ;;  %5835 = vmatprep.mubr.msk.f32.mxu0 %vm313_vm1, %v2551_v26 }
 0xbdb   :  { %5836 = vmatmul.mubr.msk.f32.gmra.mrb[26].mxu0 %vm313_vm1, %v5829_v63 }
 0xbdc   :  { %6154 = vmatprep.subr.msk.bf16.mxu0 %vm7067_vm6, %v7554_v4 }
 0xbdd   :  { %6157 = vmatpush3.bf16.msk.msra.mxu0 %vm7067_vm6, %v7554_v4 }
 0xbde   :  { %6160 = vmatprep.subr.msk.bf16.mxu0 %vm7090_vm8, %v7540_v62 }
 0xbe0   :  { %6145 = vmatpush3.bf16.xpose.msk.msra.mxu1 %vm7063_vm5, %v7554_v4 }
 0xbe7   :  { %5847 = vmatmul.mubr.msk.f32.vlgmr.msra.gmra.mrb[24].mxu1 %vm313_vm1, %v2460_v5 }
 0xcaa   :  { %v5834_v56 = vpop.f32.mrb[24].mxu0 }
 0xcab   :  { %2842 = vperm.xlu1 %6302, %v5834_v56   ;;  %v2641_v25 = vpop.f32.mrb[25].mxu0 }
 0xcac   :  { %2838 = vperm.xlu0 %6299, %v2641_v25  }
 0xcae   :  { %v5837_v6 = vpop.f32.mrb[26].mxu0 }
 0xcaf   :  { %v2651_v48 = vpop.f32.mrb[27].mxu0 }
 0xcb0   :  { %2850 = vperm.xlu0 %6299, %v5837_v6   ;;  %2846 = vperm.xlu1 %6302, %v2651_v48  }
 0xcb4   :  { %6304 = vset.pattern.permute.xlu0 %v8211_v30  ;;  %6303 = vset.pattern.permute.xlu1 %v8211_v30 }
 0xcb5   :  { %2740 = vperm.xlu0 %6304, %v5834_v56   ;;  %2735 = vperm.xlu1 %6303, %v2641_v25  }
 0xcb9   :  { %2745 = vperm.xlu1 %6303, %v2651_v48   ;;  %6305 = vset.pattern.permute.xlu0 %v6789_v12 }
 0xcba   :  { %v2729_v7 = vpop.f32.mrb[24].mxu1 }
 0xcbb   :  { %v5848_v10 = vpop.f32.mrb[25].mxu1  ;;  %v2856_v15 = vrot.slane %v2729_v7, %v7116_v34  ;;  %v2756_v26 = vrot.slane %v2729_v7, %v7126_v40 }
 0xcbd   :  { %2750 = vperm.xlu1 %6303, %v5837_v6  }
 0xcc1   :  { %6306 = vset.pattern.permute.xlu1 %v6789_v12 }
 0xd2a   :  { %v2843_v1 = vpop.permute.xlu1 %2842 }
 0xd2b   :  { %v2858_v13 = vadd.f32 %v2856_v15, %v2843_v1  ;;  %v2839_v8 = vpop.permute.xlu0 %2838 }
 0xd2c   :  { %v2857_v20 = vadd.f32 %v2856_v15, %v2839_v8 }
 0xd2d   :  { %v2866_v31 = vmul.f32 0.2, %v2858_v13  ;;  %vm2862_vm4 = vcmp.gt.f32.partialorder %v2858_v13, 0.0 }
 0xd2e   :  { %v2865_v32 = vmul.f32 0.2, %v2857_v20  ;;  %vm2861_vm7 = vcmp.gt.f32.partialorder %v2857_v20, 0.0 }
 0xd2f   :  { %v2851_v38 = vpop.permute.xlu0 %2850  ;;  %v2847_v17 = vpop.permute.xlu1 %2846  ;;  %v2870_v51 = vsel %vm2862_vm4, %v2858_v13, %v2866_v31 }
 0xd30   :  { %v2860_v35 = vadd.f32 %v2856_v15, %v2851_v38  ;;  %v2859_v41 = vadd.f32 %v2856_v15, %v2847_v17  ;;  %v2874_v57 = vsel %vm201_vm10, %v2870_v51, -1e+30  ;;  %v2869_v58 = vsel %vm2861_vm7, %v2857_v20, %v2865_v32 }
 0xd31   :  { %v2880_v12 = vsel %vm215_vm0, %v2874_v57, -inf  ;;  %v2873_v59 = vsel %vm200_vm12, %v2869_v58, -1e+30 }
 0xd32   :  { %v2868_v0 = vmul.f32 0.2, %v2860_v35  ;;  %v2867_v44 = vmul.f32 0.2, %v2859_v41  ;;  %2881 = vmax.xlane.f32.xlu1 %v2880_v12  ;;  %v2877_v63 = vsel %vm215_vm0, %v2873_v59, -inf  ;;  %vm2863_vm11 = vcmp.gt.f32.partialorder %v2859_v41, 0.0 }
 0xd33   :  { %2878 = vmax.xlane.f32.xlu0 %v2877_v63  ;;  %vm2864_vm13 = vcmp.gt.f32.partialorder %v2860_v35, 0.0 }
 0xd34   :  { %v2741_v5 = vpop.permute.xlu0 %2740  ;;  %v2736_v56 = vpop.permute.xlu1 %2735  ;;  %v2871_v25 = vsel %vm2863_vm11, %v2859_v41, %v2867_v44  ;;  %v2872_v6 = vsel %vm2864_vm13, %v2860_v35, %v2868_v0 }
 0xd35   :  { %v2758_v48 = vadd.f32 %v2756_v26, %v2741_v5  ;;  %v2757_v10 = vadd.f32 %v2756_v26, %v2736_v56  ;;  %v2875_v15 = vsel %vm202_vm14, %v2871_v25, -1e+30  ;;  %v2876_v13 = vsel %vm203_vm2, %v2872_v6, -1e+30 }
 0xd36   :  { %v2883_v1 = vsel %vm215_vm0, %v2875_v15, -inf  ;;  %v2886_v17 = vsel %vm215_vm0, %v2876_v13, -inf }
 0xd37   :  { %v2766_v8 = vmul.f32 0.2, %v2758_v48  ;;  %v2765_v20 = vmul.f32 0.2, %v2757_v10  ;;  %2884 = vmax.xlane.f32.xlu0 %v2883_v1  ;;  %vm2761_vm15 = vcmp.gt.f32.partialorder %v2757_v10, 0.0  ;;  %vm2762_vm3 = vcmp.gt.f32.partialorder %v2758_v48, 0.0 }
 0xd38   :  { %v2746_v7 = vpop.permute.xlu1 %2745 }
 0xd39   :  { %v2759_v31 = vadd.f32 %v2756_v26, %v2746_v7  ;;  %v2769_v32 = vsel %vm2761_vm15, %v2757_v10, %v2765_v20  ;;  %v2770_v38 = vsel %vm2762_vm3, %v2758_v48, %v2766_v8 }
 0xd3a   :  { %v2773_v51 = vsel %vm200_vm12, %v2769_v32, -1e+30  ;;  %v2774_v58 = vsel %vm201_vm10, %v2770_v38, -1e+30 }
 0xd3b   :  { %v2767_v35 = vmul.f32 0.2, %v2759_v31  ;;  %2887 = vmax.xlane.f32.xlu0 %v2886_v17  ;;  %v2777_v41 = vsel %vm215_vm0, %v2773_v51, -inf  ;;  %vm2763_vm4 = vcmp.gt.f32.partialorder %v2759_v31, 0.0  ;;  %v2780_v63 = vsel %vm215_vm0, %v2774_v58, -inf }
 0xd3c   :  { %2778 = vmax.xlane.f32.xlu1 %v2777_v41  ;;  %v2751_v12 = vpop.permute.xlu1 %2750 }
 0xd3d   :  { %v2760_v0 = vadd.f32 %v2756_v26, %v2751_v12  ;;  %v2771_v44 = vsel %vm2763_vm4, %v2759_v31, %v2767_v35 }
 0xd3e   :  { %v2775_v5 = vsel %vm202_vm14, %v2771_v44, -1e+30 }
 0xd3f   :  { %v2768_v56 = vmul.f32 0.2, %v2760_v0  ;;  %2781 = vmax.xlane.f32.xlu0 %v2780_v63  ;;  %v2783_v25 = vsel %vm215_vm0, %v2775_v5, -inf  ;;  %vm2764_vm7 = vcmp.gt.f32.partialorder %v2760_v0, 0.0 }
 0xd40   :  { %2784 = vmax.xlane.f32.xlu1 %v2783_v25 }
 0xd41   :  { %v2772_v6 = vsel %vm2764_vm7, %v2760_v0, %v2768_v56 }
 0xd42   :  { %v2776_v48 = vsel %vm203_vm2, %v2772_v6, -1e+30 }
 0xd43   :  { %v2786_v10 = vsel %vm215_vm0, %v2776_v48, -inf }
 0xd44   :  { %2787 = vmax.xlane.f32.xlu0 %v2786_v10 }
 0xdbf   :  { %v2882_v26 = vpop.xlane.xlu1 %2881 }
 0xdc0   :  { %v2890_v1 = vsub.f32 %v2874_v57, %v2882_v26  ;;  %v2879_v8 = vpop.xlane.xlu0 %2878 }
 0xdc1   :  { %v2889_v20 = vsub.f32 %v2873_v59, %v2879_v8 }
 0xdc2   :  { %v2895_v7 = vmul.f32 1.442695, %v2890_v1 }
 0xdc3   :  { %v2893_v31 = vmul.f32 1.442695, %v2889_v20 }
 0xdc4   :  { %6388 = vpow2.f32 %v2895_v7  ;;  %v2885_v32 = vpop.xlane.xlu0 %2884 }
 0xdc5   :  { %6390 = vpow2.f32 %v2893_v31  ;;  %v2891_v38 = vsub.f32 %v2875_v15, %v2885_v32  ;;  %v7604_v15 = vld [vmem:[%s8245_s22 + $0x8] sm:$0xff] }
 0xdc7   :  { %v2897_v17 = vmul.f32 1.442695, %v2891_v38 }
 0xdc8   :  { %v2888_v35 = vpop.xlane.xlu0 %2887 }
 0xdc9   :  { %6392 = vpow2.f32 %v2897_v17  ;;  %v2892_v41 = vsub.f32 %v2876_v13, %v2888_v35  ;;  %v2779_v12 = vpop.xlane.xlu1 %2778  ;;  %v7625_v35 = vld [vmem:[%s8245_s22 + $0x10] sm:$0xff] }
 0xdca   :  { %v2789_v0 = vsub.f32 %v2773_v51, %v2779_v12  ;;  %v7610_v51 = vld [vmem:[%s8245_s22] sm:$0xff] }
 0xdcb   :  { %v2899_v44 = vmul.f32 1.442695, %v2892_v41 }
 0xdcc   :  { %v2793_v63 = vmul.f32 1.442695, %v2789_v0  ;;  %v2782_v56 = vpop.xlane.xlu0 %2781 }
 0xdcd   :  { %6394 = vpow2.f32 %v2899_v44  ;;  %v2790_v25 = vsub.f32 %v2774_v58, %v2782_v56  ;;  %v2785_v57 = vpop.xlane.xlu1 %2784 }
 0xdce   :  { %v6389_v6 = vpop.eup %6388  ;;  %6396 = vpow2.f32 %v2793_v63  ;;  %v2791_v59 = vsub.f32 %v2775_v5, %v2785_v57  ;;  %v7634_v63 = vld [vmem:[%s8245_s22 + $0x18] sm:$0xff] }
 0xdcf   :  { %v6391_v10 = vpop.eup %6390  ;;  %v2795_v26 = vmul.f32 1.442695, %v2790_v25  ;;  %v2902_v13 = vmul.f32 %v7604_v15, %v6389_v6 }
 0xdd0   :  { %v2797_v1 = vmul.f32 1.442695, %v2791_v59  ;;  %v2901_v58 = vmul.f32 %v7610_v51, %v6391_v10 }
 0xdd1   :  { %6398 = vpow2.f32 %v2795_v26  ;;  %v2788_v8 = vpop.xlane.xlu0 %2787  ;;  %v7615_v5 = vsel %vm201_vm10, %v2902_v13, 0.0 }
 0xdd2   :  { %6400 = vpow2.f32 %v2797_v1  ;;  %v2792_v20 = vsub.f32 %v2776_v48, %v2788_v8  ;;  %v2912_v7 = vsel %vm215_vm0, %v7615_v5, 0.0  ;;  %v2905_v31 = vsel %vm200_vm12, %v2901_v58, 0.0 }
 0xdd3   :  { %v6393_v32 = vpop.eup %6392  ;;  %2913 = vadd.xlane.f32.xlu0 %v2912_v7  ;;  %v2909_v38 = vsel %vm215_vm0, %v2905_v31, 0.0 }
 0xdd4   :  { %v2799_v17 = vmul.f32 1.442695, %v2792_v20  ;;  %2910 = vadd.xlane.f32.xlu1 %v2909_v38  ;;  %v2903_v41 = vmul.f32 %v7625_v35, %v6393_v32 }
 0xdd6   :  { %6402 = vpow2.f32 %v2799_v17  ;;  %v2907_v48 = vsel %vm202_vm14, %v2903_v41, 0.0 }
 0xdd7   :  { %v6395_v12 = vpop.eup %6394  ;;  %v2915_v0 = vsel %vm215_vm0, %v2907_v48, 0.0 }
 0xdd8   :  { %v6397_v44 = vpop.eup %6396  ;;  %2916 = vadd.xlane.f32.xlu1 %v2915_v0  ;;  %v2904_v56 = vmul.f32 %v7634_v63, %v6395_v12 }
 0xdd9   :  { %v2801_v25 = vmul.f32 %v7610_v51, %v6397_v44 }
 0xdda   :  { %v2908_v57 = vsel %vm203_vm2, %v2904_v56, 0.0 }
 0xddb   :  { %v6399_v6 = vpop.eup %6398  ;;  %v2918_v59 = vsel %vm215_vm0, %v2908_v57, 0.0  ;;  %v2805_v10 = vsel %vm200_vm12, %v2801_v25, 0.0 }
 0xddc   :  { %v6401_v26 = vpop.eup %6400  ;;  %2919 = vadd.xlane.f32.xlu0 %v2918_v59  ;;  %v2809_v13 = vsel %vm215_vm0, %v2805_v10, 0.0  ;;  %v2802_v1 = vmul.f32 %v7604_v15, %v6399_v6 }
 0xddd   :  { %2810 = vadd.xlane.f32.xlu1 %v2809_v13  ;;  %v2803_v58 = vmul.f32 %v7625_v35, %v6401_v26 }
 0xdde   :  { %v2806_v8 = vsel %vm201_vm10, %v2802_v1, 0.0 }
 0xddf   :  { %v2812_v20 = vsel %vm215_vm0, %v2806_v8, 0.0  ;;  %v2807_v7 = vsel %vm202_vm14, %v2803_v58, 0.0 }
 0xde0   :  { %v6403_v32 = vpop.eup %6402  ;;  %2813 = vadd.xlane.f32.xlu0 %v2812_v20  ;;  %v2815_v38 = vsel %vm215_vm0, %v2807_v7, 0.0 }
 0xde1   :  { %2816 = vadd.xlane.f32.xlu1 %v2815_v38  ;;  %v2804_v17 = vmul.f32 %v7634_v63, %v6403_v32 }
 0xde3   :  { %v2808_v41 = vsel %vm203_vm2, %v2804_v17, 0.0 }
 0xde4   :  { %v2818_v12 = vsel %vm215_vm0, %v2808_v41, 0.0 }
 0xde5   :  { %2819 = vadd.xlane.f32.xlu0 %v2818_v12 }
 0xe60   :  { %v2914_v0 = vpop.xlane.xlu0 %2913 }
 0xe61   :  { %v2922_v44 = vadd.f32 1e-16, %v2914_v0  ;;  %v2911_v56 = vpop.xlane.xlu1 %2910 }
 0xe62   :  { %v2921_v25 = vadd.f32 1e-16, %v2911_v56 }
 0xe63   :  { %6404 = vrcp.f32 %v2922_v44 }
 0xe64   :  { %6406 = vrcp.f32 %v2921_v25 }
 0xe65   :  { %v2917_v6 = vpop.xlane.xlu1 %2916 }
 0xe66   :  { %v2923_v59 = vadd.f32 1e-16, %v2917_v6 }
 0xe68   :  { %6408 = vrcp.f32 %v2923_v59 }
 0xe69   :  { %v2920_v26 = vpop.xlane.xlu0 %2919 }
 0xe6a   :  { %v2924_v13 = vadd.f32 1e-16, %v2920_v26  ;;  %v2811_v1 = vpop.xlane.xlu1 %2810 }
 0xe6b   :  { %v2821_v58 = vadd.f32 1e-16, %v2811_v1 }
 0xe6c   :  { %6410 = vrcp.f32 %v2924_v13 }
 0xe6d   :  { %v6405_v20 = vpop.eup %6404  ;;  %6412 = vrcp.f32 %v2821_v58  ;;  %v2814_v32 = vpop.xlane.xlu0 %2813 }
 0xe6e   :  { %v6407_v38 = vpop.eup %6406  ;;  %v2822_v17 = vadd.f32 1e-16, %v2814_v32  ;;  %v2817_v12 = vpop.xlane.xlu1 %2816  ;;  %v2930_v56 = vmul.f32 %v6405_v20, %v7615_v5 }
 0xe6f   :  { %v2823_v30 = vadd.f32 1e-16, %v2817_v12  ;;  %v2929_v0 = vmul.f32 %v6407_v38, %v2905_v31 }
 0xe70   :  { %6414 = vrcp.f32 %v2822_v17 }
 0xe71   :  { %6416 = vrcp.f32 %v2823_v30  ;;  %5857 = vmatprep.mubr.msk.f32.mxu0 %vm215_vm0, %v2929_v0 }
 0xe72   :  { %v6409_v44 = vpop.eup %6408  ;;  %v2820_v25 = vpop.xlane.xlu0 %2819  ;;  %5858 = vmatmul.mubr.msk.f32.vlgmr.msra.gmra.mrb[28].mxu0 %vm215_vm0, %v2930_v56 }
 0xe73   :  { %v2824_v6 = vadd.f32 1e-16, %v2820_v25  ;;  %6163 = vmatpush3.bf16.msk.msra.mxu0 %vm7090_vm8, %v7540_v62  ;;  %v2931_v59 = vmul.f32 %v6409_v44, %v2907_v48 }
 0xe74   :  { %6166 = vmatprep.subr.msk.bf16.mxu0 %vm7090_vm8, %v7554_v4 }
 0xe75   :  { %6418 = vrcp.f32 %v2824_v6  ;;  %5860 = vmatprep.mubr.msk.f32.mxu0 %vm215_vm0, %v2931_v59 }
 0xe76   :  { %v6411_v30 = vpop.eup %6410 }
 0xe77   :  { %v6413_v5 = vpop.eup %6412  ;;  %6169 = vmatpush3.bf16.msk.msra.mxu0 %vm7090_vm8, %v7554_v4  ;;  %v2932_v31 = vmul.f32 %v6411_v30, %v2908_v57  ;;  %v5370_v4 = vld [vmem:[%s8191_s13] ss:$0 sm:$0xff] }
 0xe78   :  { %v2829_v26 = vmul.f32 %v6413_v5, %v2805_v10  ;;  %6176 = vmatprep.subr.bf16.mxu0 %v8216_v11 }
 0xe79   :  { %5861 = vmatmul.mubr.msk.f32.gmra.mrb[30].mxu0 %vm215_vm0, %v2932_v31 }
 0xe7a   :  { %v6415_v62 = vpop.eup %6414  ;;  %5871 = vmatprep.mubr.msk.f32.mxu0 %vm215_vm0, %v2829_v26 }
 0xe7b   :  { %v6417_v48 = vpop.eup %6416  ;;  %v2830_v13 = vmul.f32 %v6415_v62, %v2806_v8 }
 0xe7c   :  { %v2831_v1 = vmul.f32 %v6417_v48, %v2807_v7 }
 0xe7d   :  { %5872 = vmatmul.mubr.msk.f32.vlgmr.msra.gmra.mrb[28].mxu0 %vm215_vm0, %v2830_v13 }
 0xe7e   :  { %5874 = vmatprep.mubr.msk.f32.mxu0 %vm215_vm0, %v2831_v1 }
 0xe7f   :  { %v6419_v58 = vpop.eup %6418 }
 0xe80   :  { %v2832_v20 = vmul.f32 %v6419_v58, %v2808_v41 }
 0xe82   :  { %5875 = vmatmul.mubr.msk.f32.gmra.mrb[30].mxu0 %vm215_vm0, %v2832_v20 }
 0xe83   :  { %5888 = vmatprep.mubr.msk.f32.mxu0 %vm6790_vm9, %v8214_v24 }
 0xf50   :  { %v5873_v57 = vpop.f32.mrb[28].mxu0 }
 0xf51   :  { %v3138_v10 = vadd.f32 %v5873_v57, %v5370_v4  ;;  %v3112_v32 = vpop.f32.mrb[29].mxu0 }
 0xf52   :  { %v3137_v8 = vadd.f32 %v5370_v4, %v3112_v32 }
 0xf53   :  { %v7680_v7 = vmax.f32 %v3138_v10, 0.0 }
 0xf54   :  { %v7682_v38 = vmax.f32 %v3137_v8, 0.0 }
 0xf55   :  { %v5876_v17 = vpop.f32.mrb[30].mxu0  ;;  %v3148_v41 = vsel %vm313_vm1, %v7680_v7, inf  ;;  %v3154_v6 = vsel %vm313_vm1, %v7680_v7, -inf }
 0xf56   :  { %v3140_v12 = vadd.f32 %v5876_v17, %v5370_v4  ;;  %3149 = vmin.xlane.f32.xlu0 %v3148_v41  ;;  %v3122_v0 = vpop.f32.mrb[31].mxu0  ;;  %v3145_v56 = vsel %vm313_vm1, %v7682_v38, inf  ;;  %v3151_v30 = vsel %vm313_vm1, %v7682_v38, -inf }
 0xf57   :  { %v3139_v44 = vadd.f32 %v5370_v4, %v3122_v0  ;;  %3146 = vmin.xlane.f32.xlu1 %v3145_v56 }
 0xf58   :  { %v7688_v25 = vmax.f32 %v3140_v12, 0.0 }
 0xf59   :  { %v7692_v59 = vmax.f32 %v3139_v44, 0.0 }
 0xf5a   :  { %3155 = vmax.xlane.f32.xlu0 %v3154_v6  ;;  %v3363_v5 = vsel %vm313_vm1, %v7688_v25, inf  ;;  %v3369_v26 = vsel %vm313_vm1, %v7688_v25, -inf }
 0xf5b   :  { %3152 = vmax.xlane.f32.xlu1 %v3151_v30  ;;  %v3360_v31 = vsel %vm313_vm1, %v7692_v59, inf  ;;  %v3366_v62 = vsel %vm313_vm1, %v7692_v59, -inf }
 0xf5e   :  { %3364 = vmin.xlane.f32.xlu0 %v3363_v5 }
 0xf5f   :  { %3361 = vmin.xlane.f32.xlu1 %v3360_v31 }
 0xf62   :  { %3370 = vmax.xlane.f32.xlu0 %v3369_v26 }
 0xf63   :  { %3367 = vmax.xlane.f32.xlu1 %v3366_v62 }
 0xfe3   :  { %v3150_v48 = vpop.xlane.xlu0 %3149 }
 0xfe4   :  { %v3147_v13 = vpop.xlane.xlu1 %3146  ;;  %v3158_v6 = vsub.f32 %v7680_v7, %v3150_v48 }
 0xfe5   :  { %v3157_v5 = vsub.f32 %v7682_v38, %v3147_v13 }
 0xfe7   :  { %v3156_v1 = vpop.xlane.xlu0 %3155 }
 0xfe8   :  { %v3160_v58 = vsub.f32 %v3156_v1, %v3150_v48  ;;  %v3153_v20 = vpop.xlane.xlu1 %3152 }
 0xfe9   :  { %v3159_v4 = vsub.f32 %v3153_v20, %v3147_v13 }
 0xfea   :  { %v3162_v57 = vadd.f32 1e-12, %v3160_v58 }
 0xfeb   :  { %v3161_v10 = vadd.f32 1e-12, %v3159_v4  ;;  %v3365_v32 = vpop.xlane.xlu0 %3364 }
 0xfec   :  { %6420 = vrcp.f32 %v3162_v57  ;;  %v3362_v8 = vpop.xlane.xlu1 %3361  ;;  %v3373_v4 = vsub.f32 %v7688_v25, %v3365_v32 }
 0xfed   :  { %6422 = vrcp.f32 %v3161_v10  ;;  %v3372_v57 = vsub.f32 %v7692_v59, %v3362_v8 }
 0xfef   :  { %v3371_v17 = vpop.xlane.xlu0 %3370 }
 0xff0   :  { %v3375_v41 = vsub.f32 %v3371_v17, %v3365_v32  ;;  %v3368_v12 = vpop.xlane.xlu1 %3367  ;;  %v3576_v32 = vld [vmem:[%s8192_s14 + $0x8] sm:$0xff] }
 0xff1   :  { %v3374_v0 = vsub.f32 %v3368_v12, %v3362_v8 }
 0xff2   :  { %v3377_v56 = vadd.f32 1e-12, %v3375_v41  ;;  %v3575_v41 = vld [vmem:[%s8192_s14] sm:$0xff] }
 0xff3   :  { %v3376_v44 = vadd.f32 1e-12, %v3374_v0 }
 0xff4   :  { %6424 = vrcp.f32 %v3377_v56 }
 0xff5   :  { %6426 = vrcp.f32 %v3376_v44  ;;  %v6190_v44 = vpack.c.bf16 %v3576_v32, %v3575_v41 }
 0xff6   :  { %v6421_v30 = vpop.eup %6420 }
 0xff7   :  { %v6423_v31 = vpop.eup %6422  ;;  %v3166_v26 = vmul.f32 %v6421_v30, %v3158_v6  ;;  %v3578_v30 = vld [vmem:[#allocation15] sm:$0x3] }
 0xff8   :  { %v3164_v62 = vmul.f32 %v6423_v31, %v3157_v5 }
 0xff9   :  { %v7706_v1 = vmul.f32 %v3166_v26, %v3166_v26 }
 0xffa   :  { %5881 = vmatprep.mubr.msk.f32.mxu1 %vm313_vm1, %v3164_v62  ;;  %v7709_v58 = vmul.f32 %v3164_v62, %v3164_v62  ;;  %v6170_v20 = vpack.c.bf16 %v3166_v26, %v3164_v62 }
 0xffc   :  { %6172 = vmatprep.subr.msk.bf16.mxu1 %vm7063_vm5, %v6170_v20  ;;  %v6177_v48 = vpack.c.bf16 %v7706_v1, %v7709_v58 }
 0xffd   :  { %6175 = vmatpush3.bf16.xpose.msk.msra.mxu1 %vm7063_vm5, %v6170_v20 }
 0xffe   :  { %v6425_v13 = vpop.eup %6424  ;;  %6179 = vmatpush3.bf16.xpose.msk.msra.mxu0 %vm7063_vm5, %v6177_v48 }
 0xfff   :  { %v6427_v10 = vpop.eup %6426  ;;  %v3381_v17 = vmul.f32 %v6425_v13, %v3373_v4  ;;  %6186 = vmatprep.subr.bf16.mxu0 %v8216_v11 }
0x1000   :  { %v3379_v12 = vmul.f32 %v6427_v10, %v3372_v57 }
0x1001   :  { %v7728_v0 = vmul.f32 %v3381_v17, %v3381_v17 }
0x1002   :  { %v6180_v56 = vpack.c.bf16 %v3381_v17, %v3379_v12  ;;  %v7730_v8 = vmul.f32 %v3379_v12, %v3379_v12 }
0x1004   :  { %5882 = vmatmul.mubr.msk.f32.vlgmr.msra.gmra.mrb[26].mxu1 %vm313_vm1, %v3166_v26  ;;  %6182 = vmatprep.subr.msk.bf16.mxu1 %vm7063_vm5, %v6180_v56  ;;  %v6187_v6 = vpack.c.bf16 %v7728_v0, %v7730_v8 }
0x1005   :  { %6185 = vmatpush3.bf16.xpose.msk.msra.mxu1 %vm7063_vm5, %v6180_v56  ;;  %5895 = vmatprep.mubr.msk.f32.mxu1 %vm313_vm1, %v3379_v12 }
0x1006   :  { %5889 = vmatmul.mubr.msk.f32.vlgmr.msra.gmra.mrb[32].mxu0 %vm313_vm1, %v8212_v49  ;;  %6191 = vmatprep.subr.bf16.mxu1 %v6190_v44 }
0x1007   :  { %6189 = vmatpush3.bf16.xpose.msk.msra.mxu0 %vm7063_vm5, %v6187_v6  ;;  %5902 = vmatprep.mubr.msk.f32.mxu0 %vm6790_vm9, %v8214_v24 }
0x1008   :  { %5915 = vmatprep.subr.msk.mxu0 %vm313_vm1, %v3578_v30 }
0x100c   :  { %5896 = vmatmul.mubr.msk.f32.vlgmr.msra.gmra.mrb[28].mxu1 %vm313_vm1, %v3381_v17  ;;  %v3577_v17 = vld [vmem:[#allocation14] sm:$0x3] }
0x100d   :  { %6193 = vmatpush3.bf16.msra.mxu1 %v6190_v44  ;;  %5909 = vmatprep.mubr.msk.f32.mxu1 %vm313_vm1, %v7682_v38 }
0x100e   :  { %5903 = vmatmul.mubr.msk.f32.vlgmr.msra.gmra.mrb[34].mxu0 %vm313_vm1, %v8212_v49  ;;  %6194 = vmatprep.subr.bf16.mxu1 %v8216_v11 }
0x100f   :  { %5916 = vmatpush3.xpose.msk.msra.mxu0 %vm313_vm1, %v3578_v30 }
0x1010   :  { %5910 = vmatmul.mubr.msk.f32.vlgmr.msra.gmra.mrb[30].mxu1 %vm313_vm1, %v7680_v7 }
0x1011   :  { %5912 = vmatprep.mubr.msk.f32.mxu1 %vm313_vm1, %v7692_v59 }
0x1014   :  { %5913 = vmatmul.mubr.msk.f32.gmra.mrb[32].mxu1 %vm313_vm1, %v7688_v25 }
0x1015   :  { %5931 = vmatprep.mubr.msk.f32.mxu1 %vm6790_vm9, %v8214_v24 }
0x10d7   :  { %v7762_v38 = vpop.f32.mrb[26].mxu1 }
0x10d8   :  { %8248 = vst [vmem:[#allocation31_spill] sm:$0xff] %v7762_v38  ;;  %v7764_v5 = vpop.f32.mrb[27].mxu1 }
0x10d9   :  { %8249 = vst [vmem:[#allocation32_spill] sm:$0xff] %v7764_v5  ;;  %v7766_v31 = vpop.f32.mrb[32].mxu0 }
0x10da   :  { %8250 = vst [vmem:[#allocation33_spill] sm:$0xff] %v7766_v31  ;;  %v5890_v7 = vpop.f32.mrb[33].mxu0 }
0x10df   :  { %v7768_v26 = vpop.f32.mrb[28].mxu1 }
0x10e0   :  { %v7770_v59 = vpop.f32.mrb[29].mxu1 }
0x10e1   :  { %v7772_v25 = vpop.f32.mrb[34].mxu0 }
0x10e2   :  { %v5904_v62 = vpop.f32.mrb[35].mxu0 }
0x10e3   :  { %v5911_v20 = vpop.f32.mrb[30].mxu1 }
0x10e4   :  { %v3658_v48 = vpop.f32.mrb[31].mxu1 }
0x10e5   :  { %v7774_v4 = vpack.c.bf16 %v5911_v20, %v3658_v48  ;;  %5917 = vmatprep.mubr.msk.f32.mxu0 %vm313_vm1, %v3658_v48 }
0x10e6   :  { %5918 = vmatmul.mubr.msk.f32.vlgmr.msra.gmra.mrb[36].mxu0 %vm313_vm1, %v5911_v20 }
0x10e7   :  { %v5914_v13 = vpop.f32.mrb[32].mxu1  ;;  %6197 = vmatpush3.bf16.xpose.msk.msra.mxu1 %vm7063_vm5, %v7774_v4  ;;  %6204 = vmatprep.subr.msk.bf16.mxu0 %vm7067_vm6, %v7774_v4 }
0x10e8   :  { %v3668_v57 = vpop.f32.mrb[33].mxu1  ;;  %6207 = vmatpush3.bf16.msk.msra.mxu0 %vm7067_vm6, %v7774_v4  ;;  %6198 = vmatprep.subr.bf16.mxu1 %v8216_v11 }
0x10e9   :  { %v7788_v10 = vpack.c.bf16 %v5914_v13, %v3668_v57  ;;  %5920 = vmatprep.mubr.msk.f32.mxu0 %vm313_vm1, %v3668_v57 }
0x10ea   :  { %5921 = vmatmul.mubr.msk.f32.gmra.mrb[38].mxu0 %vm313_vm1, %v5914_v13 }
0x10eb   :  { %6210 = vmatprep.subr.msk.bf16.mxu0 %vm7067_vm6, %v7788_v10 }
0x10ec   :  { %6213 = vmatpush3.bf16.msk.msra.mxu0 %vm7067_vm6, %v7788_v10 }
0x10ed   :  { %6216 = vmatprep.subr.msk.bf16.mxu0 %vm7090_vm8, %v7774_v4 }
0x10ef   :  { %6201 = vmatpush3.bf16.xpose.msk.msra.mxu1 %vm7063_vm5, %v7788_v10 }
0x10f6   :  { %5932 = vmatmul.mubr.msk.f32.vlgmr.msra.gmra.mrb[34].mxu1 %vm313_vm1, %v3577_v17 }
0x11b9   :  { %v5919_v41 = vpop.f32.mrb[36].mxu0 }
0x11ba   :  { %3959 = vperm.xlu0 %6305, %v5919_v41   ;;  %v3758_v32 = vpop.f32.mrb[37].mxu0 }
0x11bb   :  { %3955 = vperm.xlu1 %6306, %v3758_v32  }
0x11bd   :  { %v5922_v12 = vpop.f32.mrb[38].mxu0 }
0x11be   :  { %v3768_v56 = vpop.f32.mrb[39].mxu0 }
0x11bf   :  { %3967 = vperm.xlu1 %6306, %v5922_v12  }
0x11c3   :  { %3963 = vperm.xlu1 %6306, %v3768_v56  }
0x11c7   :  { %6307 = vset.pattern.permute.xlu1 %v8251_v18 }
0x11c8   :  { %3852 = vperm.xlu1 %6307, %v3758_v32  }
0x11c9   :  { %v3846_v44 = vpop.f32.mrb[34].mxu1 }
0x11ca   :  { %v5933_v6 = vpop.f32.mrb[35].mxu1  ;;  %v3973_v30 = vrot.slane %v3846_v44, %v7116_v34 }
0x11cc   :  { %3857 = vperm.xlu1 %6307, %v5919_v41  }
0x11d0   :  { %3862 = vperm.xlu1 %6307, %v3768_v56  }
0x11d4   :  { %3867 = vperm.xlu1 %6307, %v5922_v12  }
0x1239   :  { %v3960_v7 = vpop.permute.xlu0 %3959 }
0x123a   :  { %v3975_v62 = vadd.f32 %v3973_v30, %v3960_v7  ;;  %v3956_v20 = vpop.permute.xlu1 %3955 }
0x123b   :  { %v3974_v48 = vadd.f32 %v3973_v30, %v3956_v20 }
0x123c   :  { %v3983_v13 = vmul.f32 0.2, %v3975_v62  ;;  %vm3979_vm6 = vcmp.gt.f32.partialorder %v3975_v62, 0.0 }
0x123d   :  { %vm3978_vm11 = vcmp.gt.f32.partialorder %v3974_v48, 0.0  ;;  %v3982_v57 = vmul.f32 0.2, %v3974_v48 }
0x123e   :  { %v3968_v17 = vpop.permute.xlu1 %3967  ;;  %v3987_v49 = vsel %vm3979_vm6, %v3975_v62, %v3983_v13 }
0x123f   :  { %v3977_v24 = vadd.f32 %v3973_v30, %v3968_v17  ;;  %v3991_v32 = vsel %vm201_vm10, %v3987_v49, -1e+30  ;;  %v3986_v18 = vsel %vm3978_vm11, %v3974_v48, %v3982_v57  ;;  %v3873_v48 = vrot.slane %v3846_v44, %v7126_v40 }
0x1240   :  { %v3997_v41 = vsel %vm215_vm0, %v3991_v32, -inf  ;;  %v3990_v34 = vsel %vm200_vm12, %v3986_v18, -1e+30 }
0x1241   :  { %vm3981_vm13 = vcmp.gt.f32.partialorder %v3977_v24, 0.0  ;;  %v3985_v12 = vmul.f32 0.2, %v3977_v24  ;;  %3998 = vmax.xlane.f32.xlu0 %v3997_v41  ;;  %v3994_v56 = vsel %vm215_vm0, %v3990_v34, -inf }
0x1242   :  { %3995 = vmax.xlane.f32.xlu1 %v3994_v56  ;;  %v3964_v6 = vpop.permute.xlu1 %3963 }
0x1243   :  { %v3976_v7 = vadd.f32 %v3973_v30, %v3964_v6  ;;  %v3989_v20 = vsel %vm3981_vm13, %v3977_v24, %v3985_v12 }
0x1244   :  { %v3993_v62 = vsel %vm203_vm2, %v3989_v20, -1e+30 }
0x1245   :  { %v3984_v13 = vmul.f32 0.2, %v3976_v7  ;;  %v4003_v49 = vsel %vm215_vm0, %v3993_v62, -inf  ;;  %vm3980_vm15 = vcmp.gt.f32.partialorder %v3976_v7, 0.0 }
0x1246   :  { %4004 = vmax.xlane.f32.xlu1 %v4003_v49 }
0x1247   :  { %v3853_v57 = vpop.permute.xlu1 %3852  ;;  %v3988_v17 = vsel %vm3980_vm15, %v3976_v7, %v3984_v13 }
0x1248   :  { %v3874_v18 = vadd.f32 %v3873_v48, %v3853_v57  ;;  %v3992_v41 = vsel %vm202_vm14, %v3988_v17, -1e+30 }
0x1249   :  { %v4000_v56 = vsel %vm215_vm0, %v3992_v41, -inf }
0x124a   :  { %v3882_v30 = vmul.f32 0.2, %v3874_v18  ;;  %4001 = vmax.xlane.f32.xlu0 %v4000_v56  ;;  %vm3878_vm3 = vcmp.gt.f32.partialorder %v3874_v18, 0.0 }
0x124b   :  { %v3858_v24 = vpop.permute.xlu1 %3857 }
0x124c   :  { %v3875_v12 = vadd.f32 %v3873_v48, %v3858_v24  ;;  %v3886_v6 = vsel %vm3878_vm3, %v3874_v18, %v3882_v30 }
0x124d   :  { %v3890_v20 = vsel %vm200_vm12, %v3886_v6, -1e+30 }
0x124e   :  { %vm3879_vm4 = vcmp.gt.f32.partialorder %v3875_v12, 0.0  ;;  %v3883_v44 = vmul.f32 0.2, %v3875_v12  ;;  %v3894_v49 = vsel %vm215_vm0, %v3890_v20, -inf }
0x124f   :  { %3895 = vmax.xlane.f32.xlu0 %v3894_v49  ;;  %v3863_v7 = vpop.permute.xlu1 %3862 }
0x1250   :  { %v3876_v13 = vadd.f32 %v3873_v48, %v3863_v7  ;;  %v3887_v57 = vsel %vm3879_vm4, %v3875_v12, %v3883_v44 }
0x1251   :  { %v3891_v17 = vsel %vm201_vm10, %v3887_v57, -1e+30 }
0x1252   :  { %vm3880_vm7 = vcmp.gt.f32.partialorder %v3876_v13, 0.0  ;;  %v3884_v56 = vmul.f32 0.2, %v3876_v13  ;;  %v3897_v11 = vsel %vm215_vm0, %v3891_v17, -inf }
0x1253   :  { %3898 = vmax.xlane.f32.xlu1 %v3897_v11  ;;  %v3868_v18 = vpop.permute.xlu1 %3867 }
0x1254   :  { %v3877_v30 = vadd.f32 %v3873_v48, %v3868_v18  ;;  %v3888_v24 = vsel %vm3880_vm7, %v3876_v13, %v3884_v56 }
0x1255   :  { %v3892_v6 = vsel %vm202_vm14, %v3888_v24, -1e+30 }
0x1256   :  { %vm3881_vm6 = vcmp.gt.f32.partialorder %v3877_v30, 0.0  ;;  %v3885_v14 = vmul.f32 0.2, %v3877_v30  ;;  %v3900_v49 = vsel %vm215_vm0, %v3892_v6, -inf }
0x1257   :  { %3901 = vmax.xlane.f32.xlu0 %v3900_v49 }
0x1258   :  { %v3889_v12 = vsel %vm3881_vm6, %v3877_v30, %v3885_v14 }
0x1259   :  { %v3893_v44 = vsel %vm203_vm2, %v3889_v12, -1e+30 }
0x125a   :  { %v3903_v7 = vsel %vm215_vm0, %v3893_v44, -inf }
0x125b   :  { %3904 = vmax.xlane.f32.xlu1 %v3903_v7 }
0x12ce   :  { %v3999_v57 = vpop.xlane.xlu0 %3998 }
0x12cf   :  { %v4007_v11 = vsub.f32 %v3991_v32, %v3999_v57  ;;  %v3996_v33 = vpop.xlane.xlu1 %3995 }
0x12d0   :  { %v4006_v48 = vsub.f32 %v3990_v34, %v3996_v33 }
0x12d1   :  { %v4012_v13 = vmul.f32 1.442695, %v4007_v11 }
0x12d2   :  { %v4010_v56 = vmul.f32 1.442695, %v4006_v48 }
0x12d3   :  { %6428 = vpow2.f32 %v4012_v13  ;;  %v4005_v18 = vpop.xlane.xlu1 %4004 }
0x12d4   :  { %6430 = vpow2.f32 %v4010_v56  ;;  %v4009_v24 = vsub.f32 %v3993_v62, %v4005_v18 }
0x12d6   :  { %v4016_v5 = vmul.f32 1.442695, %v4009_v24 }
0x12d7   :  { %v4002_v38 = vpop.xlane.xlu0 %4001 }
0x12d8   :  { %6432 = vpow2.f32 %v4016_v5  ;;  %v4008_v14 = vsub.f32 %v3992_v41, %v4002_v38 }
0x12da   :  { %v4014_v30 = vmul.f32 1.442695, %v4008_v14 }
0x12dc   :  { %6434 = vpow2.f32 %v4014_v30  ;;  %v3896_v49 = vpop.xlane.xlu0 %3895 }
0x12dd   :  { %v6429_v12 = vpop.eup %6428  ;;  %v3906_v31 = vsub.f32 %v3890_v20, %v3896_v49 }
0x12de   :  { %v6431_v7 = vpop.eup %6430  ;;  %v4019_v32 = vmul.f32 %v7604_v15, %v6429_v12 }
0x12df   :  { %v3910_v57 = vmul.f32 1.442695, %v3906_v31  ;;  %v4018_v33 = vmul.f32 %v7610_v51, %v6431_v7 }
0x12e0   :  { %v3899_v34 = vpop.xlane.xlu1 %3898  ;;  %v7836_v11 = vsel %vm201_vm10, %v4019_v32, 0.0 }
0x12e1   :  { %6436 = vpow2.f32 %v3910_v57  ;;  %v3907_v62 = vsub.f32 %v3891_v17, %v3899_v34  ;;  %v4029_v38 = vsel %vm215_vm0, %v7836_v11, 0.0  ;;  %v4022_v5 = vsel %vm200_vm12, %v4018_v33, 0.0 }
0x12e2   :  { %v6433_v41 = vpop.eup %6432  ;;  %4030 = vadd.xlane.f32.xlu1 %v4029_v38  ;;  %v4026_v20 = vsel %vm215_vm0, %v4022_v5, 0.0 }
0x12e3   :  { %v3912_v31 = vmul.f32 1.442695, %v3907_v62  ;;  %4027 = vadd.xlane.f32.xlu0 %v4026_v20  ;;  %v4021_v48 = vmul.f32 %v7634_v63, %v6433_v41 }
0x12e4   :  { %v3902_v13 = vpop.xlane.xlu0 %3901 }
0x12e5   :  { %6438 = vpow2.f32 %v3912_v31  ;;  %v3908_v56 = vsub.f32 %v3892_v6, %v3902_v13  ;;  %v7846_v17 = vsel %vm203_vm2, %v4021_v48, 0.0 }
0x12e6   :  { %v6435_v18 = vpop.eup %6434  ;;  %v4035_v24 = vsel %vm215_vm0, %v7846_v17, 0.0 }
0x12e7   :  { %v3914_v14 = vmul.f32 1.442695, %v3908_v56  ;;  %4036 = vadd.xlane.f32.xlu1 %v4035_v24  ;;  %v4020_v30 = vmul.f32 %v7625_v35, %v6435_v18 }
0x12e8   :  { %v3905_v49 = vpop.xlane.xlu1 %3904 }
0x12e9   :  { %6440 = vpow2.f32 %v3914_v14  ;;  %v3909_v12 = vsub.f32 %v3893_v44, %v3905_v49  ;;  %v4024_v7 = vsel %vm202_vm14, %v4020_v30, 0.0 }
0x12ea   :  { %v4032_v6 = vsel %vm215_vm0, %v4024_v7, 0.0 }
0x12eb   :  { %v6437_v32 = vpop.eup %6436  ;;  %v3916_v57 = vmul.f32 1.442695, %v3909_v12  ;;  %4033 = vadd.xlane.f32.xlu0 %v4032_v6 }
0x12ec   :  { %v3918_v33 = vmul.f32 %v7610_v51, %v6437_v32 }
0x12ed   :  { %6442 = vpow2.f32 %v3916_v57 }
0x12ee   :  { %v3922_v34 = vsel %vm200_vm12, %v3918_v33, 0.0 }
0x12ef   :  { %v6439_v62 = vpop.eup %6438  ;;  %v3926_v38 = vsel %vm215_vm0, %v3922_v34, 0.0 }
0x12f0   :  { %3927 = vadd.xlane.f32.xlu0 %v3926_v38  ;;  %v3919_v44 = vmul.f32 %v7604_v15, %v6439_v62 }
0x12f2   :  { %v3923_v41 = vsel %vm201_vm10, %v3919_v44, 0.0 }
0x12f3   :  { %v6441_v20 = vpop.eup %6440  ;;  %v3929_v31 = vsel %vm215_vm0, %v3923_v41, 0.0 }
0x12f4   :  { %3930 = vadd.xlane.f32.xlu1 %v3929_v31  ;;  %v3920_v48 = vmul.f32 %v7625_v35, %v6441_v20 }
0x12f6   :  { %v3924_v51 = vsel %vm202_vm14, %v3920_v48, 0.0 }
0x12f7   :  { %v6443_v42 = vpop.eup %6442  ;;  %v3932_v13 = vsel %vm215_vm0, %v3924_v51, 0.0 }
0x12f8   :  { %3933 = vadd.xlane.f32.xlu0 %v3932_v13  ;;  %v3921_v56 = vmul.f32 %v7634_v63, %v6443_v42  ;;  %v8252_v42 = vmov 0.0|0.0  }
0x12fa   :  { %v3925_v15 = vsel %vm203_vm2, %v3921_v56, 0.0 }
0x12fb   :  { %v3935_v37 = vsel %vm215_vm0, %v3925_v15, 0.0 }
0x12fc   :  { %3936 = vadd.xlane.f32.xlu1 %v3935_v37 }
0x136f   :  { %v4031_v18 = vpop.xlane.xlu1 %4030 }
0x1370   :  { %v4039_v24 = vadd.f32 1e-16, %v4031_v18  ;;  %v4028_v14 = vpop.xlane.xlu0 %4027 }
0x1371   :  { %v4038_v30 = vadd.f32 1e-16, %v4028_v14  ;;  %v8253_v14 = vmov 0.0  }
0x1372   :  { %6444 = vrcp.f32 %v4039_v24 }
0x1373   :  { %6446 = vrcp.f32 %v4038_v30 }
0x1374   :  { %v4037_v46 = vpop.xlane.xlu1 %4036 }
0x1375   :  { %v4041_v35 = vadd.f32 1e-16, %v4037_v46 }
0x1377   :  { %6448 = vrcp.f32 %v4041_v35 }
0x1378   :  { %v4034_v49 = vpop.xlane.xlu0 %4033 }
0x1379   :  { %v4040_v12 = vadd.f32 1e-16, %v4034_v49 }
0x137b   :  { %6450 = vrcp.f32 %v4040_v12 }
0x137c   :  { %v6445_v6 = vpop.eup %6444 }
0x137d   :  { %v6447_v63 = vpop.eup %6446  ;;  %v3928_v32 = vpop.xlane.xlu0 %3927  ;;  %v4047_v33 = vmul.f32 %v6445_v6, %v7836_v11 }
0x137e   :  { %v3938_v53 = vadd.f32 1e-16, %v3928_v32  ;;  %v4046_v57 = vmul.f32 %v6447_v63, %v4022_v5 }
0x1380   :  { %6452 = vrcp.f32 %v3938_v53  ;;  %5942 = vmatprep.mubr.msk.f32.mxu0 %vm215_vm0, %v4046_v57 }
0x1381   :  { %5943 = vmatmul.mubr.msk.f32.vlgmr.msra.gmra.mrb[40].mxu0 %vm215_vm0, %v4047_v33  ;;  %v3931_v62 = vpop.xlane.xlu1 %3930  ;;  %v6449_v44 = vpop.eup %6448 }
0x1382   :  { %6219 = vmatpush3.bf16.msk.msra.mxu0 %vm7090_vm8, %v7774_v4  ;;  %v3939_v38 = vadd.f32 1e-16, %v3931_v62  ;;  %v4049_v48 = vmul.f32 %v6449_v44, %v7846_v17 }
0x1383   :  { %6222 = vmatprep.subr.msk.bf16.mxu0 %vm7090_vm8, %v7788_v10 }
0x1384   :  { %6454 = vrcp.f32 %v3939_v38 }
0x1385   :  { %v6451_v5 = vpop.eup %6450  ;;  %v3934_v20 = vpop.xlane.xlu0 %3933 }
0x1386   :  { %v3940_v11 = vadd.f32 1e-16, %v3934_v20  ;;  %6225 = vmatpush3.bf16.msk.msra.mxu0 %vm7090_vm8, %v7788_v10  ;;  %v4048_v31 = vmul.f32 %v6451_v5, %v4024_v7 }
0x1387   :  { %6232 = vmatprep.subr.bf16.mxu0 %v8252_v42 }
0x1388   :  { %6456 = vrcp.f32 %v3940_v11  ;;  %5945 = vmatprep.mubr.msk.f32.mxu0 %vm215_vm0, %v4048_v31  ;;  %v1234_v31 = vsel %vm313_vm1, %v7278_v39, 0.0  ;;  %v3465_v39 = vsel %vm313_vm1, %v7730_v8, 0.0 }
0x1389   :  { %5946 = vmatmul.mubr.msk.f32.gmra.mrb[42].mxu0 %vm215_vm0, %v4049_v48  ;;  %v3937_v4 = vpop.xlane.xlu1 %3936  ;;  %v1231_v48 = vsel %vm313_vm1, %v7280_v43, 0.0 }
0x138a   :  { %v6453_v13 = vpop.eup %6452  ;;  %v3941_v56 = vadd.f32 1e-16, %v3937_v4  ;;  %v2351_v4 = vsel %vm313_vm1, %v7494_v45, 0.0 }
0x138b   :  { %v3946_v37 = vmul.f32 %v6453_v13, %v3922_v34  ;;  %v5415_v34 = vld [vmem:[%s8195_s17] ss:$0 sm:$0xff]  ;;  %v2348_v13 = vsel %vm313_vm1, %v7496_v2, 0.0  ;;  %s4865_s17 = sld [smem:[#allocation18]] }
0x138c   :  { %6458 = vrcp.f32 %v3941_v56  ;;  %v3468_v56 = vsel %vm313_vm1, %v7728_v0, 0.0 }
0x138d   :  { %5956 = vmatprep.mubr.msk.f32.mxu0 %vm215_vm0, %v3946_v37 }
0x138e   :  { %v6455_v18 = vpop.eup %6454 }
0x138f   :  { %v3947_v23 = vmul.f32 %v6455_v18, %v3923_v41 }
0x1391   :  { %5957 = vmatmul.mubr.msk.f32.vlgmr.msra.gmra.mrb[40].mxu0 %vm215_vm0, %v3947_v23 }
0x1392   :  { %v6457_v10 = vpop.eup %6456 }
0x1393   :  { %v3948_v17 = vmul.f32 %v6457_v10, %v3924_v51 }
0x1395   :  { %5959 = vmatprep.mubr.msk.f32.mxu0 %vm215_vm0, %v3948_v17 }
0x1396   :  { %v6459_v7 = vpop.eup %6458 }
0x1397   :  { %v3949_v24 = vmul.f32 %v6459_v7, %v3925_v15 }
0x1399   :  { %5960 = vmatmul.mubr.msk.f32.gmra.mrb[42].mxu0 %vm215_vm0, %v3949_v24 }
0x139a   :  { %5973 = vmatprep.mubr.msk.f32.mxu0 %vm6790_vm9, %v8253_v14 }
0x1464   :  { %v5958_v30 = vpop.f32.mrb[40].mxu0 }
0x1465   :  { %v4255_v46 = vadd.f32 %v5958_v30, %v5415_v34  ;;  %v4229_v41 = vpop.f32.mrb[41].mxu0 }
0x1466   :  { %v4254_v35 = vadd.f32 %v5415_v34, %v4229_v41 }
0x1467   :  { %v7895_v49 = vmax.f32 %v4255_v46, 0.0  ;;  %v1325_v46 = vrot.slane %v7322_v47, %v7126_v40 }
0x1468   :  { %v7897_v51 = vmax.f32 %v4254_v35, 0.0 }
0x1469   :  { %v4265_v15 = vsel %vm313_vm1, %v7895_v49, inf  ;;  %v4271_v53 = vsel %vm313_vm1, %v7895_v49, -inf }
0x146a   :  { %4266 = vmin.xlane.f32.xlu1 %v4265_v15  ;;  %v4262_v12 = vsel %vm313_vm1, %v7897_v51, inf  ;;  %v4268_v33 = vsel %vm313_vm1, %v7897_v51, -inf }
0x146b   :  { %4263 = vmin.xlane.f32.xlu0 %v4262_v12  ;;  %v7940_v12 = vmul.f32 2.0, %v7318_v55 }
0x146c   :  { %v5961_v6 = vpop.f32.mrb[42].mxu0 }
0x146d   :  { %v4257_v63 = vadd.f32 %v5961_v6, %v5415_v34  ;;  %v4239_v32 = vpop.f32.mrb[43].mxu0  ;;  %v7943_v6 = vmul.f32 2.0, %v7320_v50 }
0x146e   :  { %v4256_v57 = vadd.f32 %v5415_v34, %v4239_v32  ;;  %4272 = vmax.xlane.f32.xlu1 %v4271_v53 }
0x146f   :  { %v7907_v62 = vmax.f32 %v4257_v63, 0.0  ;;  %4269 = vmax.xlane.f32.xlu0 %v4268_v33 }
0x1470   :  { %v7909_v38 = vmax.f32 %v4256_v57, 0.0 }
0x1471   :  { %v4480_v44 = vsel %vm313_vm1, %v7907_v62, inf  ;;  %v4486_v20 = vsel %vm313_vm1, %v7907_v62, -inf }
0x1472   :  { %4481 = vmin.xlane.f32.xlu1 %v4480_v44  ;;  %v4477_v5 = vsel %vm313_vm1, %v7909_v38, inf  ;;  %v4483_v11 = vsel %vm313_vm1, %v7909_v38, -inf  ;;  %v2442_v44 = vrot.slane %v7538_v27, %v7126_v40 }
0x1473   :  { %4478 = vmin.xlane.f32.xlu0 %v4477_v5 }
0x1476   :  { %4487 = vmax.xlane.f32.xlu1 %v4486_v20 }
0x1477   :  { %4484 = vmax.xlane.f32.xlu0 %v4483_v11 }
0x147a   :  { %1235 = vadd.xlane.f32.xlu1 %v1234_v31 }
0x147b   :  { %1232 = vadd.xlane.f32.xlu0 %v1231_v48  ;;  %v7958_v48 = vmul.f32 2.0, %v7534_v22 }
0x147e   :  { %2352 = vadd.xlane.f32.xlu1 %v2351_v4  ;;  %v7961_v4 = vmul.f32 2.0, %v7536_v29 }
0x147f   :  { %2349 = vadd.xlane.f32.xlu0 %v2348_v13 }
0x1482   :  { %3469 = vadd.xlane.f32.xlu1 %v3468_v56 }
0x1483   :  { %3466 = vadd.xlane.f32.xlu0 %v3465_v39 }
0x14f7   :  { %v4267_v37 = vpop.xlane.xlu1 %4266 }
0x14f8   :  { %v4264_v18 = vpop.xlane.xlu0 %4263  ;;  %v4275_v53 = vsub.f32 %v7895_v49, %v4267_v37 }
0x14f9   :  { %v4274_v55 = vsub.f32 %v7897_v51, %v4264_v18 }
0x14fb   :  { %v4273_v43 = vpop.xlane.xlu1 %4272 }
0x14fc   :  { %v4277_v23 = vsub.f32 %v4273_v43, %v4267_v37  ;;  %v4270_v10 = vpop.xlane.xlu0 %4269  ;;  %v3559_v43 = vrot.slane %v7772_v25, %v7126_v40 }
0x14fd   :  { %v4276_v17 = vsub.f32 %v4270_v10, %v4264_v18 }
0x14fe   :  { %v4279_v45 = vadd.f32 1e-12, %v4277_v23 }
0x14ff   :  { %v4278_v7 = vadd.f32 1e-12, %v4276_v17  ;;  %v7931_v24 = vpop.xlane.xlu1 %4481 }
0x1500   :  { %6460 = vrcp.f32 %v4279_v45  ;;  %v7933_v2 = vpop.xlane.xlu0 %4478 }
0x1501   :  { %6462 = vrcp.f32 %v4278_v7 }
0x1503   :  { %v4488_v0 = vpop.xlane.xlu1 %4487 }
0x1504   :  { %v4492_v34 = vsub.f32 %v4488_v0, %v7931_v24  ;;  %v4485_v30 = vpop.xlane.xlu0 %4484  ;;  %v7979_v0 = vmul.f32 2.0, %v7768_v26 }
0x1505   :  { %v4491_v8 = vsub.f32 %v4485_v30, %v7933_v2 }
0x1506   :  { %v4494_v41 = vadd.f32 1e-12, %v4492_v34  ;;  %v7982_v34 = vmul.f32 2.0, %v7770_v59  ;;  %v4490_v59 = vsub.f32 %v7907_v62, %v7931_v24 }
0x1507   :  { %v4493_v35 = vadd.f32 1e-12, %v4491_v8  ;;  %v1236_v15 = vpop.xlane.xlu1 %1235 }
0x1508   :  { %6464 = vrcp.f32 %v4494_v41  ;;  %v7945_v63 = vadd.f32 %v1325_v46, %v1236_v15  ;;  %v1233_v32 = vpop.xlane.xlu0 %1232 }
0x1509   :  { %6466 = vrcp.f32 %v4493_v35  ;;  %v1313_v57 = vadd.f32 %v1236_v15, %v1233_v32  ;;  %v7948_v33 = vadd.f32 %v1325_v46, %v1233_v32  ;;  %v4489_v32 = vsub.f32 %v7909_v38, %v7933_v2 }
0x150a   :  { %v6461_v47 = vpop.eup %6460  ;;  %v1331_v50 = vsub.f32 %v7945_v63, %v7940_v12 }
0x150b   :  { %v6463_v5 = vpop.eup %6462  ;;  %v1314_v20 = vrot.slane %v1313_v57, 4  ;;  %v1330_v11 = vsub.f32 %v7948_v33, %v7943_v6  ;;  %v2353_v31 = vpop.xlane.xlu1 %2352  ;;  %v4283_v49 = vmul.f32 %v6461_v47, %v4275_v53 }
0x150c   :  { %v7963_v13 = vadd.f32 %v2442_v44, %v2353_v31  ;;  %v2350_v27 = vpop.xlane.xlu0 %2349  ;;  %v4281_v51 = vmul.f32 %v6463_v5, %v4274_v55 }
0x150d   :  { %v1315_v56 = vadd.f32 %v1314_v20, %v1313_v57  ;;  %v2430_v39 = vadd.f32 %v2353_v31, %v2350_v27  ;;  %v7965_v37 = vadd.f32 %v2442_v44, %v2350_v27  ;;  %v7967_v18 = vmul.f32 %v4283_v49, %v4283_v49 }
0x150e   :  { %v2448_v22 = vsub.f32 %v7963_v13, %v7958_v48  ;;  %5966 = vmatprep.mubr.msk.f32.mxu1 %vm313_vm1, %v4281_v51  ;;  %v7974_v29 = vmul.f32 %v4281_v51, %v4281_v51  ;;  %v6226_v23 = vpack.c.bf16 %v4283_v49, %v4281_v51 }
0x150f   :  { %v1316_v10 = vrot.slane %v1315_v56, 2  ;;  %v2431_v17 = vrot.slane %v2430_v39, 4  ;;  %v2447_v45 = vsub.f32 %v7965_v37, %v7961_v4  ;;  %v3470_v7 = vpop.xlane.xlu1 %3469 }
0x1510   :  { %v7984_v25 = vadd.f32 %v3559_v43, %v3470_v7  ;;  %v3467_v30 = vpop.xlane.xlu0 %3466  ;;  %6228 = vmatprep.subr.msk.bf16.mxu1 %vm7063_vm5, %v6226_v23  ;;  %v6233_v8 = vpack.c.bf16 %v7967_v18, %v7974_v29 }
0x1511   :  { %v1317_v46 = vadd.f32 %v1316_v10, %v1315_v56  ;;  %v2432_v41 = vadd.f32 %v2431_v17, %v2430_v39  ;;  %v3547_v35 = vadd.f32 %v3470_v7, %v3467_v30  ;;  %v7990_v15 = vadd.f32 %v3559_v43, %v3467_v30  ;;  %6231 = vmatpush3.bf16.xpose.msk.msra.mxu1 %vm7063_vm5, %v6226_v23 }
0x1512   :  { %v6465_v26 = vpop.eup %6464  ;;  %v3565_v53 = vsub.f32 %v7984_v25, %v7979_v0  ;;  %6235 = vmatpush3.bf16.xpose.msk.msra.mxu0 %vm7063_vm5, %v6233_v8 }
0x1513   :  { %v6467_v57 = vpop.eup %6466  ;;  %v1318_v47 = vrot.slane %v1317_v46, 1  ;;  %v2433_v44 = vrot.slane %v2432_v41, 2  ;;  %v3548_v55 = vrot.slane %v3547_v35, 4  ;;  %v3564_v5 = vsub.f32 %v7990_v15, %v7982_v34  ;;  %6242 = vmatprep.subr.bf16.mxu0 %v8252_v42 }
0x1514   :  { %v4498_v20 = vmul.f32 %v6465_v26, %v4490_v59  ;;  %v4496_v62 = vmul.f32 %v6467_v57, %v4489_v32  ;;  %v1012_v26 = vsel %vm313_vm1, %v7259_v19, 0.0  ;;  %v2136_v57 = vsel %vm313_vm1, %v7472_v28, 0.0 }
0x1515   :  { %v1319_v24 = vadd.f32 %v1318_v47, %v1317_v46  ;;  %v2434_v31 = vadd.f32 %v2433_v44, %v2432_v41  ;;  %v3549_v38 = vadd.f32 %v3548_v55, %v3547_v35  ;;  %v8254_v46 = vmov 1.0  }
0x1516   :  { %v4581_v2 = vmul.f32 %v4498_v20, %v4498_v20  ;;  %v6236_v27 = vpack.c.bf16 %v4498_v20, %v4496_v62  ;;  %v4580_v51 = vmul.f32 %v4496_v62, %v4496_v62  ;;  %v1015_v35 = vsel %vm313_vm1, %v7256_v21, 0.0 }
0x1517   :  { %v1320_v56 = vmul.f32 0.0625, %v1319_v24  ;;  %v2435_v39 = vrot.slane %v2434_v31, 1  ;;  %v3550_v43 = vrot.slane %v3549_v38, 2  ;;  %v2133_v19 = vsel %vm313_vm1, %v7475_v9, 0.0 }
0x1518   :  { %5967 = vmatmul.mubr.msk.f32.vlgmr.msra.gmra.mrb[36].mxu1 %vm313_vm1, %v4283_v49  ;;  %v4585_v23 = vsel %vm313_vm1, %v4581_v2, 0.0  ;;  %6238 = vmatprep.subr.msk.bf16.mxu1 %vm7063_vm5, %v6236_v27  ;;  %v4582_v10 = vsel %vm313_vm1, %v4580_v51, 0.0  ;;  %v6243_v17 = vpack.c.bf16 %v4581_v2, %v4580_v51  ;;  %v3253_v28 = vsel %vm313_vm1, %v7706_v1, 0.0 }
0x1519   :  { %v1321_v7 = vadd.f32 1e-12, %v1320_v56  ;;  %v2436_v30 = vadd.f32 %v2435_v39, %v2434_v31  ;;  %v3551_v8 = vadd.f32 %v3550_v43, %v3549_v38  ;;  %4586 = vadd.xlane.f32.xlu1 %v4585_v23  ;;  %4583 = vadd.xlane.f32.xlu0 %v4582_v10  ;;  %v3250_v47 = vsel %vm313_vm1, %v7709_v58, 0.0 }
0x151a   :  { %5974 = vmatmul.mubr.msk.f32.vlgmr.msra.gmra.mrb[44].mxu0 %vm313_vm1, %v8254_v46  ;;  %6241 = vmatpush3.bf16.xpose.msk.msra.mxu1 %vm7063_vm5, %v6236_v27  ;;  %v4367_v24 = vsel %vm313_vm1, %v7974_v29, 0.0  ;;  %v4866_v38 = vstv %s4865_s17  ;;  %v4870_v34 = vstv %s5437_s6  ;;  %v4876_v51 = vstv %s5438_s29 }
0x151b   :  { %6468 = vrcp.f32 %v1321_v7  ;;  %v2437_v49 = vmul.f32 0.0625, %v2436_v30  ;;  %v3552_v41 = vrot.slane %v3551_v8, 1  ;;  %5980 = vmatprep.mubr.msk.f32.mxu1 %vm313_vm1, %v4496_v62  ;;  %6245 = vmatpush3.bf16.xpose.msk.msra.mxu0 %vm7063_vm5, %v6243_v17  ;;  %v4370_v62 = vsel %vm313_vm1, %v7967_v18, 0.0 }
0x151c   :  { %5987 = vmatprep.mubr.msk.f32.mxu0 %vm6790_vm9, %v8253_v14  ;;  %6249 = vmatprep.subr.bf16.mxu0 %v8252_v42 }
0x151d   :  { %v2438_v59 = vadd.f32 1e-12, %v2437_v49  ;;  %v3553_v32 = vadd.f32 %v3552_v41, %v3551_v8  ;;  %1016 = vadd.xlane.f32.xlu1 %v1015_v35  ;;  %1013 = vadd.xlane.f32.xlu0 %v1012_v26  ;;  %v1110_v41 = vrot.slane %v7316_v54, %v7126_v40  ;;  %v1114_v35 = vmul.f32 2.0, %v7312_v36 }
0x151e   :  { %6246 = vmatprep.subr.bf16.mxu1 %v8252_v42  ;;  %v2230_v36 = vmul.f32 2.0, %v7530_v61 }
0x151f   :  { %6470 = vrcp.f32 %v2438_v59  ;;  %v3554_v16 = vmul.f32 0.0625, %v3553_v32  ;;  %v1113_v32 = vmul.f32 2.0, %v7314_v52  ;;  %v8255_v52 = vld [vmem:[#allocation33_spill] sm:$0xff] }
0x1521   :  { %v3555_v21 = vadd.f32 1e-12, %v3554_v16  ;;  %2137 = vadd.xlane.f32.xlu1 %v2136_v57  ;;  %5981 = vmatmul.mubr.msk.f32.vlgmr.msra.gmra.mrb[38].mxu1 %vm313_vm1, %v4498_v20 }
0x1522   :  { %2134 = vadd.xlane.f32.xlu0 %v2133_v19  ;;  %5988 = vmatmul.mubr.msk.f32.vlgmr.msra.gmra.mrb[46].mxu0 %vm313_vm1, %v8254_v46  ;;  %v2227_v19 = vrot.slane %v7532_v60, %v7126_v40 }
0x1523   :  { %6472 = vrcp.f32 %v3555_v21  ;;  %6001 = vmatprep.mubr.msk.f32.mxu0 %vm6790_vm9, %v8253_v14  ;;  %5994 = vmatprep.mubr.msk.f32.mxu1 %vm6790_vm9, %v8253_v14 }
0x1525   :  { %v6469_v42 = vpop.eup %6468  ;;  %3254 = vadd.xlane.f32.xlu1 %v3253_v28 }
0x1526   :  { %v1333_v9 = vmul.f32 %v6469_v42, %v1330_v11  ;;  %v1334_v44 = vmul.f32 %v6469_v42, %v1331_v50  ;;  %3251 = vadd.xlane.f32.xlu0 %v3250_v47 }
0x1528   :  { %v1335_v55 = vmul.f32 -0.5, %v1333_v9  ;;  %v1336_v20 = vmul.f32 -0.5, %v1334_v44  ;;  %v2231_v44 = vmul.f32 2.0, %v7528_v3 }
0x1529   :  { %v6471_v1 = vpop.eup %6470  ;;  %4371 = vadd.xlane.f32.xlu1 %v4370_v62 }
0x152a   :  { %v1337_v58 = vmul.f32 1.442695, %v1335_v55  ;;  %v2450_v6 = vmul.f32 %v6471_v1, %v2447_v45  ;;  %v2451_v12 = vmul.f32 %v6471_v1, %v2448_v22  ;;  %4368 = vadd.xlane.f32.xlu0 %v4367_v24  ;;  %v1339_v63 = vmul.f32 1.442695, %v1336_v20 }
0x152b   :  { %v3344_v24 = vrot.slane %v8255_v52, %v7126_v40 }
0x152c   :  { %v2452_v33 = vmul.f32 -0.5, %v2450_v6  ;;  %v2453_v50 = vmul.f32 -0.5, %v2451_v12  ;;  %6474 = vpow2.f32 %v1337_v58 }
0x152d   :  { %v6473_v11 = vpop.eup %6472  ;;  %6476 = vpow2.f32 %v1339_v63 }
0x152e   :  { %v2454_v18 = vmul.f32 1.442695, %v2452_v33  ;;  %v2456_v31 = vmul.f32 1.442695, %v2453_v50  ;;  %v3567_v29 = vmul.f32 %v6473_v11, %v3564_v5  ;;  %v3568_v4 = vmul.f32 %v6473_v11, %v3565_v53  ;;  %v8256_v33 = vld [vmem:[#allocation31_spill] sm:$0xff] }
0x152f   :  { %v3348_v50 = vmul.f32 2.0, %v8256_v33 }
0x1530   :  { %6478 = vpow2.f32 %v2454_v18  ;;  %v3569_v48 = vmul.f32 -0.5, %v3567_v29  ;;  %v3570_v13 = vmul.f32 -0.5, %v3568_v4 }
0x1531   :  { %6480 = vpow2.f32 %v2456_v31  ;;  %v8257_v31 = vld [vmem:[#allocation32_spill] sm:$0xff] }
0x1532   :  { %v3571_v37 = vmul.f32 1.442695, %v3569_v48  ;;  %v3573_v22 = vmul.f32 1.442695, %v3570_v13  ;;  %v3347_v29 = vmul.f32 2.0, %v8257_v31 }
0x1534   :  { %6482 = vpow2.f32 %v3571_v37 }
0x1535   :  { %6484 = vpow2.f32 %v3573_v22 }
0x1536   :  { %v6475_v45 = vpop.eup %6474 }
0x1537   :  { %v6477_v15 = vpop.eup %6476  ;;  %v4867_v0 = vmul.f32 %v6475_v45, %v4866_v38 }
0x1538   :  { %v4868_v53 = vmul.f32 %v6477_v15, %v4866_v38 }
0x153a   :  { %v6479_v5 = vpop.eup %6478 }
0x153b   :  { %v6481_v2 = vpop.eup %6480  ;;  %v4871_v25 = vmul.f32 %v6479_v5, %v4870_v34 }
0x153c   :  { %v4872_v27 = vmul.f32 %v6481_v2, %v4870_v34 }
0x153d   :  { %v4873_v56 = vadd.f32 %v4871_v25, %v4867_v0 }
0x153e   :  { %v6483_v39 = vpop.eup %6482  ;;  %v4874_v43 = vadd.f32 %v4872_v27, %v4868_v53 }
0x153f   :  { %v6485_v23 = vpop.eup %6484  ;;  %v4877_v10 = vmul.f32 %v6483_v39, %v4876_v51 }
0x1540   :  { %v4878_v17 = vmul.f32 %v6485_v23, %v4876_v51 }
0x1541   :  { %v8062_v7 = vadd.f32 %v4877_v10, %v4873_v56 }
0x1542   :  { %v8064_v30 = vadd.f32 %v4878_v17, %v4874_v43 }
0x15a6   :  { %v8066_v8 = vpop.xlane.xlu1 %4586  ;;  %v8068_v49 = vpop.xlane.xlu0 %4583 }
0x15aa   :  { %v1017_v26 = vpop.xlane.xlu1 %1016  ;;  %v1014_v59 = vpop.xlane.xlu0 %1013 }
0x15ab   :  { %v1112_v16 = vadd.f32 %v1110_v41, %v1017_v26  ;;  %v1097_v57 = vadd.f32 %v1017_v26, %v1014_v59  ;;  %v1111_v21 = vadd.f32 %v1110_v41, %v1014_v59 }
0x15ad   :  { %v1116_v28 = vsub.f32 %v1112_v16, %v1114_v35  ;;  %v1098_v42 = vrot.slane %v1097_v57, 4  ;;  %v1115_v47 = vsub.f32 %v1111_v21, %v1113_v32 }
0x15ae   :  { %v2138_v9 = vpop.xlane.xlu1 %2137 }
0x15af   :  { %v1099_v55 = vadd.f32 %v1098_v42, %v1097_v57  ;;  %v2229_v54 = vadd.f32 %v2227_v19, %v2138_v9  ;;  %v2135_v20 = vpop.xlane.xlu0 %2134 }
0x15b0   :  { %v2215_v62 = vadd.f32 %v2138_v9, %v2135_v20  ;;  %v2228_v1 = vadd.f32 %v2227_v19, %v2135_v20  ;;  %v4664_v9 = vadd.f32 %v8066_v8, %v8068_v49 }
0x15b1   :  { %v1100_v58 = vrot.slane %v1099_v55, 2  ;;  %v2233_v6 = vsub.f32 %v2229_v54, %v2231_v44 }
0x15b2   :  { %v2216_v12 = vrot.slane %v2215_v62, 4  ;;  %v2232_v60 = vsub.f32 %v2228_v1, %v2230_v36  ;;  %v3255_v63 = vpop.xlane.xlu1 %3254 }
0x15b3   :  { %v1101_v11 = vadd.f32 %v1100_v58, %v1099_v55  ;;  %v3346_v18 = vadd.f32 %v3344_v24, %v3255_v63  ;;  %v3252_v3 = vpop.xlane.xlu0 %3251 }
0x15b4   :  { %v2217_v4 = vadd.f32 %v2216_v12, %v2215_v62  ;;  %v3332_v48 = vadd.f32 %v3255_v63, %v3252_v3  ;;  %v3345_v61 = vadd.f32 %v3344_v24, %v3252_v3  ;;  %v4665_v24 = vrot.slane %v4664_v9, 4 }
0x15b5   :  { %v1102_v13 = vrot.slane %v1101_v11, 1  ;;  %v3350_v37 = vsub.f32 %v3346_v18, %v3348_v50 }
0x15b6   :  { %v2218_v22 = vrot.slane %v2217_v4, 2  ;;  %v3333_v45 = vrot.slane %v3332_v48, 4  ;;  %v3349_v38 = vsub.f32 %v3345_v61, %v3347_v29  ;;  %v8082_v10 = vpop.xlane.xlu1 %4371 }
0x15b7   :  { %v1103_v34 = vadd.f32 %v1102_v13, %v1101_v11  ;;  %v8084_v17 = vpop.xlane.xlu0 %4368 }
0x15b8   :  { %v2219_v15 = vadd.f32 %v2218_v22, %v2217_v4  ;;  %v3334_v5 = vadd.f32 %v3333_v45, %v3332_v48  ;;  %v4449_v26 = vadd.f32 %v8082_v10, %v8084_v17  ;;  %v4697_v4 = vstv %s4696_s8 }
0x15b9   :  { %v1105_v2 = vmul.f32 0.0625, %v1103_v34  ;;  %v4701_v48 = vstv %s5430_s2 }
0x15ba   :  { %v2220_v0 = vrot.slane %v2219_v15, 1  ;;  %v3335_v25 = vrot.slane %v3334_v5, 2  ;;  %v4450_v57 = vrot.slane %v4449_v26, 4 }
0x15bb   :  { %v1106_v53 = vadd.f32 1e-12, %v1105_v2  ;;  %v4707_v2 = vstv %s5431_s11 }
0x15bc   :  { %v2221_v27 = vadd.f32 %v2220_v0, %v2219_v15  ;;  %v3336_v51 = vadd.f32 %v3335_v25, %v3334_v5  ;;  %v4451_v55 = vadd.f32 %v4450_v57, %v4449_v26 }
0x15bd   :  { %6486 = vrcp.f32 %v1106_v53 }
0x15be   :  { %v2222_v56 = vmul.f32 0.0625, %v2221_v27  ;;  %v3337_v39 = vrot.slane %v3336_v51, 1  ;;  %v4452_v58 = vrot.slane %v4451_v55, 2 }
0x15c0   :  { %v2223_v43 = vadd.f32 1e-12, %v2222_v56  ;;  %v3338_v23 = vadd.f32 %v3337_v39, %v3336_v51  ;;  %v4453_v18 = vadd.f32 %v4452_v58, %v4451_v55 }
0x15c2   :  { %6488 = vrcp.f32 %v2223_v43  ;;  %v3339_v41 = vmul.f32 0.0625, %v3338_v23  ;;  %v4454_v31 = vrot.slane %v4453_v18, 1 }
0x15c4   :  { %v3340_v35 = vadd.f32 1e-12, %v3339_v41  ;;  %v4455_v22 = vadd.f32 %v4454_v31, %v4453_v18 }
0x15c6   :  { %6490 = vrcp.f32 %v3340_v35  ;;  %v4456_v27 = vmul.f32 0.0625, %v4455_v22  ;;  %v4713_v22 = vstv %s5432_s9 }
0x15c7   :  { %v6487_v59 = vpop.eup %6486 }
0x15c8   :  { %v1118_v32 = vmul.f32 %v6487_v59, %v1115_v47  ;;  %v1119_v16 = vmul.f32 %v6487_v59, %v1116_v28  ;;  %v4457_v35 = vadd.f32 1e-12, %v4456_v27  ;;  %v4888_v27 = vstv %s5440_s7 }
0x15ca   :  { %v1120_v21 = vmul.f32 -0.5, %v1118_v32  ;;  %v1121_v19 = vmul.f32 -0.5, %v1119_v16 }
0x15cc   :  { %v6489_v42 = vpop.eup %6488  ;;  %v1122_v44 = vmul.f32 1.442695, %v1120_v21  ;;  %v1124_v36 = vmul.f32 1.442695, %v1121_v19 }
0x15cd   :  { %v2235_v54 = vmul.f32 %v6489_v42, %v2232_v60  ;;  %v2236_v20 = vmul.f32 %v6489_v42, %v2233_v6  ;;  %v4666_v60 = vadd.f32 %v4665_v24, %v4664_v9 }
0x15ce   :  { %6492 = vpow2.f32 %v1122_v44 }
0x15cf   :  { %v2237_v62 = vmul.f32 -0.5, %v2235_v54  ;;  %v2238_v1 = vmul.f32 -0.5, %v2236_v20  ;;  %6494 = vpow2.f32 %v1124_v36  ;;  %v4667_v3 = vrot.slane %v4666_v60, 2 }
0x15d0   :  { %v6491_v52 = vpop.eup %6490 }
0x15d1   :  { %v2239_v47 = vmul.f32 1.442695, %v2237_v62  ;;  %v2241_v28 = vmul.f32 1.442695, %v2238_v1  ;;  %v3352_v12 = vmul.f32 %v6491_v52, %v3349_v38  ;;  %v3353_v63 = vmul.f32 %v6491_v52, %v3350_v37 }
0x15d2   :  { %v4668_v37 = vadd.f32 %v4667_v3, %v4666_v60 }
0x15d3   :  { %6496 = vpow2.f32 %v2239_v47  ;;  %v3354_v33 = vmul.f32 -0.5, %v3352_v12  ;;  %v3355_v50 = vmul.f32 -0.5, %v3353_v63 }
0x15d4   :  { %6498 = vpow2.f32 %v2241_v28  ;;  %v4669_v53 = vrot.slane %v4668_v37, 1 }
0x15d5   :  { %v3356_v6 = vmul.f32 1.442695, %v3354_v33  ;;  %v3358_v11 = vmul.f32 1.442695, %v3355_v50 }
0x15d6   :  { %v4670_v41 = vadd.f32 %v4669_v53, %v4668_v37  ;;  %v4882_v53 = vstv %s5439_s30 }
0x15d7   :  { %6500 = vpow2.f32 %v3356_v6 }
0x15d8   :  { %6502 = vpow2.f32 %v3358_v11  ;;  %v6493_v29 = vpop.eup %6492  ;;  %v4671_v59 = vmul.f32 0.0625, %v4670_v41 }
0x15d9   :  { %v6495_v61 = vpop.eup %6494  ;;  %v4698_v38 = vmul.f32 %v6493_v29, %v4697_v4  ;;  %6504 = vrcp.f32 %v4457_v35 }
0x15da   :  { %v4699_v15 = vmul.f32 %v6495_v61, %v4697_v4  ;;  %v4672_v57 = vadd.f32 1e-12, %v4671_v59 }
0x15dc   :  { %6506 = vrcp.f32 %v4672_v57 }
0x15dd   :  { %v6497_v13 = vpop.eup %6496 }
0x15de   :  { %v6499_v45 = vpop.eup %6498  ;;  %v4702_v34 = vmul.f32 %v6497_v13, %v4701_v48 }
0x15df   :  { %v4703_v5 = vmul.f32 %v6499_v45, %v4701_v48 }
0x15e0   :  { %v4704_v0 = vadd.f32 %v4702_v34, %v4698_v38  ;;  %v4719_v34 = vstv %s5433_s26 }
0x15e1   :  { %v6501_v25 = vpop.eup %6500  ;;  %v4705_v51 = vadd.f32 %v4703_v5, %v4699_v15  ;;  %v4692_v15 = vld [vmem:[%s8196_s18] sm:$0xff]  ;;  %v4693_v5 = vld [vmem:[%s8196_s18 + $0x8] sm:$0xff] }
0x15e2   :  { %v6503_v56 = vpop.eup %6502  ;;  %v4708_v39 = vmul.f32 %v6501_v25, %v4707_v2  ;;  %v4720_v25 = vmul.f32 %v4719_v34, %v4692_v15 }
0x15e3   :  { %v4709_v43 = vmul.f32 %v6503_v56, %v4707_v2  ;;  %v6505_v62 = vpop.eup %6504  ;;  %v4721_v56 = vmul.f32 %v4719_v34, %v4693_v5 }
0x15e4   :  { %v4710_v23 = vadd.f32 %v4708_v39, %v4704_v0  ;;  %v4695_v39 = vld [vmem:[%s8197_s19 + $0x8] sm:$0xff] }
0x15e5   :  { %v4711_v26 = vadd.f32 %v4709_v43, %v4705_v51  ;;  %v4694_v51 = vld [vmem:[%s8197_s19] sm:$0xff] }
0x15e6   :  { %v6507_v31 = vpop.eup %6506  ;;  %v4889_v59 = vmul.f32 %v4888_v27, %v4694_v51 }
0x15eb   :  { %v5968_v32 = vpop.f32.mrb[36].mxu1 }
0x15ec   :  { %v4356_v16 = vpop.f32.mrb[37].mxu1  ;;  %v4465_v9 = vmul.f32 2.0, %v5968_v32 }
0x15ed   :  { %v4445_v21 = vpop.f32.mrb[44].mxu0  ;;  %v4464_v44 = vmul.f32 2.0, %v4356_v16 }
0x15ee   :  { %v4461_v19 = vrot.slane %v4445_v21, %v7126_v40  ;;  %v5975_v42 = vpop.f32.mrb[45].mxu0 }
0x15f0   :  { %v4462_v55 = vadd.f32 %v4461_v19, %v8084_v17  ;;  %v4463_v54 = vadd.f32 %v4461_v19, %v8082_v10 }
0x15f2   :  { %v4466_v20 = vsub.f32 %v4462_v55, %v4464_v44  ;;  %v4467_v36 = vsub.f32 %v4463_v54, %v4465_v9 }
0x15f4   :  { %v4469_v1 = vmul.f32 %v6505_v62, %v4466_v20  ;;  %v4470_v52 = vmul.f32 %v6505_v62, %v4467_v36  ;;  %v5982_v24 = vpop.f32.mrb[38].mxu1 }
0x15f5   :  { %v4571_v58 = vpop.f32.mrb[39].mxu1  ;;  %v4660_v47 = vpop.f32.mrb[46].mxu0  ;;  %v4680_v50 = vmul.f32 2.0, %v5982_v24 }
0x15f6   :  { %v4471_v28 = vmul.f32 -0.5, %v4469_v1  ;;  %v4472_v12 = vmul.f32 -0.5, %v4470_v52  ;;  %v4676_v63 = vrot.slane %v4660_v47, %v7126_v40  ;;  %v5989_v33 = vpop.f32.mrb[47].mxu0  ;;  %v4679_v60 = vmul.f32 2.0, %v4571_v58 }
0x15f8   :  { %v4473_v6 = vmul.f32 1.442695, %v4471_v28  ;;  %v4475_v17 = vmul.f32 1.442695, %v4472_v12  ;;  %v4677_v10 = vadd.f32 %v4676_v63, %v8068_v49  ;;  %v4678_v11 = vadd.f32 %v4676_v63, %v8066_v8 }
0x15fa   :  { %6508 = vpow2.f32 %v4473_v6  ;;  %v4681_v18 = vsub.f32 %v4677_v10, %v4679_v60  ;;  %v4682_v3 = vsub.f32 %v4678_v11, %v4680_v50  ;;  %v8258_v6 = vld [vmem:[#allocation30_spill] sm:$0xff] }
0x15fb   :  { %6510 = vpow2.f32 %v4475_v17  ;;  %v4749_v17 = vadd.s32 8, %v8258_v6 }
0x15fc   :  { %v4684_v29 = vmul.f32 %v6507_v31, %v4681_v18  ;;  %v4685_v4 = vmul.f32 %v6507_v31, %v4682_v3  ;;  %v8259_v31 = vld [vmem:[#allocation29_spill] sm:$0xff] }
0x15fd   :  { %vm4751_vm10 = vcmp.eq.s32.totalorder %v4749_v17, %v8259_v31  ;;  %vm4750_vm12 = vcmp.eq.s32.totalorder %v8258_v6, %v8259_v31 }
0x15fe   :  { %v4686_v48 = vmul.f32 -0.5, %v4684_v29  ;;  %v4687_v61 = vmul.f32 -0.5, %v4685_v4 }
0x1600   :  { %v4688_v13 = vmul.f32 1.442695, %v4686_v48  ;;  %v4690_v37 = vmul.f32 1.442695, %v4687_v61 }
0x1602   :  { %6512 = vpow2.f32 %v4688_v13  ;;  %v5435_v13 = vsel %vm4751_vm10, 1.0, %v8253_v14 }
0x1603   :  { %6514 = vpow2.f32 %v4690_v37  ;;  %v5434_v37 = vsel %vm4750_vm12, 1.0, %v8253_v14 }
0x1604   :  { %v6509_v49 = vpop.eup %6508 }
0x1605   :  { %v6511_v8 = vpop.eup %6510  ;;  %v4714_v45 = vmul.f32 %v6509_v49, %v4713_v22 }
0x1606   :  { %v4715_v38 = vmul.f32 %v6511_v8, %v4713_v22 }
0x1607   :  { %v4716_v2 = vadd.f32 %v4714_v45, %v4710_v23  ;;  %v4890_v23 = vmul.f32 %v4888_v27, %v4695_v39  ;;  %v5027_v39 = vld [vmem:[%s8199_s21] sm:$0xff] }
0x1608   :  { %v4717_v0 = vadd.f32 %v4715_v38, %v4711_v26 }
0x1609   :  { %v4722_v32 = vadd.f32 %v4720_v25, %v4716_v2 }
0x160a   :  { %v4723_v26 = vadd.f32 %v4721_v56, %v4717_v0 }
0x160b   :  { %v4724_v42 = vand.u32 2147483647, %v4722_v32 }
0x160c   :  { %v6513_v43 = vpop.eup %6512  ;;  %v4725_v44 = vand.u32 2147483647, %v4723_v26 }
0x160d   :  { %v6515_v41 = vpop.eup %6514  ;;  %v4883_v35 = vmul.f32 %v6513_v43, %v4882_v53  ;;  %vm4726_vm5 = vcmp.gt.f32.partialorder %v4724_v42, 0.0  ;;  %vm4743_vm11 = vcmp.eq.f32.partialorder %v4724_v42, 0.0  ;;  %v5028_v43 = vld [vmem:[%s8199_s21 + $0x8] sm:$0xff] }
0x160e   :  { %v4884_v16 = vmul.f32 %v6515_v41, %v4882_v53  ;;  %vm4727_vm9 = vcmp.gt.f32.partialorder %v4725_v44, 0.0  ;;  %vm4744_vm13 = vcmp.eq.f32.partialorder %v4725_v44, 0.0  ;;  %v6252_v41 = vpack.c.bf16 %v5028_v43, %v5027_v39 }
0x160f   :  { %v4885_v57 = vadd.f32 %v4883_v35, %v8062_v7  ;;  %v4728_v7 = vsel %vm4726_vm5, %v4724_v42, 1e+30  ;;  %v5025_v35 = vld [vmem:[%s8198_s20] sm:$0xff] }
0x1610   :  { %v4886_v21 = vadd.f32 %v4884_v16, %v8064_v30  ;;  %v4729_v30 = vsel %vm4727_vm9, %v4725_v44, 1e+30  ;;  %v4730_v52 = vsel %vm313_vm1, %v4728_v7, inf }
0x1611   :  { %v4891_v19 = vadd.f32 %v4889_v59, %v4885_v57  ;;  %v4733_v24 = vsel %vm313_vm1, %v4729_v30, inf  ;;  %v5026_v59 = vld [vmem:[%s8198_s20 + $0x8] sm:$0xff]  ;;  %s6794_s20 = smov [#allocation20]  }
0x1612   :  { %v4892_v9 = vadd.f32 %v4890_v23, %v4886_v21  ;;  %s5232_s21 = sshll.u32 %s6794_s20, 4  ;;  %s5233_s21 = int_to_ptr.vmem [resolvable:$true] %s5232_s21 }
0x1613   :  { %v4893_v55 = vand.u32 2147483647, %v4891_v19  ;;  %s6740_s14 = scalar_lea.vmem %s5233_s21, 256  ;;  %p6745_p5 = scmp.lt.s32.totalorder %s5233_s21, %s5233_s21 }
0x1614   :  { %v4894_v54 = vand.u32 2147483647, %v4892_v9  ;;  %p6741_p4 = scmp.ne.s32.totalorder %s5233_s21, %s6740_s14  ;;  %p6746_p6 = scmp.lt.s32.totalorder %s6740_s14, %s6740_s14 }
0x1615   :  { %vm4895_vm0 = vcmp.gt.f32.partialorder %v4893_v55, 0.0  ;;  %vm4912_vm2 = vcmp.eq.f32.partialorder %v4893_v55, 0.0 }
0x1616   :  { %vm4896_vm8 = vcmp.gt.f32.partialorder %v4894_v54, 0.0  ;;  %v4897_v20 = vsel %vm4895_vm0, %v4893_v55, 1e+30  ;;  %vm4913_vm14 = vcmp.eq.f32.partialorder %v4894_v54, 0.0  ;;  %p6747_p7 = por %p6746_p6, %p6745_p5 }
0x1617   :  { %v4898_v36 = vsel %vm4896_vm8, %v4894_v54, 1e+30  ;;  %v4899_v62 = vsel %vm313_vm1, %v4897_v20, inf }
0x1618   :  { %v4902_v1 = vsel %vm313_vm1, %v4898_v36, inf  ;;  %4900 = vmin.xlane.f32.xlu0 %v4899_v62  ;;  %p6748_p8 = pnand %p6747_p7, %p6741_p4 }
0x1619   :  { %4903 = vmin.xlane.f32.xlu1 %v4902_v1 }
0x161c   :  { %4731 = vmin.xlane.f32.xlu0 %v4730_v52 }
0x161d   :  { %4734 = vmin.xlane.f32.xlu1 %v4733_v24 }
0x16a5   :  { %v4901_v58 = vpop.xlane.xlu0 %4900 }
0x16a6   :  { %v4904_v47 = vpop.xlane.xlu1 %4903 }
0x16a7   :  { %v4905_v28 = vmin.f32 %v4901_v58, %v4904_v47 }
0x16a9   :  { %v4906_v12 = vrot.slane %v4905_v28, 4  ;;  %v4732_v63 = vpop.xlane.xlu0 %4731 }
0x16aa   :  { %v4735_v33 = vpop.xlane.xlu1 %4734 }
0x16ab   :  { %v4907_v50 = vmin.f32 %v4905_v28, %v4906_v12  ;;  %v4736_v60 = vmin.f32 %v4732_v63, %v4735_v33 }
0x16ad   :  { %v4908_v10 = vrot.slane %v4907_v50, 2  ;;  %v4737_v11 = vrot.slane %v4736_v60, 4 }
0x16af   :  { %v4909_v18 = vmin.f32 %v4907_v50, %v4908_v10  ;;  %v4738_v3 = vmin.f32 %v4736_v60, %v4737_v11 }
0x16b1   :  { %v4910_v29 = vrot.slane %v4909_v18, 1  ;;  %v4739_v4 = vrot.slane %v4738_v3, 2 }
0x16b3   :  { %v4911_v48 = vmin.f32 %v4909_v18, %v4910_v29  ;;  %v4740_v61 = vmin.f32 %v4738_v3, %v4739_v4 }
0x16b5   :  { %v4741_v22 = vrot.slane %v4740_v61, 1  ;;  %v8120_v49 = vsel %vm4913_vm14, %v4911_v48, %v4894_v54  ;;  %v8122_v8 = vsel %vm4912_vm2, %v4911_v48, %v4893_v55 }
0x16b6   :  { %v4917_v45 = vmul.f32 %v5435_v13, %v8120_v49  ;;  %v4916_v38 = vmul.f32 %v5434_v37, %v8122_v8 }
0x16b7   :  { %v4742_v34 = vmin.f32 %v4740_v61, %v4741_v22 }
0x16b8   :  { %v4921_v15 = vsel %vm313_vm1, %v4917_v45, 0.0  ;;  %v4918_v5 = vsel %vm313_vm1, %v4916_v38, 0.0  ;;  %v6250_v2 = vpack.c.bf16 %v4917_v45, %v4916_v38 }
0x16b9   :  { %4922 = vadd.xlane.f32.xlu1 %v4921_v15  ;;  %4919 = vadd.xlane.f32.xlu0 %v4918_v5  ;;  %v8128_v14 = vsel %vm4744_vm13, %v4742_v34, %v4725_v44  ;;  %v8130_v0 = vsel %vm4743_vm11, %v4742_v34, %v4724_v42 }
0x16ba   :  { %6251 = vmatpush3.bf16.msra.mxu0 %v6250_v2  ;;  %v4757_v25 = vmul.f32 %v5435_v13, %v8128_v14  ;;  %v4756_v53 = vmul.f32 %v5434_v37, %v8130_v0 }
0x16bc   :  { %v4761_v27 = vsel %vm313_vm1, %v4757_v25, 0.0  ;;  %v4758_v51 = vsel %vm313_vm1, %v4756_v53, 0.0  ;;  %v6247_v56 = vpack.c.bf16 %v4757_v25, %v4756_v53 }
0x16bd   :  { %6002 = vmatmul.mubr.msk.f32.vlgmr.msra.gmra.mrb[48].mxu0 %vm313_vm1, %v8254_v46  ;;  %4762 = vadd.xlane.f32.xlu1 %v4761_v27 }
0x16be   :  { %4759 = vadd.xlane.f32.xlu0 %v4758_v51  ;;  %6248 = vmatpush3.bf16.msra.mxu1 %v6247_v56 }
0x16bf   :  { %6253 = vmatprep.subr.bf16.mxu1 %v6252_v41 }
0x16c1   :  { %5995 = vmatmul.mubr.msk.f32.vlgmr.msra.gmra.mrb[40].mxu1 %vm313_vm1, %v8254_v46  ;;  %v6256_v46 = vpack.c.bf16 %v5026_v59, %v5025_v35 }
0x16c2   :  { %6255 = vmatpush3.bf16.msra.mxu1 %v6252_v41 }
0x16c3   :  { %6257 = vmatprep.subr.bf16.mxu0 %v6256_v46 }
0x16c4   :  { %6259 = vmatpush3.bf16.msra.mxu0 %v6256_v46 }
0x1746   :  { %v4923_v32 = vpop.xlane.xlu1 %4922  ;;  %v4920_v16 = vpop.xlane.xlu0 %4919 }
0x1747   :  { %6516 = vrsqrt.f32 %v4923_v32  ;;  %vm4933_vm15 = vcmp.eq.f32.partialorder %v4923_v32, inf  ;;  %vm4935_vm3 = vcmp.eq.f32.partialorder %v4923_v32, 0.0  ;;  %v4936_v1 = vand.u32 2147483648, %v4923_v32 }
0x1748   :  { %6518 = vrsqrt.f32 %v4920_v16  ;;  %vm4926_vm4 = vcmp.eq.f32.partialorder %v4920_v16, inf  ;;  %vm4928_vm7 = vcmp.eq.f32.partialorder %v4920_v16, 0.0  ;;  %v4929_v63 = vand.u32 2147483648, %v4920_v16 }
0x174a   :  { %v4763_v23 = vpop.xlane.xlu1 %4762 }
0x174b   :  { %v4760_v26 = vpop.xlane.xlu0 %4759  ;;  %6520 = vrsqrt.f32 %v4763_v23  ;;  %vm4773_vm8 = vcmp.eq.f32.partialorder %v4763_v23, inf  ;;  %v4776_v4 = vand.u32 2147483648, %v4763_v23  ;;  %vm4775_vm12 = vcmp.eq.f32.partialorder %v4763_v23, 0.0 }
0x174c   :  { %6522 = vrsqrt.f32 %v4760_v26  ;;  %vm4766_vm10 = vcmp.eq.f32.partialorder %v4760_v26, inf  ;;  %v4769_v48 = vand.u32 2147483648, %v4760_v26  ;;  %vm4768_vm14 = vcmp.eq.f32.partialorder %v4760_v26, 0.0 }
0x1751   :  { %v6517_v9 = vpop.eup %6516 }
0x1752   :  { %v6519_v44 = vpop.eup %6518  ;;  %v4932_v54 = vmul.f32 %v6517_v9, %v4923_v32 }
0x1753   :  { %v4925_v36 = vmul.f32 %v6519_v44, %v4920_v16 }
0x1754   :  { %v4934_v30 = vsel %vm4933_vm15, %v4923_v32, %v4932_v54 }
0x1755   :  { %v6521_v55 = vpop.eup %6520  ;;  %v4927_v58 = vsel %vm4926_vm4, %v4920_v16, %v4925_v36  ;;  %v4937_v17 = vsel %vm4935_vm3, %v4936_v1, %v4934_v30 }
0x1756   :  { %v6523_v20 = vpop.eup %6522  ;;  %v4772_v52 = vmul.f32 %v6521_v55, %v4763_v23  ;;  %v4930_v10 = vsel %vm4928_vm7, %v4929_v63, %v4927_v58 }
0x1757   :  { %v4765_v47 = vmul.f32 %v6523_v20, %v4760_v26 }
0x1758   :  { %v4774_v11 = vsel %vm4773_vm8, %v4763_v23, %v4772_v52 }
0x1759   :  { %v4767_v18 = vsel %vm4766_vm10, %v4760_v26, %v4765_v47  ;;  %v4777_v37 = vsel %vm4775_vm12, %v4776_v4, %v4774_v11 }
0x175a   :  { %v4770_v22 = vsel %vm4768_vm14, %v4769_v48, %v4767_v18 }
0x1790   :  { %v5004_v57 = vpop.f32.mrb[48].mxu0 }
0x1791   :  { %6524 = vrsqrt.f32 %v5004_v57  ;;  %v6003_v21 = vpop.f32.mrb[49].mxu0  ;;  %vm5010_vm6 = vcmp.eq.f32.partialorder %v5004_v57, inf  ;;  %v5013_v24 = vand.u32 2147483648, %v5004_v57  ;;  %vm5012_vm0 = vcmp.eq.f32.partialorder %v5004_v57, 0.0 }
0x1794   :  { %v4844_v19 = vpop.f32.mrb[40].mxu1 }
0x1795   :  { %6526 = vrsqrt.f32 %v4844_v19  ;;  %v5996_v42 = vpop.f32.mrb[41].mxu1  ;;  %vm4850_vm5 = vcmp.eq.f32.partialorder %v4844_v19, inf  ;;  %v4853_v50 = vand.u32 2147483648, %v4844_v19  ;;  %vm4852_vm9 = vcmp.eq.f32.partialorder %v4844_v19, 0.0 }
0x179b   :  { %v6525_v62 = vpop.eup %6524 }
0x179c   :  { %v5009_v7 = vmul.f32 %v6525_v62, %v5004_v57 }
0x179e   :  { %v5011_v28 = vsel %vm5010_vm6, %v5004_v57, %v5009_v7 }
0x179f   :  { %v6527_v12 = vpop.eup %6526  ;;  %v5014_v33 = vsel %vm5012_vm0, %v5013_v24, %v5011_v28 }
0x17a0   :  { %v5018_v60 = vrot.slane %v5014_v33, %v7126_v40  ;;  %v4849_v6 = vmul.f32 %v6527_v12, %v4844_v19 }
0x17a2   :  { %v5019_v3 = vmul.f32 %v5018_v60, %v4930_v10  ;;  %v5020_v31 = vmul.f32 %v5018_v60, %v4937_v17  ;;  %v4851_v29 = vsel %vm4850_vm5, %v4844_v19, %v4849_v6 }
0x17a3   :  { %v4854_v61 = vsel %vm4852_vm9, %v4853_v50, %v4851_v29 }
0x17a4   :  { %6528 = vrcp.f32 %v5019_v3  ;;  %v4858_v13 = vrot.slane %v4854_v61, %v7126_v40 }
0x17a5   :  { %6530 = vrcp.f32 %v5020_v31 }
0x17a6   :  { %v4859_v45 = vmul.f32 %v4858_v13, %v4770_v22  ;;  %v4860_v38 = vmul.f32 %v4858_v13, %v4777_v37 }
0x17a8   :  { %6532 = vrcp.f32 %v4859_v45 }
0x17a9   :  { %6534 = vrcp.f32 %v4860_v38 }
0x17ae   :  { %v6529_v34 = vpop.eup %6528 }
0x17af   :  { %v6531_v15 = vpop.eup %6530  ;;  %v5022_v5 = vmul.f32 %v6529_v34, %v8122_v8 }
0x17b0   :  { %v5024_v2 = vmul.f32 %v6531_v15, %v8120_v49 }
0x17b1   :  { %6008 = vmatprep.mubr.msk.f32.mxu1 %vm313_vm1, %v5022_v5 }
0x17b2   :  { %v6533_v25 = vpop.eup %6532  ;;  %6009 = vmatmul.mubr.msk.f32.vlgmr.msra.gmra.mrb[42].mxu1 %vm313_vm1, %v5024_v2 }
0x17b3   :  { %v6535_v53 = vpop.eup %6534  ;;  %v4862_v40 = vmul.f32 %v6533_v25, %v8130_v0 }
0x17b4   :  { %v4864_v27 = vmul.f32 %v6535_v53, %v8128_v14 }
0x17b5   :  { %6015 = vmatprep.mubr.msk.f32.mxu0 %vm313_vm1, %v4862_v40 }
0x17b6   :  { %6016 = vmatmul.mubr.msk.f32.vlgmr.msra.gmra.mrb[50].mxu0 %vm313_vm1, %v4864_v27 }
0x1885   :  { %v6010_v51 = vpop.f32.mrb[42].mxu1 }
0x1886   :  { %v5101_v56 = vpop.f32.mrb[43].mxu1 }
0x1887   :  { %5110 = vxpose.xlu0.b32.start [1/2] (short) (narrow) %v5101_v56, 16 }
0x1889   :  { %v6017_v8 = vpop.f32.mrb[50].mxu0 }
0x188a   :  { %v5214_v39 = vpop.f32.mrb[51].mxu0 }
0x188b   :  { %5111 = vxpose.xlu0.b32.end [2/2] (short) (narrow) %v6010_v51, 16 }
0x1907   :  { %v5126_v49 = vpop.trf.xlu0 }
0x1908   :  { %v5215_v43 = vadd.f32 %v5214_v39, %v5126_v49 }
0x190a   :  { %v5223_v41 = vmul.f32 0.5, %v5215_v43 }
0x190b   :  { %v5127_v35 = vpop.trf.xlu0 }
0x190c   :  { %5225 = vst.msk [vmem:[#allocation20] sm:$0xff] %vm313_vm1, %v5223_v41  ;;  %v5220_v0 = vadd.f32 %v6017_v8, %v5127_v35 }
0x190e   :  { %v5224_v14 = vmul.f32 0.5, %v5220_v0 }
0x1910   :  { %5226 = vst.msk [vmem:[#allocation20 + $0x8] sm:$0xff] %vm313_vm1, %v5224_v14 }
0x1911   :  { %6751 = shalt.err (!%p6748_p8)
}
0x1912   :  { %s6752_s6 = scalar_lea.hbm %s8202_s24, 256 }
0x1913   :  { %p6753_p9 = scmp.ne.s32.totalorder %s8202_s24, %s6752_s6  ;;  %p6756_p10 = scmp.lt.u32.totalorder %s6752_s6, %s8202_s24 }
0x1915   :  { %p6758_p11 = pnand %p6756_p10, %p6753_p9 }
0x1917   :  { %6761 = shalt.err (!%p6758_p11)
}
0x1918   :  { %s6795_s9 = smov 128   ;;  %s6796_s26 = smov 8  }
0x1919   :  { %5238 = dma.vmem_to_hbm [thread:$0]  %s5233_s21, 256, %s8202_s24, [#allocation4], %s6795_s9, %s6795_s9, %s6796_s26  }
0x191a   :  { %6776 = dma.done.wait [#allocation4], 256  }
0x191b   :  { %6777 = vsyncadd [#allocation4], 4294967040 }
0x191c   :  { %5242 = vsyncpa [#allocation3], 1 }
0x191d   :  { %5243 = vsyncpa [#allocation7], 1 }
0x191e   :  { %5244 = vsyncpa [#allocation10], 1 }
0x191f   :  { %5245 = vsyncpa [#allocation13], 1 }
0x1920   :  { %5246 = vsyncpa [#allocation16], 1 }
0x1921   :  { %5247 = vsyncpa [#allocation4], 1 }
0x1922   :  { %5248 = vsyncpa [#allocation5], 1 }
0x1923   :  { %5249 = vsyncpa [#allocation19], 1 }

</bundles_post_ra>
